<compile_context>
chip_gen: v7x
topology: tpu7x:2x2x1
jax: 0.10.0
libtpu: 0.0.40
codegen_flags: <defaults>
</compile_context>

<pallas_src>
import functools

import jax
import jax.numpy as jnp
import numpy as np
from jax import lax
from jax.experimental import pallas as pl
from jax.experimental.pallas import tpu as pltpu

_LANES = 128


# ----------------------------- Pallas kernel -------------------------------- #
def _conv2d_field_kernel(w_sref, x_ref, o_ref, pad_ref, *, K, ka, kb):
    _, H, W, TN = x_ref.shape

    xr = x_ref[0, :, :, :]                     # (H, W, TN)
    xi = x_ref[1, :, :, :]
    inten = xr * xr + xi * xi                  # |x|^2

    # ---- reflection pad (== nn.ReflectionPad2d((ka, kb, ka, kb))) into a VMEM
    # scratch: pure static-slice copies, no concatenates / relayouts. ----
    pad_ref[ka:ka + H, ka:ka + W, :] = inten
    for p in range(ka):                        # top rows: padded row p <- row (ka - p)
        pad_ref[p:p + 1, ka:ka + W, :] = inten[ka - p:ka - p + 1]
    for r in range(kb):                        # bottom rows: padded row ka+H+r <- row (H-2-r)
        pad_ref[ka + H + r:ka + H + r + 1, ka:ka + W, :] = inten[H - 2 - r:H - 1 - r]
    for p in range(ka):                        # left cols (read the already H-padded scratch)
        pad_ref[:, p:p + 1, :] = pad_ref[:, 2 * ka - p:2 * ka - p + 1, :]
    for c in range(kb):                        # right cols
        pad_ref[:, ka + W + c:ka + W + c + 1, :] = pad_ref[:, ka + W - 2 - c:ka + W - 1 - c, :]

    # ---- KxK "same" cross-correlation, taps fully unrolled (K static).
    # ky offsets are slab-address offsets, kx offsets are sublane offsets:
    # no cross-lane shuffles in the hot loop. Weights are SMEM scalars. ----
    acc = w_sref[0] * pad_ref[0:H, 0:W, :]
    for t in range(1, K * K):
        ky, kx = divmod(t, K)
        acc = acc + w_sref[t] * pad_ref[ky:ky + H, kx:kx + W, :]

    # .abs().mean(dim=1, keepdims=True).sqrt()  (single out-channel -> mean is identity)
    amp = jnp.sqrt(jnp.abs(acc))

    # amp * exp(i * angle(x)): reuse |x|^2, one rsqrt (EUP slot); angle(0) := 0.
    safe = inten > 0.0
    scale = amp * lax.rsqrt(jnp.where(safe, inten, 1.0))
    o_ref[0, :, :, :] = jnp.where(safe, xr * scale, amp)
    o_ref[1, :, :, :] = jnp.where(safe, xi * scale, jnp.zeros_like(amp))


# ------------------------------ block sizing -------------------------------- #
def _choose_tn(N, H, W):
    """Lane-dense batch tile: a multiple of 128 lanes for large N, else the full batch."""
    if N <= 2 * _LANES:
        return N                               # tiny batch: single full-dim block
    plane_bytes = 2 * H * W * 4                # (re, im) float32 per plane
    # ~4 MiB per input block: with double-buffered in+out, the padded scratch and
    # tap temporaries (~6x block bytes) this stays inside v7x's 64 MiB/TC and is
    # comfortably large for v5e/v6e (128 MiB) to amortize per-step overhead.
    tn = max(_LANES, ((4 << 20) // plane_bytes) // _LANES * _LANES)
    # keep >= 8 blocks so both v7x TensorCores get >= 4 pipelined blocks each.
    tn = min(tn, max(_LANES, (pl.cdiv(N, 8) // _LANES) * _LANES))
    return tn


# ------------------------------ wrapper (glue) ------------------------------- #
def _conv2d_field_pallas(x, weight):
    """x: complex (N, 1, H, W); weight: (1, 1, K, K) float32.  Returns complex64 (N, 1, H, W)."""
    N, _, H, W = x.shape
    K = int(weight.shape[-1])
    ka = K // 2
    kb = ka - 1 if K % 2 == 0 else ka
    # Reflection pad is only defined for pad < plane size (mirrors torch).
    assert ka < H and kb < H and ka < W and kb < W, "conv_size too large for the plane"

    # Layout plumbing: batch-on-lanes (2, H, W, N).  The real/imag split fuses
    # with this single transpose pass in XLA (one HBM pass in, one out).
    x2 = x.reshape(N, H, W)
    xt = jnp.stack([jnp.real(x2).astype(jnp.float32),
                    jnp.imag(x2).astype(jnp.float32)], axis=0)     # (2, N, H, W)
    xt = jnp.transpose(xt, (0, 2, 3, 1))                            # (2, H, W, N)

    TN = _choose_tn(N, H, W)
    grid_n = pl.cdiv(N, TN)
    n_pad = grid_n * TN
    if n_pad != N:                                                  # pad batch to a multiple of TN
        xt = jnp.pad(xt, ((0, 0), (0, 0), (0, 0), (0, n_pad - N)))

    kernel = functools.partial(_conv2d_field_kernel, K=K, ka=ka, kb=kb)
    out = pl.pallas_call(
        kernel,
        out_shape=jax.ShapeDtypeStruct((2, H, W, n_pad), jnp.float32),
        grid_spec=pltpu.PrefetchScalarGridSpec(
            num_scalar_prefetch=1,                                  # (K*K,) weights -> SMEM, once
            grid=(grid_n,),
            in_specs=[pl.BlockSpec((2, H, W, TN), lambda n, w_sref: (0, 0, 0, n))],
            out_specs=pl.BlockSpec((2, H, W, TN), lambda n, w_sref: (0, 0, 0, n)),
            scratch_shapes=[pltpu.VMEM((H + ka + kb, W + ka + kb, TN), jnp.float32)],
        ),
        compiler_params=pltpu.CompilerParams(
            dimension_semantics=("parallel",),
            vmem_limit_bytes=48 * 1024 * 1024,
        ),
    )(weight.reshape(K * K).astype(jnp.float32), xt)

    # Back to (N, 1, H, W) complex64 — one fused transpose + complex-assemble pass.
    outp = jnp.transpose(out[..., :N], (3, 1, 2, 0))                # (N, H, W, 2)
    out_c = lax.complex(outp[..., 0], outp[..., 1]).astype(jnp.complex64)
    return out_c.reshape(N, 1, H, W)


def conv2d_field_forward(input_field, weight):
    """Mirrors Conv2dField.forward for complex=False (amplitude path)."""
    # TODO(synk): complex=True branch (two convs applied to real/imag) not implemented.
    x = input_field
    if x.ndim > 4:
        lf_b, num_ch = x.shape[0], x.shape[1]
        num_y, num_x = x.shape[4], x.shape[5]
        x = jnp.transpose(x, (0, 4, 5, 1, 2, 3))
        x = x.reshape(lf_b * num_y * num_x, num_ch, x.shape[-2], x.shape[-1])
        lf = True
    else:
        lf = False

    num_ch = x.shape[1]
    if num_ch > 1:
        batch_size = x.shape[0]
        x = x.reshape(batch_size * num_ch, 1, x.shape[2], x.shape[3])

    out = _conv2d_field_pallas(x, weight)

    if num_ch > 1:
        out = out.reshape(batch_size, num_ch, out.shape[2], out.shape[3])
    if lf:
        out = out.reshape(lf_b, num_y, num_x, num_ch, out.shape[-2], out.shape[-1])
        out = jnp.transpose(out, (0, 3, 4, 5, 1, 2))
    return out


# ------------------------------ pure-JAX reference --------------------------- #
def _reference(x, weight):
    B, C, H, W = x.shape
    K = weight.shape[-1]
    ka = K // 2
    kb = ka - 1 if K % 2 == 0 else ka
    xr = jnp.real(x).astype(jnp.float32)
    xi = jnp.imag(x).astype(jnp.float32)
    inten = xr * xr + xi * xi
    ip = jnp.pad(inten, ((0, 0), (0, 0), (ka, kb), (ka, kb)), mode="reflect")
    w = weight.reshape(K, K)
    acc = jnp.zeros_like(inten)
    for ky in range(K):
        for kx in range(K):
            acc = acc + w[ky, kx] * ip[:, :, ky:ky + H, kx:kx + W]
    amp = jnp.sqrt(jnp.abs(acc))
    ang = jnp.arctan2(xi, xr)
    return (amp * jnp.exp(1j * ang)).astype(jnp.complex64)


if __name__ == "__main__":
    conv_size = 3
    key = jax.random.PRNGKey(0)
    kr, ki, kw = jax.random.split(key, 3)

    B, C, H, W = 2, 4, 16, 16
    x_real = jax.random.normal(kr, (B, C, H, W), jnp.float32)
    x_imag = jax.random.normal(ki, (B, C, H, W), jnp.float32)
    x = (x_real + 1j * x_imag).astype(jnp.complex64)

    # 1) Module's deterministic init: delta kernel at the center (identity conv).
    w_delta = jnp.zeros((1, 1, conv_size, conv_size), jnp.float32)
    w_delta = w_delta.at[0, 0, conv_size // 2, conv_size // 2].set(1.0)
    out = jax.block_until_ready(conv2d_field_forward(x, w_delta))
    np.testing.assert_allclose(np.asarray(out), np.asarray(_reference(x, w_delta)),
                               rtol=1e-5, atol=1e-5)
    assert out.shape == (B, C, H, W) and out.dtype == jnp.complex64

    # 2) Non-trivial (positive) random weights: exercises the in-kernel
    #    reflection padding and the full tap accumulation.
    w_rand = jax.random.uniform(kw, (1, 1, conv_size, conv_size), jnp.float32,
                                minval=0.05, maxval=0.15)
    out2 = jax.block_until_ready(conv2d_field_forward(x, w_rand))
    np.testing.assert_allclose(np.asarray(out2), np.asarray(_reference(x, w_rand)),
                               rtol=1e-5, atol=1e-5)

    print("KERNEL_OK")
</pallas_src>

<mosaic_0001>
module attributes {stable_mosaic.version = 11 : i64} {
  func.func @_conv2d_field_kernel(%arg0: i32, %arg1: memref<9xf32, #tpu.memory_space<smem>>, %arg2: memref<2x16x16x8xf32, #tpu.memory_space<vmem>>, %arg3: memref<2x16x16x8xf32, #tpu.memory_space<vmem>>, %arg4: memref<18x18x8xf32, #tpu.memory_space<vmem>>) attributes {dimension_semantics = [#tpu.dimension_semantics<parallel>], iteration_bounds = array<i64: 1>, scalar_prefetch = 1 : i64, scratch_operands = 1 : i64, tpu.core_type = #tpu.core_type<tc>, window_params = [{transform_indices = @transform_0, window_bounds = array<i64: 2, 16, 16, 8>}, {transform_indices = @transform_1, window_bounds = array<i64: 2, 16, 16, 8>}]} {
    %c0 = arith.constant 0 : index
    %c0_0 = arith.constant 0 : index
    %c0_1 = arith.constant 0 : index
    %c0_2 = arith.constant 0 : index
    %0 = vector.load %arg2[%c0, %c0_0, %c0_1, %c0_2] : memref<2x16x16x8xf32, #tpu.memory_space<vmem>>, vector<1x16x16x8xf32>
    %1 = vector.shape_cast %0 : vector<1x16x16x8xf32> to vector<16x16x8xf32>
    %c1 = arith.constant 1 : index
    %c0_3 = arith.constant 0 : index
    %c0_4 = arith.constant 0 : index
    %c0_5 = arith.constant 0 : index
    %2 = vector.load %arg2[%c1, %c0_3, %c0_4, %c0_5] : memref<2x16x16x8xf32, #tpu.memory_space<vmem>>, vector<1x16x16x8xf32>
    %3 = vector.shape_cast %2 : vector<1x16x16x8xf32> to vector<16x16x8xf32>
    %4 = arith.mulf %1, %1 : vector<16x16x8xf32>
    %5 = arith.mulf %3, %3 : vector<16x16x8xf32>
    %6 = arith.addf %4, %5 : vector<16x16x8xf32>
    %c1_6 = arith.constant 1 : index
    %c1_7 = arith.constant 1 : index
    %c0_8 = arith.constant 0 : index
    %7 = vector.load %arg4[%c1_6, %c1_7, %c0_8] : memref<18x18x8xf32, #tpu.memory_space<vmem>>, vector<16x16x8xf32>
    tpu.vector_store %arg4[%c1_6, %c1_7, %c0_8], %6 {strides = array<i32>} : memref<18x18x8xf32, #tpu.memory_space<vmem>>, vector<16x16x8xf32>,
    %8 = vector.extract_strided_slice %6 {offsets = [1, 0, 0], sizes = [1, 16, 8], strides = [1, 1, 1]} : vector<16x16x8xf32> to vector<1x16x8xf32>
    %c0_9 = arith.constant 0 : index
    %c1_10 = arith.constant 1 : index
    %c0_11 = arith.constant 0 : index
    %9 = vector.load %arg4[%c0_9, %c1_10, %c0_11] : memref<18x18x8xf32, #tpu.memory_space<vmem>>, vector<1x16x8xf32>
    tpu.vector_store %arg4[%c0_9, %c1_10, %c0_11], %8 {strides = array<i32>} : memref<18x18x8xf32, #tpu.memory_space<vmem>>, vector<1x16x8xf32>,
    %10 = vector.extract_strided_slice %6 {offsets = [14, 0, 0], sizes = [1, 16, 8], strides = [1, 1, 1]} : vector<16x16x8xf32> to vector<1x16x8xf32>
    %c17 = arith.constant 17 : index
    %c1_12 = arith.constant 1 : index
    %c0_13 = arith.constant 0 : index
    %11 = vector.load %arg4[%c17, %c1_12, %c0_13] : memref<18x18x8xf32, #tpu.memory_space<vmem>>, vector<1x16x8xf32>
    tpu.vector_store %arg4[%c17, %c1_12, %c0_13], %10 {strides = array<i32>} : memref<18x18x8xf32, #tpu.memory_space<vmem>>, vector<1x16x8xf32>,
    %c0_14 = arith.constant 0 : index
    %c2 = arith.constant 2 : index
    %c0_15 = arith.constant 0 : index
    %12 = vector.load %arg4[%c0_14, %c2, %c0_15] : memref<18x18x8xf32, #tpu.memory_space<vmem>>, vector<18x1x8xf32>
    %c0_16 = arith.constant 0 : index
    %c0_17 = arith.constant 0 : index
    %c0_18 = arith.constant 0 : index
    %13 = vector.load %arg4[%c0_16, %c0_17, %c0_18] : memref<18x18x8xf32, #tpu.memory_space<vmem>>, vector<18x1x8xf32>
    tpu.vector_store %arg4[%c0_16, %c0_17, %c0_18], %12 {strides = array<i32>} : memref<18x18x8xf32, #tpu.memory_space<vmem>>, vector<18x1x8xf32>,
    %c0_19 = arith.constant 0 : index
    %c15 = arith.constant 15 : index
    %c0_20 = arith.constant 0 : index
    %14 = vector.load %arg4[%c0_19, %c15, %c0_20] : memref<18x18x8xf32, #tpu.memory_space<vmem>>, vector<18x1x8xf32>
    %c0_21 = arith.constant 0 : index
    %c17_22 = arith.constant 17 : index
    %c0_23 = arith.constant 0 : index
    %15 = vector.load %arg4[%c0_21, %c17_22, %c0_23] : memref<18x18x8xf32, #tpu.memory_space<vmem>>, vector<18x1x8xf32>
    tpu.vector_store %arg4[%c0_21, %c17_22, %c0_23], %14 {strides = array<i32>} : memref<18x18x8xf32, #tpu.memory_space<vmem>>, vector<18x1x8xf32>,
    %c0_24 = arith.constant 0 : index
    %16 = memref.load %arg1[%c0_24] : memref<9xf32, #tpu.memory_space<smem>>
    %c0_25 = arith.constant 0 : index
    %c0_26 = arith.constant 0 : index
    %c0_27 = arith.constant 0 : index
    %17 = vector.load %arg4[%c0_25, %c0_26, %c0_27] : memref<18x18x8xf32, #tpu.memory_space<vmem>>, vector<16x16x8xf32>
    %18 = vector.broadcast %16 : f32 to vector<16x16x8xf32>
    %19 = arith.mulf %18, %17 : vector<16x16x8xf32>
    %c1_28 = arith.constant 1 : index
    %20 = memref.load %arg1[%c1_28] : memref<9xf32, #tpu.memory_space<smem>>
    %c0_29 = arith.constant 0 : index
    %c1_30 = arith.constant 1 : index
    %c0_31 = arith.constant 0 : index
    %21 = vector.load %arg4[%c0_29, %c1_30, %c0_31] : memref<18x18x8xf32, #tpu.memory_space<vmem>>, vector<16x16x8xf32>
    %22 = vector.broadcast %20 : f32 to vector<16x16x8xf32>
    %23 = arith.mulf %22, %21 : vector<16x16x8xf32>
    %24 = arith.addf %19, %23 : vector<16x16x8xf32>
    %c2_32 = arith.constant 2 : index
    %25 = memref.load %arg1[%c2_32] : memref<9xf32, #tpu.memory_space<smem>>
    %c0_33 = arith.constant 0 : index
    %c2_34 = arith.constant 2 : index
    %c0_35 = arith.constant 0 : index
    %26 = vector.load %arg4[%c0_33, %c2_34, %c0_35] : memref<18x18x8xf32, #tpu.memory_space<vmem>>, vector<16x16x8xf32>
    %27 = vector.broadcast %25 : f32 to vector<16x16x8xf32>
    %28 = arith.mulf %27, %26 : vector<16x16x8xf32>
    %29 = arith.addf %24, %28 : vector<16x16x8xf32>
    %c3 = arith.constant 3 : index
    %30 = memref.load %arg1[%c3] : memref<9xf32, #tpu.memory_space<smem>>
    %c1_36 = arith.constant 1 : index
    %c0_37 = arith.constant 0 : index
    %c0_38 = arith.constant 0 : index
    %31 = vector.load %arg4[%c1_36, %c0_37, %c0_38] : memref<18x18x8xf32, #tpu.memory_space<vmem>>, vector<16x16x8xf32>
    %32 = vector.broadcast %30 : f32 to vector<16x16x8xf32>
    %33 = arith.mulf %32, %31 : vector<16x16x8xf32>
    %34 = arith.addf %29, %33 : vector<16x16x8xf32>
    %c4 = arith.constant 4 : index
    %35 = memref.load %arg1[%c4] : memref<9xf32, #tpu.memory_space<smem>>
    %c1_39 = arith.constant 1 : index
    %c1_40 = arith.constant 1 : index
    %c0_41 = arith.constant 0 : index
    %36 = vector.load %arg4[%c1_39, %c1_40, %c0_41] : memref<18x18x8xf32, #tpu.memory_space<vmem>>, vector<16x16x8xf32>
    %37 = vector.broadcast %35 : f32 to vector<16x16x8xf32>
    %38 = arith.mulf %37, %36 : vector<16x16x8xf32>
    %39 = arith.addf %34, %38 : vector<16x16x8xf32>
    %c5 = arith.constant 5 : index
    %40 = memref.load %arg1[%c5] : memref<9xf32, #tpu.memory_space<smem>>
    %c1_42 = arith.constant 1 : index
    %c2_43 = arith.constant 2 : index
    %c0_44 = arith.constant 0 : index
    %41 = vector.load %arg4[%c1_42, %c2_43, %c0_44] : memref<18x18x8xf32, #tpu.memory_space<vmem>>, vector<16x16x8xf32>
    %42 = vector.broadcast %40 : f32 to vector<16x16x8xf32>
    %43 = arith.mulf %42, %41 : vector<16x16x8xf32>
    %44 = arith.addf %39, %43 : vector<16x16x8xf32>
    %c6 = arith.constant 6 : index
    %45 = memref.load %arg1[%c6] : memref<9xf32, #tpu.memory_space<smem>>
    %c2_45 = arith.constant 2 : index
    %c0_46 = arith.constant 0 : index
    %c0_47 = arith.constant 0 : index
    %46 = vector.load %arg4[%c2_45, %c0_46, %c0_47] : memref<18x18x8xf32, #tpu.memory_space<vmem>>, vector<16x16x8xf32>
    %47 = vector.broadcast %45 : f32 to vector<16x16x8xf32>
    %48 = arith.mulf %47, %46 : vector<16x16x8xf32>
    %49 = arith.addf %44, %48 : vector<16x16x8xf32>
    %c7 = arith.constant 7 : index
    %50 = memref.load %arg1[%c7] : memref<9xf32, #tpu.memory_space<smem>>
    %c2_48 = arith.constant 2 : index
    %c1_49 = arith.constant 1 : index
    %c0_50 = arith.constant 0 : index
    %51 = vector.load %arg4[%c2_48, %c1_49, %c0_50] : memref<18x18x8xf32, #tpu.memory_space<vmem>>, vector<16x16x8xf32>
    %52 = vector.broadcast %50 : f32 to vector<16x16x8xf32>
    %53 = arith.mulf %52, %51 : vector<16x16x8xf32>
    %54 = arith.addf %49, %53 : vector<16x16x8xf32>
    %c8 = arith.constant 8 : index
    %55 = memref.load %arg1[%c8] : memref<9xf32, #tpu.memory_space<smem>>
    %c2_51 = arith.constant 2 : index
    %c2_52 = arith.constant 2 : index
    %c0_53 = arith.constant 0 : index
    %56 = vector.load %arg4[%c2_51, %c2_52, %c0_53] : memref<18x18x8xf32, #tpu.memory_space<vmem>>, vector<16x16x8xf32>
    %57 = vector.broadcast %55 : f32 to vector<16x16x8xf32>
    %58 = arith.mulf %57, %56 : vector<16x16x8xf32>
    %59 = arith.addf %54, %58 : vector<16x16x8xf32>
    %60 = math.absf %59 : vector<16x16x8xf32>
    %61 = math.sqrt %60 : vector<16x16x8xf32>
    %cst = arith.constant 0.000000e+00 : f32
    %62 = vector.broadcast %cst : f32 to vector<16x16x8xf32>
    %63 = arith.cmpf ogt, %6, %62 : vector<16x16x8xf32>
    %cst_54 = arith.constant 1.000000e+00 : f32
    %64 = vector.broadcast %cst_54 : f32 to vector<16x16x8xf32>
    %65 = arith.select %63, %6, %64 : vector<16x16x8xi1>, vector<16x16x8xf32>
    %66 = math.rsqrt %65 : vector<16x16x8xf32>
    %67 = arith.mulf %61, %66 : vector<16x16x8xf32>
    %68 = arith.mulf %1, %67 : vector<16x16x8xf32>
    %69 = arith.select %63, %68, %61 : vector<16x16x8xi1>, vector<16x16x8xf32>
    %c0_55 = arith.constant 0 : index
    %c0_56 = arith.constant 0 : index
    %c0_57 = arith.constant 0 : index
    %c0_58 = arith.constant 0 : index
    %70 = vector.load %arg3[%c0_55, %c0_56, %c0_57, %c0_58] : memref<2x16x16x8xf32, #tpu.memory_space<vmem>>, vector<1x16x16x8xf32>
    %71 = vector.shape_cast %70 : vector<1x16x16x8xf32> to vector<16x16x8xf32>
    %72 = vector.shape_cast %69 : vector<16x16x8xf32> to vector<1x16x16x8xf32>
    tpu.vector_store %arg3[%c0_55, %c0_56, %c0_57, %c0_58], %72 {strides = array<i32>} : memref<2x16x16x8xf32, #tpu.memory_space<vmem>>, vector<1x16x16x8xf32>,
    %73 = arith.mulf %3, %67 : vector<16x16x8xf32>
    %cst_59 = arith.constant 0.000000e+00 : f32
    %74 = vector.broadcast %cst_59 : f32 to vector<16x16x8xf32>
    %75 = arith.select %63, %73, %74 : vector<16x16x8xi1>, vector<16x16x8xf32>
    %c1_60 = arith.constant 1 : index
    %c0_61 = arith.constant 0 : index
    %c0_62 = arith.constant 0 : index
    %c0_63 = arith.constant 0 : index
    %76 = vector.load %arg3[%c1_60, %c0_61, %c0_62, %c0_63] : memref<2x16x16x8xf32, #tpu.memory_space<vmem>>, vector<1x16x16x8xf32>
    %77 = vector.shape_cast %76 : vector<1x16x16x8xf32> to vector<16x16x8xf32>
    %78 = vector.shape_cast %75 : vector<16x16x8xf32> to vector<1x16x16x8xf32>
    tpu.vector_store %arg3[%c1_60, %c0_61, %c0_62, %c0_63], %78 {strides = array<i32>} : memref<2x16x16x8xf32, #tpu.memory_space<vmem>>, vector<1x16x16x8xf32>,
    return
  }
  func.func @transform_0(%arg0: i32, %arg1: memref<9xf32, #tpu.memory_space<smem>>) -> (i32, i32, i32, i32) {
    %c0_i32 = arith.constant 0 : i32
    %c0_i32_0 = arith.constant 0 : i32
    %c0_i32_1 = arith.constant 0 : i32
    %c0_i32_2 = arith.constant 0 : i32
    return %c0_i32, %c0_i32_0, %c0_i32_1, %arg0 : i32, i32, i32, i32
  }
  func.func @transform_1(%arg0: i32, %arg1: memref<9xf32, #tpu.memory_space<smem>>) -> (i32, i32, i32, i32) {
    %c0_i32 = arith.constant 0 : i32
    %c0_i32_0 = arith.constant 0 : i32
    %c0_i32_1 = arith.constant 0 : i32
    %c0_i32_2 = arith.constant 0 : i32
    return %c0_i32, %c0_i32_0, %c0_i32_1, %arg0 : i32, i32, i32, i32
  }
}

</mosaic_0001>

<bundles_post_ra>
// kernel: tpu_custom_call.1
= control target key start
LH: loop header
LB: loop body
LE: loop exit
PB: predicated region body
PF: predicated region fallthrough
CT: control target
= control target key end

     0   :  { %s4498_s0 = inlined_call_operand.vmem [shape: f32[9], index: 0, kind: input, shape index: {}]   ;;  %s4499_s1 = inlined_call_operand.vmem [shape: f32[2,16,16,8], index: 1, kind: input, shape index: {}]   ;;  %s4500_s2 = inlined_call_operand.vmem [shape: f32[2,16,16,8], index: 2, kind: output, shape index: {}]  }
   0x1   :  { %s7_s11 = sshll.u32 %s4498_s0, 4  ;;  %s8_s11 = int_to_ptr.vmem [resolvable:$true] %s7_s11 }
   0x2   :  { %s2004_s12 = scalar_lea.vmem %s8_s11, 16  ;;  %p2009_p1 = scmp.lt.s32.totalorder %s8_s11, %s8_s11 }
   0x3   :  { %p2005_p0 = scmp.ne.s32.totalorder %s8_s11, %s2004_s12  ;;  %p2010_p2 = scmp.lt.s32.totalorder %s2004_s12, %s2004_s12 }
   0x5   :  { %p2011_p3 = por %p2010_p2, %p2009_p1 }
   0x7   :  { %p2012_p4 = pnand %p2011_p3, %p2005_p0 }
   0x9   :  { %2015 = shalt.err (!%p2012_p4)  }
   0xa   :  { %s2018_s13 = smov [#allocation4]  }
   0xb   :  { %10 = dma.vmem_to_smem %s8_s11, 16, %s2018_s13, [#allocation3] }
   0xc   :  { %2016 = dma.done.wait [#allocation3], 16 }
   0xd   :  { %2017 = vsyncadd [#allocation3], 4294967280 }
   0xe   :  { %12 = sfence }
   0xf   :  { %v15_v0 = vld [vmem:[%s4499_s1] sm:$0xff]  ;;  %v16_v2 = vld [vmem:[%s4499_s1 + $0x8] sm:$0xff]  ;;  %v17_v7 = vld [vmem:[%s4499_s1 + $0x10] sm:$0xff]  ;;  %vm177_vm0 = vcmask 64512   ;;  %s2069_s5 = sld [smem:[#allocation4 + $0x1]]  ;;  %s2084_s12 = sld [smem:[#allocation4]] }
  0x10   :  { %v1720_v1 = vld [vmem:[%s4499_s1 + $0x100] sm:$0xff]  ;;  %v80_v3 = vmul.f32 %v15_v0, %v15_v0  ;;  %v1721_v5 = vld [vmem:[%s4499_s1 + $0x108] sm:$0xff]  ;;  %v81_v6 = vmul.f32 %v16_v2, %v16_v2  ;;  %v1722_v9 = vld [vmem:[%s4499_s1 + $0x110] sm:$0xff]  ;;  %v82_v10 = vmul.f32 %v17_v7, %v17_v7  ;;  %s2097_s18 = sld [smem:[#allocation4 + $0x4]]  ;;  %s2114_s25 = sld [smem:[#allocation4 + $0x2]]  ;;  %vm233_vm1 = vcmask 57344  }
  0x11   :  { %v112_v4 = vmul.f32 %v1720_v1, %v1720_v1  ;;  %v113_v8 = vmul.f32 %v1721_v5, %v1721_v5  ;;  %v18_v11 = vld [vmem:[%s4499_s1 + $0x18] sm:$0xff]  ;;  %v114_v13 = vmul.f32 %v1722_v9, %v1722_v9  ;;  %v19_v16 = vld [vmem:[%s4499_s1 + $0x20] sm:$0xff]  ;;  %v20_v22 = vld [vmem:[%s4499_s1 + $0x28] sm:$0xff]  ;;  %s2128_s30 = sld [smem:[#allocation4 + $0x3]]  ;;  %s2897_s3 = sld [smem:[#allocation4 + $0x6]] }
  0x12   :  { %v1723_v14 = vld [vmem:[%s4499_s1 + $0x118] sm:$0xff]  ;;  %v83_v15 = vmul.f32 %v18_v11, %v18_v11  ;;  %v1724_v17 = vld [vmem:[%s4499_s1 + $0x120] sm:$0xff]  ;;  %v84_v20 = vmul.f32 %v19_v16, %v19_v16  ;;  %v1725_v23 = vld [vmem:[%s4499_s1 + $0x128] sm:$0xff]  ;;  %v85_v26 = vmul.f32 %v20_v22, %v20_v22  ;;  %s2941_s4 = sld [smem:[#allocation4 + $0x7]]  ;;  %s2951_s6 = sld [smem:[#allocation4 + $0x8]] }
  0x13   :  { %v2058_v12 = vadd.f32 %v112_v4, %v80_v3  ;;  %v2071_v18 = vadd.f32 %v113_v8, %v81_v6  ;;  %v115_v19 = vmul.f32 %v1723_v14, %v1723_v14  ;;  %v116_v21 = vmul.f32 %v1724_v17, %v1724_v17  ;;  %v21_v24 = vld [vmem:[%s4499_s1 + $0x30] sm:$0xff]  ;;  %v22_v30 = vld [vmem:[%s4499_s1 + $0x38] sm:$0xff]  ;;  %v23_v35 = vld [vmem:[%s4499_s1 + $0x40] sm:$0xff] }
  0x14   :  { %v2086_v25 = vadd.f32 %v114_v13, %v82_v10  ;;  %v117_v27 = vmul.f32 %v1725_v23, %v1725_v23  ;;  %v1726_v28 = vld [vmem:[%s4499_s1 + $0x130] sm:$0xff]  ;;  %v86_v29 = vmul.f32 %v21_v24, %v21_v24  ;;  %v1727_v31 = vld [vmem:[%s4499_s1 + $0x138] sm:$0xff]  ;;  %v1728_v36 = vld [vmem:[%s4499_s1 + $0x140] sm:$0xff]  ;;  %v87_v39 = vmul.f32 %v22_v30, %v22_v30 }
  0x15   :  { %4578 = vst [vmem:[#allocation6_spill] sm:$0xff] %v2058_v12  ;;  %4579 = vst [vmem:[#allocation7_spill] sm:$0xff] %v2071_v18  ;;  %v2101_v32 = vadd.f32 %v115_v19, %v83_v15  ;;  %v2103_v33 = vadd.f32 %v116_v21, %v84_v20  ;;  %v118_v34 = vmul.f32 %v1726_v28, %v1726_v28  ;;  %v24_v37 = vld [vmem:[%s4499_s1 + $0x48] sm:$0xff]  ;;  %v25_v41 = vld [vmem:[%s4499_s1 + $0x50] sm:$0xff]  ;;  %v2168_v63 = vstv %s2069_s5 }
  0x16   :  { %178 = vst.msk [vmem:[#allocation2 + $0x19] sm:$0xff] %vm177_vm0, %v2058_v12  ;;  %4580 = vst [vmem:[#allocation8_spill] sm:$0xff] %v2086_v25  ;;  %v2120_v38 = vadd.f32 %v117_v27, %v85_v26  ;;  %v1729_v40 = vld [vmem:[%s4499_s1 + $0x148] sm:$0xff]  ;;  %v119_v43 = vmul.f32 %v1727_v31, %v1727_v31  ;;  %v1730_v44 = vld [vmem:[%s4499_s1 + $0x150] sm:$0xff]  ;;  %v88_v46 = vmul.f32 %v23_v35, %v23_v35  ;;  %v2171_v1 = vstv %s2084_s12 }
  0x17   :  { %179 = vst.msk [vmem:[#allocation2 + $0x21] sm:$0xff] %vm177_vm0, %v2071_v18  ;;  %4581 = vst [vmem:[#allocation9_spill] sm:$0xff] %v2101_v32  ;;  %v2136_v42 = vadd.f32 %v118_v34, %v86_v29  ;;  %v26_v45 = vld [vmem:[%s4499_s1 + $0x58] sm:$0xff]  ;;  %v120_v47 = vmul.f32 %v1728_v36, %v1728_v36  ;;  %v89_v48 = vmul.f32 %v24_v37, %v24_v37  ;;  %v27_v51 = vld [vmem:[%s4499_s1 + $0x60] sm:$0xff]  ;;  %v2183_v6 = vstv %s2097_s18 }
  0x18   :  { %4582 = vst [vmem:[#allocation10_spill] sm:$0xff] %v2103_v33  ;;  %180 = vst.msk [vmem:[#allocation2 + $0x31] sm:$0xff] %vm177_vm0, %v2086_v25  ;;  %v121_v49 = vmul.f32 %v1729_v40, %v1729_v40  ;;  %v1731_v50 = vld [vmem:[%s4499_s1 + $0x158] sm:$0xff]  ;;  %v1732_v52 = vld [vmem:[%s4499_s1 + $0x160] sm:$0xff]  ;;  %v2157_v53 = vadd.f32 %v119_v43, %v87_v39  ;;  %v90_v54 = vmul.f32 %v25_v41, %v25_v41  ;;  %v2194_v10 = vstv %s2114_s25 }
  0x19   :  { %210 = vst.msk [vmem:[#allocation2 + $0x1] sm:$0xff] %vm177_vm0, %v2086_v25  ;;  %4583 = vst [vmem:[#allocation11_spill] sm:$0xff] %v2120_v38  ;;  %v122_v55 = vmul.f32 %v1730_v44, %v1730_v44  ;;  %v91_v56 = vmul.f32 %v26_v45, %v26_v45  ;;  %v2159_v57 = vadd.f32 %v120_v47, %v88_v46  ;;  %v28_v4 = vld [vmem:[%s4499_s1 + $0x68] sm:$0xff]  ;;  %v29_v8 = vld [vmem:[%s4499_s1 + $0x70] sm:$0xff]  ;;  %v2203_v17 = vstv %s2128_s30  ;;  %s2895_s30 = sld [smem:[#allocation4 + $0x5]] }
  0x1a   :  { %181 = vst.msk [vmem:[#allocation2 + $0x39] sm:$0xff] %vm177_vm0, %v2101_v32  ;;  %211 = vst.msk [vmem:[#allocation2 + $0x9] sm:$0xff] %vm177_vm0, %v2101_v32  ;;  %v2161_v58 = vadd.f32 %v121_v49, %v89_v48  ;;  %v123_v59 = vmul.f32 %v1731_v50, %v1731_v50  ;;  %v92_v60 = vmul.f32 %v27_v51, %v27_v51  ;;  %v1733_v7 = vld [vmem:[%s4499_s1 + $0x168] sm:$0xff]  ;;  %v42_v25 = vld [vmem:[%s4499_s1 + $0xd8] sm:$0xff] }
  0x1b   :  { %182 = vst.msk [vmem:[#allocation2 + $0x49] sm:$0xff] %vm177_vm0, %v2103_v33  ;;  %4584 = vst [vmem:[#allocation12_spill] sm:$0xff] %v2136_v42  ;;  %v2165_v61 = vadd.f32 %v122_v55, %v90_v54  ;;  %v124_v62 = vmul.f32 %v1732_v52, %v1732_v52  ;;  %v93_v26 = vmul.f32 %v28_v4, %v28_v4 }
  0x1c   :  { %183 = vst.msk [vmem:[#allocation2 + $0x51] sm:$0xff] %vm177_vm0, %v2120_v38  ;;  %184 = vst.msk [vmem:[#allocation2 + $0x61] sm:$0xff] %vm177_vm0, %v2136_v42  ;;  %v2177_v3 = vadd.f32 %v123_v59, %v91_v56  ;;  %v125_v27 = vmul.f32 %v1733_v7, %v1733_v7  ;;  %v94_v34 = vmul.f32 %v29_v8, %v29_v8 }
  0x1d   :  { %4585 = vst [vmem:[#allocation13_spill] sm:$0xff] %v2157_v53  ;;  %4586 = vst [vmem:[#allocation14_spill] sm:$0xff] %v2159_v57  ;;  %v357_v5 = vld [vmem:[#allocation2 + $0x19] sm:$0xff]  ;;  %v2198_v14 = vadd.f32 %v124_v62, %v92_v60 }
  0x1e   :  { %4587 = vst [vmem:[#allocation15_spill] sm:$0xff] %v2161_v58  ;;  %185 = vst.msk [vmem:[#allocation2 + $0x69] sm:$0xff] %vm177_vm0, %v2157_v53  ;;  %v292_v0 = vld [vmem:[#allocation2 + $0x20] sm:$0xff]  ;;  %v2206_v20 = vmul.f32 %v2168_v63, %v357_v5  ;;  %v2209_v21 = vmul.f32 %v2183_v6, %v357_v5 }
  0x1f   :  { %4588 = vst [vmem:[#allocation16_spill] sm:$0xff] %v2165_v61  ;;  %v358_v2 = vld [vmem:[#allocation2 + $0x21] sm:$0xff]  ;;  %186 = vst.msk [vmem:[#allocation2 + $0x79] sm:$0xff] %vm177_vm0, %v2159_v57  ;;  %v325_v15 = vmul.f32 %v2171_v1, %v292_v0  ;;  %v359_v19 = vld [vmem:[#allocation2 + $0x31] sm:$0xff]  ;;  %v2219_v35 = vmul.f32 %v2203_v17, %v292_v0 }
  0x20   :  { %187 = vst.msk [vmem:[#allocation2 + $0x81] sm:$0xff] %vm177_vm0, %v2161_v58  ;;  %4589 = vst [vmem:[#allocation17_spill] sm:$0xff] %v2177_v3  ;;  %v455_v9 = vld [vmem:[#allocation2 + $0x1a] sm:$0xff]  ;;  %v391_v16 = vmul.f32 %v2168_v63, %v358_v2  ;;  %v2222_v36 = vmul.f32 %v2183_v6, %v358_v2  ;;  %v2225_v37 = vmul.f32 %v2168_v63, %v359_v19  ;;  %v1734_v2 = vld [vmem:[%s4499_s1 + $0x170] sm:$0xff] }
  0x21   :  { %188 = vst.msk [vmem:[#allocation2 + $0x91] sm:$0xff] %vm177_vm0, %v2165_v61  ;;  %v294_v11 = vld [vmem:[#allocation2 + $0x38] sm:$0xff]  ;;  %189 = vst.msk [vmem:[#allocation2 + $0x99] sm:$0xff] %vm177_vm0, %v2177_v3  ;;  %v2214_v28 = vmul.f32 %v2194_v10, %v455_v9  ;;  %v2228_v39 = vmul.f32 %v2183_v6, %v359_v19  ;;  %v1748_v3 = vld [vmem:[%s4499_s1 + $0x1e0] sm:$0xff] }
  0x22   :  { %v360_v13 = vld [vmem:[#allocation2 + $0x39] sm:$0xff]  ;;  %4590 = vst [vmem:[#allocation18_spill] sm:$0xff] %v2198_v14  ;;  %4591 = vst [vmem:[#allocation19_spill] sm:$0xff] %v2203_v17  ;;  %v327_v29 = vmul.f32 %v2171_v1, %v294_v11  ;;  %v361_v31 = vld [vmem:[#allocation2 + $0x49] sm:$0xff]  ;;  %v2230_v44 = vadd.f32 %v391_v16, %v325_v15  ;;  %v2238_v49 = vmul.f32 %v2203_v17, %v294_v11 }
  0x23   :  { %4592 = vst [vmem:[#allocation20_spill] sm:$0xff] %v2209_v21  ;;  %v457_v22 = vld [vmem:[#allocation2 + $0x32] sm:$0xff]  ;;  %190 = vst.msk [vmem:[#allocation2 + $0xa9] sm:$0xff] %vm177_vm0, %v2198_v14  ;;  %v393_v30 = vmul.f32 %v2168_v63, %v360_v13  ;;  %v459_v40 = vld [vmem:[#allocation2 + $0x4a] sm:$0xff]  ;;  %v2241_v50 = vmul.f32 %v2183_v6, %v360_v13  ;;  %v2248_v56 = vmul.f32 %v2168_v63, %v361_v31 }
  0x24   :  { %v296_v23 = vld [vmem:[#allocation2 + $0x50] sm:$0xff]  ;;  %4593 = vst [vmem:[#allocation21_spill] sm:$0xff] %v2214_v28  ;;  %4594 = vst [vmem:[#allocation22_spill] sm:$0xff] %v2222_v36  ;;  %v2233_v45 = vmul.f32 %v2194_v10, %v457_v22  ;;  %v363_v48 = vld [vmem:[#allocation2 + $0x61] sm:$0xff]  ;;  %v2251_v59 = vmul.f32 %v2183_v6, %v361_v31  ;;  %v2254_v60 = vmul.f32 %v2194_v10, %v459_v40 }
  0x25   :  { %v362_v24 = vld [vmem:[#allocation2 + $0x51] sm:$0xff]  ;;  %4595 = vst [vmem:[#allocation23_spill] sm:$0xff] %v2228_v39  ;;  %v298_v41 = vld [vmem:[#allocation2 + $0x68] sm:$0xff]  ;;  %v329_v46 = vmul.f32 %v2171_v1, %v296_v23  ;;  %4597 = vst [vmem:[#allocation25_spill] sm:$0xff] %v2238_v49  ;;  %v2245_v55 = vadd.f32 %v393_v30, %v327_v29  ;;  %v2262_v4 = vmul.f32 %v2203_v17, %v296_v23 }
  0x26   :  { %v364_v43 = vld [vmem:[#allocation2 + $0x69] sm:$0xff]  ;;  %4596 = vst [vmem:[#allocation24_spill] sm:$0xff] %v2233_v45  ;;  %v395_v47 = vmul.f32 %v2168_v63, %v362_v24  ;;  %4598 = vst [vmem:[#allocation26_spill] sm:$0xff] %v2241_v50  ;;  %v331_v51 = vmul.f32 %v2171_v1, %v298_v41  ;;  %v365_v62 = vld [vmem:[#allocation2 + $0x79] sm:$0xff]  ;;  %v2265_v5 = vmul.f32 %v2183_v6, %v362_v24 }
  0x27   :  { %v397_v52 = vmul.f32 %v2168_v63, %v364_v43  ;;  %v461_v54 = vld [vmem:[#allocation2 + $0x62] sm:$0xff]  ;;  %4599 = vst [vmem:[#allocation27_spill] sm:$0xff] %v2251_v59  ;;  %4600 = vst [vmem:[#allocation28_spill] sm:$0xff] %v2254_v60  ;;  %v2268_v7 = vmul.f32 %v2168_v63, %v363_v48  ;;  %v2271_v8 = vmul.f32 %v2183_v6, %v363_v48  ;;  %v30_v11 = vld [vmem:[%s4499_s1 + $0x78] sm:$0xff] }
  0x28   :  { %v2256_v0 = vld [vmem:[#allocation2 + $0x80] sm:$0xff]  ;;  %4601 = vst [vmem:[#allocation29_spill] sm:$0xff] %v2262_v4  ;;  %4602 = vst [vmem:[#allocation30_spill] sm:$0xff] %v2265_v5  ;;  %v1735_v13 = vld [vmem:[%s4499_s1 + $0x178] sm:$0xff]  ;;  %v2281_v15 = vadd.f32 %v395_v47, %v329_v46  ;;  %v2284_v16 = vmul.f32 %v2194_v10, %v461_v54  ;;  %v2287_v19 = vmul.f32 %v2203_v17, %v298_v41 }
  0x29   :  { %4603 = vst [vmem:[#allocation31_spill] sm:$0xff] %v2271_v8  ;;  %v2273_v9 = vld [vmem:[#allocation2 + $0x81] sm:$0xff]  ;;  %v2290_v22 = vmul.f32 %v2183_v6, %v364_v43  ;;  %v2301_v30 = vadd.f32 %v397_v52, %v331_v51  ;;  %v2304_v31 = vmul.f32 %v2168_v63, %v365_v62  ;;  %v2307_v40 = vmul.f32 %v2183_v6, %v365_v62  ;;  %v33_v46 = vld [vmem:[%s4499_s1 + $0x90] sm:$0xff]  ;;  %v34_v62 = vld [vmem:[%s4499_s1 + $0x98] sm:$0xff] }
  0x2a   :  { %4604 = vst [vmem:[#allocation32_spill] sm:$0xff] %v2284_v16  ;;  %4605 = vst [vmem:[#allocation33_spill] sm:$0xff] %v2287_v19  ;;  %v31_v23 = vld [vmem:[%s4499_s1 + $0x80] sm:$0xff]  ;;  %v32_v29 = vld [vmem:[%s4499_s1 + $0x88] sm:$0xff]  ;;  %v2311_v41 = vmul.f32 %v2171_v1, %v2256_v0  ;;  %v2324_v48 = vmul.f32 %v2168_v63, %v2273_v9  ;;  %v2326_v51 = vadd.f32 %v125_v27, %v93_v26 }
  0x2b   :  { %4606 = vst [vmem:[#allocation34_spill] sm:$0xff] %v2290_v22  ;;  %v1736_v24 = vld [vmem:[%s4499_s1 + $0x180] sm:$0xff]  ;;  %4607 = vst [vmem:[#allocation35_spill] sm:$0xff] %v2307_v40  ;;  %v1737_v43 = vld [vmem:[%s4499_s1 + $0x188] sm:$0xff]  ;;  %v126_v52 = vmul.f32 %v1734_v2, %v1734_v2  ;;  %v95_v54 = vmul.f32 %v30_v11, %v30_v11  ;;  %v127_v61 = vmul.f32 %v1735_v13, %v1735_v13 }
  0x2c   :  { %v1738_v47 = vld [vmem:[%s4499_s1 + $0x190] sm:$0xff]  ;;  %4608 = vst [vmem:[#allocation36_spill] sm:$0xff] %v2326_v51  ;;  %v1739_v14 = vld [vmem:[%s4499_s1 + $0x198] sm:$0xff]  ;;  %v96_v40 = vmul.f32 %v31_v23, %v31_v23  ;;  %v128_v57 = vmul.f32 %v1736_v24, %v1736_v24  ;;  %v97_v42 = vmul.f32 %v32_v29, %v32_v29  ;;  %v35_v16 = vld [vmem:[%s4499_s1 + $0xa0] sm:$0xff]  ;;  %v129_v11 = vmul.f32 %v1737_v43, %v1737_v43 }
  0x2d   :  { %v1740_v26 = vld [vmem:[%s4499_s1 + $0x1a0] sm:$0xff]  ;;  %v36_v27 = vld [vmem:[%s4499_s1 + $0xa8] sm:$0xff]  ;;  %191 = vst.msk [vmem:[#allocation2 + $0xb1] sm:$0xff] %vm177_vm0, %v2326_v51  ;;  %v2345_v2 = vadd.f32 %v126_v52, %v94_v34  ;;  %v98_v13 = vmul.f32 %v33_v46, %v33_v46  ;;  %v130_v23 = vmul.f32 %v1738_v47, %v1738_v47  ;;  %v37_v29 = vld [vmem:[%s4499_s1 + $0xb0] sm:$0xff]  ;;  %v2356_v60 = vadd.f32 %v127_v61, %v95_v54 }
  0x2e   :  { %v1741_v24 = vld [vmem:[%s4499_s1 + $0x1a8] sm:$0xff]  ;;  %v1742_v8 = vld [vmem:[%s4499_s1 + $0x1b0] sm:$0xff]  ;;  %v2358_v33 = vadd.f32 %v128_v57, %v96_v40  ;;  %v99_v34 = vmul.f32 %v34_v62, %v34_v62  ;;  %v131_v43 = vmul.f32 %v1739_v14, %v1739_v14  ;;  %v38_v46 = vld [vmem:[%s4499_s1 + $0xb8] sm:$0xff]  ;;  %v2371_v61 = vadd.f32 %v129_v11, %v97_v42 }
  0x2f   :  { %4609 = vst [vmem:[#allocation37_spill] sm:$0xff] %v2345_v2  ;;  %4610 = vst [vmem:[#allocation38_spill] sm:$0xff] %v2356_v60  ;;  %v1743_v47 = vld [vmem:[%s4499_s1 + $0x1b8] sm:$0xff]  ;;  %v39_v52 = vld [vmem:[%s4499_s1 + $0xc0] sm:$0xff]  ;;  %v2373_v57 = vadd.f32 %v130_v23, %v98_v13  ;;  %v100_v14 = vmul.f32 %v35_v16, %v35_v16  ;;  %v132_v40 = vmul.f32 %v1740_v26, %v1740_v26 }
  0x30   :  { %4611 = vst [vmem:[#allocation39_spill] sm:$0xff] %v2358_v33  ;;  %192 = vst.msk [vmem:[#allocation2 + $0xc1] sm:$0xff] %vm177_vm0, %v2345_v2  ;;  %v1744_v54 = vld [vmem:[%s4499_s1 + $0x1c0] sm:$0xff]  ;;  %v40_v62 = vld [vmem:[%s4499_s1 + $0xc8] sm:$0xff]  ;;  %v2390_v42 = vadd.f32 %v131_v43, %v99_v34  ;;  %v101_v16 = vmul.f32 %v36_v27, %v36_v27  ;;  %v133_v26 = vmul.f32 %v1741_v24, %v1741_v24 }
  0x31   :  { %4612 = vst [vmem:[#allocation40_spill] sm:$0xff] %v2371_v61  ;;  %4613 = vst [vmem:[#allocation41_spill] sm:$0xff] %v2373_v57  ;;  %v1745_v59 = vld [vmem:[%s4499_s1 + $0x1c8] sm:$0xff]  ;;  %v463_v45 = vld [vmem:[#allocation2 + $0x7a] sm:$0xff]  ;;  %v102_v11 = vmul.f32 %v37_v29, %v37_v29  ;;  %v2407_v27 = vadd.f32 %v132_v40, %v100_v14  ;;  %v134_v24 = vmul.f32 %v1742_v8, %v1742_v8 }
  0x32   :  { %v2384_v2 = vld [vmem:[#allocation2 + $0x98] sm:$0xff]  ;;  %193 = vst.msk [vmem:[#allocation2 + $0xc9] sm:$0xff] %vm177_vm0, %v2356_v60  ;;  %194 = vst.msk [vmem:[#allocation2 + $0xd9] sm:$0xff] %vm177_vm0, %v2358_v33  ;;  %v41_v13 = vld [vmem:[%s4499_s1 + $0xd0] sm:$0xff]  ;;  %v103_v29 = vmul.f32 %v38_v46, %v38_v46  ;;  %v135_v34 = vmul.f32 %v1743_v47, %v1743_v47  ;;  %v2414_v12 = vadd.f32 %v133_v26, %v101_v16 }
  0x33   :  { %4614 = vst [vmem:[#allocation42_spill] sm:$0xff] %v2390_v42  ;;  %v1746_v23 = vld [vmem:[%s4499_s1 + $0x1d0] sm:$0xff]  ;;  %v2401_v39 = vld [vmem:[#allocation2 + $0x99] sm:$0xff]  ;;  %195 = vst.msk [vmem:[#allocation2 + $0xe1] sm:$0xff] %vm177_vm0, %v2371_v61  ;;  %v104_v61 = vmul.f32 %v39_v52, %v39_v52  ;;  %v136_v60 = vmul.f32 %v1744_v54, %v1744_v54  ;;  %v2420_v14 = vadd.f32 %v134_v24, %v102_v11 }
  0x34   :  { %196 = vst.msk [vmem:[#allocation2 + $0xf1] sm:$0xff] %vm177_vm0, %v2373_v57  ;;  %4615 = vst [vmem:[#allocation43_spill] sm:$0xff] %v2407_v27  ;;  %v1747_v43 = vld [vmem:[%s4499_s1 + $0x1d8] sm:$0xff]  ;;  %v215_v33 = vld [vmem:[#allocation2 + $0x2] sm:$0x1]  ;;  %v105_v57 = vmul.f32 %v40_v62, %v40_v62  ;;  %v2422_v40 = vadd.f32 %v135_v34, %v103_v29  ;;  %v106_v16 = vmul.f32 %v41_v13, %v41_v13 }
  0x35   :  { %v216_v28 = vld [vmem:[#allocation2 + $0x1a] sm:$0x1]  ;;  %v367_v21 = vld [vmem:[#allocation2 + $0x91] sm:$0xff]  ;;  %197 = vst.msk [vmem:[#allocation2 + $0xf9] sm:$0xff] %vm177_vm0, %v2390_v42  ;;  %4616 = vst [vmem:[#allocation44_spill] sm:$0xff] %v2414_v12  ;;  %v137_v42 = vmul.f32 %v1745_v59, %v1745_v59  ;;  %v2429_v11 = vadd.f32 %v136_v60, %v104_v61  ;;  %v138_v24 = vmul.f32 %v1746_v23, %v1746_v23 }
  0x36   :  { %234 = vst.msk [vmem:[#allocation2] sm:$0x1] %vm233_vm1, %v215_v33  ;;  %235 = vst.msk [vmem:[#allocation2 + $0x18] sm:$0x1] %vm233_vm1, %v216_v28  ;;  %v217_v8 = vld [vmem:[#allocation2 + $0x32] sm:$0x1]  ;;  %v107_v59 = vmul.f32 %v42_v25, %v42_v25  ;;  %v139_v13 = vmul.f32 %v1747_v43, %v1747_v43  ;;  %v2435_v29 = vmul.f32 %v2194_v10, %v463_v45 }
  0x37   :  { %v218_v46 = vld [vmem:[#allocation2 + $0x4a] sm:$0x1]  ;;  %v219_v47 = vld [vmem:[#allocation2 + $0x62] sm:$0x1]  ;;  %198 = vst.msk [vmem:[#allocation2 + $0x109] sm:$0xff] %vm177_vm0, %v2407_v27  ;;  %4617 = vst [vmem:[#allocation45_spill] sm:$0xff] %v2420_v14  ;;  %v2439_v34 = vmul.f32 %v2203_v17, %v2256_v0  ;;  %v2443_v60 = vmul.f32 %v2183_v6, %v2273_v9  ;;  %v335_v25 = vmul.f32 %v2171_v1, %v2384_v2 }
  0x38   :  { %4618 = vst [vmem:[#allocation46_spill] sm:$0xff] %v2422_v40  ;;  %236 = vst.msk [vmem:[#allocation2 + $0x30] sm:$0x1] %vm233_vm1, %v217_v8  ;;  %v220_v33 = vld [vmem:[#allocation2 + $0x7a] sm:$0x1]  ;;  %v465_v54 = vld [vmem:[#allocation2 + $0x92] sm:$0xff]  ;;  %v401_v0 = vmul.f32 %v2168_v63, %v2401_v39  ;;  %v2455_v9 = vadd.f32 %v137_v42, %v105_v57  ;;  %v2457_v8 = vadd.f32 %v138_v24, %v106_v16 }
  0x39   :  { %237 = vst.msk [vmem:[#allocation2 + $0x48] sm:$0x1] %vm233_vm1, %v218_v46  ;;  %238 = vst.msk [vmem:[#allocation2 + $0x60] sm:$0x1] %vm233_vm1, %v219_v47  ;;  %v221_v28 = vld [vmem:[#allocation2 + $0x92] sm:$0x1]  ;;  %v2459_v46 = vadd.f32 %v139_v13, %v107_v59  ;;  %v2476_v13 = vadd.f32 %v2324_v48, %v2311_v41 }
  0x3a   :  { %v222_v52 = vld [vmem:[#allocation2 + $0xaa] sm:$0x1]  ;;  %v304_v62 = vld [vmem:[#allocation2 + $0xb0] sm:$0xff]  ;;  %199 = vst.msk [vmem:[#allocation2 + $0x111] sm:$0xff] %vm177_vm0, %v2414_v12  ;;  %4619 = vst [vmem:[#allocation47_spill] sm:$0xff] %v2429_v11 }
  0x3b   :  { %v370_v26 = vld [vmem:[#allocation2 + $0xb1] sm:$0xff]  ;;  %239 = vst.msk [vmem:[#allocation2 + $0x78] sm:$0x1] %vm233_vm1, %v220_v33  ;;  %240 = vst.msk [vmem:[#allocation2 + $0x90] sm:$0x1] %vm233_vm1, %v221_v28  ;;  %v369_v43 = vld [vmem:[#allocation2 + $0xa9] sm:$0xff]  ;;  %v2465_v28 = vmul.f32 %v2168_v63, %v367_v21  ;;  %v337_v57 = vmul.f32 %v2171_v1, %v304_v62  ;;  %v2512_v27 = vmul.f32 %v2203_v17, %v304_v62 }
  0x3c   :  { %241 = vst.msk [vmem:[#allocation2 + $0xa8] sm:$0x1] %vm233_vm1, %v222_v52  ;;  %4620 = vst [vmem:[#allocation48_spill] sm:$0xff] %v2435_v29  ;;  %v252_v61 = vld [vmem:[#allocation2 + $0xf] sm:$0x1]  ;;  %v2468_v52 = vmul.f32 %v2183_v6, %v367_v21  ;;  %v403_v42 = vmul.f32 %v2168_v63, %v370_v26  ;;  %v2483_v21 = vmul.f32 %v2203_v17, %v2384_v2  ;;  %v43_v41 = vld [vmem:[%s4499_s1 + $0xe0] sm:$0xff] }
  0x3d   :  { %4621 = vst [vmem:[#allocation49_spill] sm:$0xff] %v2439_v34  ;;  %4622 = vst [vmem:[#allocation50_spill] sm:$0xff] %v2443_v60  ;;  %v253_v45 = vld [vmem:[#allocation2 + $0x27] sm:$0x1]  ;;  %v254_v23 = vld [vmem:[#allocation2 + $0x3f] sm:$0x1]  ;;  %v2499_v48 = vmul.f32 %v2168_v63, %v369_v43 }
  0x3e   :  { %200 = vst.msk [vmem:[#allocation2 + $0x121] sm:$0xff] %vm177_vm0, %v2420_v14  ;;  %201 = vst.msk [vmem:[#allocation2 + $0x129] sm:$0xff] %vm177_vm0, %v2422_v40  ;;  %v223_v47 = vld [vmem:[#allocation2 + $0xc2] sm:$0x1]  ;;  %v255_v33 = vld [vmem:[#allocation2 + $0x57] sm:$0x1] }
  0x3f   :  { %202 = vst.msk [vmem:[#allocation2 + $0x139] sm:$0xff] %vm177_vm0, %v2429_v11  ;;  %4623 = vst [vmem:[#allocation51_spill] sm:$0xff] %v2455_v9  ;;  %v467_v16 = vld [vmem:[#allocation2 + $0xaa] sm:$0xff]  ;;  %v2506_v11 = vadd.f32 %v401_v0, %v335_v25  ;;  %v471_v25 = vld [vmem:[#allocation2 + $0xda] sm:$0xff] }
  0x40   :  { %4624 = vst [vmem:[#allocation52_spill] sm:$0xff] %v2457_v8  ;;  %4625 = vst [vmem:[#allocation53_spill] sm:$0xff] %v2459_v46  ;;  %v306_v24 = vld [vmem:[#allocation2 + $0xc8] sm:$0xff]  ;;  %v2509_v14 = vmul.f32 %v2194_v10, %v467_v16  ;;  %v310_v0 = vld [vmem:[#allocation2 + $0xf8] sm:$0xff]  ;;  %v2525_v16 = vmul.f32 %v43_v41, %v43_v41  ;;  %v2551_v40 = vmul.f32 %v2194_v10, %v471_v25 }
  0x41   :  { %270 = vst.msk [vmem:[#allocation2 + $0x11] sm:$0x1] %vm233_vm1, %v252_v61  ;;  %271 = vst.msk [vmem:[#allocation2 + $0x29] sm:$0x1] %vm233_vm1, %v253_v45  ;;  %v372_v59 = vld [vmem:[#allocation2 + $0xc9] sm:$0xff]  ;;  %v2479_v61 = vmul.f32 %v2194_v10, %v465_v54  ;;  %v2487_v45 = vmul.f32 %v2183_v6, %v2401_v39  ;;  %v2502_v39 = vmul.f32 %v2183_v6, %v369_v43  ;;  %v373_v43 = vld [vmem:[#allocation2 + $0xd9] sm:$0xff] }
  0x42   :  { %272 = vst.msk [vmem:[#allocation2 + $0x41] sm:$0x1] %vm233_vm1, %v254_v23  ;;  %4626 = vst [vmem:[#allocation54_spill] sm:$0xff] %v2468_v52  ;;  %v371_v23 = vld [vmem:[#allocation2 + $0xc1] sm:$0xff]  ;;  %v339_v2 = vmul.f32 %v2171_v1, %v306_v24  ;;  %v405_v54 = vmul.f32 %v2168_v63, %v372_v59  ;;  %v2543_v41 = vmul.f32 %v2168_v63, %v373_v43  ;;  %v46_v60 = vld [vmem:[%s4499_s1 + $0xf8] sm:$0xff] }
  0x43   :  { %242 = vst.msk [vmem:[#allocation2 + $0xc0] sm:$0x1] %vm233_vm1, %v223_v47  ;;  %273 = vst.msk [vmem:[#allocation2 + $0x59] sm:$0x1] %vm233_vm1, %v255_v33  ;;  %v469_v47 = vld [vmem:[#allocation2 + $0xc2] sm:$0xff]  ;;  %v2520_v52 = vmul.f32 %v2168_v63, %v371_v23  ;;  %v2523_v29 = vmul.f32 %v2183_v6, %v371_v23  ;;  %v2653_v49 = vld [vmem:[#allocation2 + $0x30] sm:$0xff] }
  0x44   :  { %4627 = vst [vmem:[#allocation55_spill] sm:$0xff] %v2479_v61  ;;  %4628 = vst [vmem:[#allocation56_spill] sm:$0xff] %v2483_v21  ;;  %v308_v33 = vld [vmem:[#allocation2 + $0xe0] sm:$0xff]  ;;  %v2515_v61 = vmul.f32 %v2183_v6, %v370_v26  ;;  %v2528_v62 = vmul.f32 %v2194_v10, %v469_v47  ;;  %v2531_v26 = vmul.f32 %v2203_v17, %v306_v24  ;;  %v473_v24 = vld [vmem:[#allocation2 + $0xf2] sm:$0xff] }
  0x45   :  { %4629 = vst [vmem:[#allocation57_spill] sm:$0xff] %v2487_v45  ;;  %203 = vst.msk [vmem:[#allocation2 + $0x141] sm:$0xff] %vm177_vm0, %v2455_v9  ;;  %v2535_v9 = vld [vmem:[#allocation2 + $0x128] sm:$0xff]  ;;  %v2537_v23 = vadd.f32 %v405_v54, %v339_v2  ;;  %v2546_v47 = vmul.f32 %v2183_v6, %v373_v43  ;;  %v2554_v12 = vmul.f32 %v2203_v17, %v308_v33  ;;  %v45_v21 = vld [vmem:[%s4499_s1 + $0xf0] sm:$0xff] }
  0x46   :  { %204 = vst.msk [vmem:[#allocation2 + $0x151] sm:$0xff] %vm177_vm0, %v2457_v8  ;;  %205 = vst.msk [vmem:[#allocation2 + $0x159] sm:$0xff] %vm177_vm0, %v2459_v46  ;;  %v374_v8 = vld [vmem:[#allocation2 + $0xe1] sm:$0xff]  ;;  %v376_v46 = vld [vmem:[#allocation2 + $0xf9] sm:$0xff]  ;;  %v343_v2 = vmul.f32 %v2171_v1, %v310_v0  ;;  %v347_v25 = vmul.f32 %v2171_v1, %v2535_v9  ;;  %v2576_v51 = vmul.f32 %v2194_v10, %v473_v24 }
  0x47   :  { %4630 = vst [vmem:[#allocation58_spill] sm:$0xff] %v2502_v39  ;;  %4631 = vst [vmem:[#allocation59_spill] sm:$0xff] %v2506_v11  ;;  %v2517_v39 = vadd.f32 %v403_v42, %v337_v57  ;;  %v341_v57 = vmul.f32 %v2171_v1, %v308_v33  ;;  %v407_v42 = vmul.f32 %v2168_v63, %v374_v8  ;;  %v377_v54 = vld [vmem:[#allocation2 + $0x109] sm:$0xff]  ;;  %v225_v34 = vld [vmem:[#allocation2 + $0xf2] sm:$0x1] }
  0x48   :  { %4632 = vst [vmem:[#allocation60_spill] sm:$0xff] %v2509_v14  ;;  %4633 = vst [vmem:[#allocation61_spill] sm:$0xff] %v2512_v27  ;;  %v375_v14 = vld [vmem:[#allocation2 + $0xf1] sm:$0xff]  ;;  %v2598_v24 = vmul.f32 %v2168_v63, %v377_v54  ;;  %v477_v53 = vld [vmem:[#allocation2 + $0x122] sm:$0xff] }
  0x49   :  { %4634 = vst [vmem:[#allocation62_spill] sm:$0xff] %v2515_v61  ;;  %4635 = vst [vmem:[#allocation63_spill] sm:$0xff] %v2517_v39  ;;  %v2562_v43 = vmul.f32 %v2168_v63, %v375_v14  ;;  %v475_v61 = vld [vmem:[#allocation2 + $0x10a] sm:$0xff]  ;;  %v228_v4 = vld [vmem:[#allocation2 + $0x13a] sm:$0x1] }
  0x4a   :  { %4636 = vst [vmem:[#allocation64_spill] sm:$0xff] %v2523_v29  ;;  %4637 = vst [vmem:[#allocation65_spill] sm:$0xff] %v2528_v62  ;;  %v2540_v29 = vmul.f32 %v2183_v6, %v372_v59  ;;  %v2548_v62 = vld [vmem:[#allocation2 + $0x129] sm:$0xff]  ;;  %v409_v59 = vmul.f32 %v2168_v63, %v376_v46  ;;  %v381_v32 = vld [vmem:[#allocation2 + $0x139] sm:$0xff] }
  0x4b   :  { %4638 = vst [vmem:[#allocation66_spill] sm:$0xff] %v2531_v26  ;;  %4639 = vst [vmem:[#allocation67_spill] sm:$0xff] %v2537_v23  ;;  %v312_v26 = vld [vmem:[#allocation2 + $0x110] sm:$0xff]  ;;  %v226_v38 = vld [vmem:[#allocation2 + $0x10a] sm:$0x1] }
  0x4c   :  { %4640 = vst [vmem:[#allocation68_spill] sm:$0xff] %v2540_v29  ;;  %4641 = vst [vmem:[#allocation69_spill] sm:$0xff] %v2546_v47  ;;  %v2559_v29 = vmul.f32 %v2183_v6, %v374_v8  ;;  %v2565_v47 = vmul.f32 %v2183_v6, %v375_v14  ;;  %v2569_v33 = vld [vmem:[#allocation2 + $0x140] sm:$0xff]  ;;  %v2579_v8 = vmul.f32 %v2203_v17, %v310_v0  ;;  %v1749_v0 = vld [vmem:[%s4499_s1 + $0x1e8] sm:$0xff] }
  0x4d   :  { %4642 = vst [vmem:[#allocation70_spill] sm:$0xff] %v2551_v40  ;;  %4643 = vst [vmem:[#allocation71_spill] sm:$0xff] %v2554_v12  ;;  %v2571_v40 = vld [vmem:[#allocation2 + $0x141] sm:$0xff]  ;;  %v2573_v12 = vadd.f32 %v407_v42, %v341_v57  ;;  %v413_v14 = vmul.f32 %v2168_v63, %v2548_v62  ;;  %v2595_v42 = vmul.f32 %v2183_v6, %v376_v46  ;;  %v2605_v45 = vld [vmem:[#allocation2 + $0x159] sm:$0xff] }
  0x4e   :  { %4644 = vst [vmem:[#allocation72_spill] sm:$0xff] %v2559_v29  ;;  %4645 = vst [vmem:[#allocation73_spill] sm:$0xff] %v2565_v47  ;;  %v378_v29 = vld [vmem:[#allocation2 + $0x111] sm:$0xff]  ;;  %v44_v57 = vld [vmem:[%s4499_s1 + $0xe8] sm:$0xff]  ;;  %v349_v27 = vmul.f32 %v2171_v1, %v2569_v33  ;;  %v2610_v58 = vadd.f32 %v409_v59, %v343_v2  ;;  %v345_v46 = vmul.f32 %v2171_v1, %v312_v26 }
  0x4f   :  { %4646 = vst [vmem:[#allocation74_spill] sm:$0xff] %v2573_v12  ;;  %4647 = vst [vmem:[#allocation75_spill] sm:$0xff] %v2576_v51  ;;  %v2583_v47 = vld [vmem:[#allocation2 + $0x158] sm:$0xff]  ;;  %v2601_v51 = vmul.f32 %v2183_v6, %v377_v54  ;;  %v415_v54 = vmul.f32 %v2168_v63, %v2571_v40  ;;  %v411_v59 = vmul.f32 %v2168_v63, %v378_v29  ;;  %v2655_v18 = vld [vmem:[#allocation2 + $0x48] sm:$0xff] }
  0x50   :  { %4648 = vst [vmem:[#allocation76_spill] sm:$0xff] %v2579_v8  ;;  %4649 = vst [vmem:[#allocation77_spill] sm:$0xff] %v2595_v42  ;;  %v379_v8 = vld [vmem:[#allocation2 + $0x121] sm:$0xff]  ;;  %v2613_v42 = vadd.f32 %v413_v14, %v347_v25  ;;  %v1751_v2 = vld [vmem:[%s4499_s1 + $0x1f8] sm:$0xff]  ;;  %v2628_v25 = vmul.f32 %v2194_v10, %v475_v61  ;;  %v2631_v14 = vmul.f32 %v2203_v17, %v312_v26 }
  0x51   :  { %4650 = vst [vmem:[#allocation78_spill] sm:$0xff] %v2601_v51  ;;  %4651 = vst [vmem:[#allocation79_spill] sm:$0xff] %v2610_v58  ;;  %v1750_v51 = vld [vmem:[%s4499_s1 + $0x1f0] sm:$0xff]  ;;  %v351_v58 = vmul.f32 %v2171_v1, %v2583_v47  ;;  %v224_v12 = vld [vmem:[#allocation2 + $0xda] sm:$0x1]  ;;  %v2636_v22 = vmul.f32 %v2183_v6, %v378_v29  ;;  %v2639_v19 = vmul.f32 %v2168_v63, %v379_v8 }
  0x52   :  { %4652 = vst [vmem:[#allocation80_spill] sm:$0xff] %v2628_v25  ;;  %4653 = vst [vmem:[#allocation81_spill] sm:$0xff] %v2631_v14  ;;  %v2641_v5 = vadd.f32 %v415_v54, %v349_v27  ;;  %v417_v61 = vmul.f32 %v2168_v63, %v2605_v45  ;;  %v355_v26 = vld [vmem:[#allocation2 + $0x1] sm:$0xff]  ;;  %v229_v29 = vld [vmem:[#allocation2 + $0x152] sm:$0x1]  ;;  %v140_v27 = vmul.f32 %v1748_v3, %v1748_v3 }
  0x53   :  { %4654 = vst [vmem:[#allocation82_spill] sm:$0xff] %v2636_v22  ;;  %v289_v25 = vld [vmem:[#allocation2] sm:$0xff]  ;;  %243 = vst.msk [vmem:[#allocation2 + $0xd8] sm:$0x1] %vm233_vm1, %v224_v12  ;;  %v2649_v22 = vmul.f32 %v2183_v6, %v379_v8  ;;  %v109_v54 = vmul.f32 %v44_v57, %v44_v57  ;;  %v141_v50 = vmul.f32 %v1749_v0, %v1749_v0  ;;  %v2651_v23 = vld [vmem:[#allocation2 + $0x18] sm:$0xff] }
  0x54   :  { %244 = vst.msk [vmem:[#allocation2 + $0xf0] sm:$0x1] %vm233_vm1, %v225_v34  ;;  %245 = vst.msk [vmem:[#allocation2 + $0x108] sm:$0x1] %vm233_vm1, %v226_v38  ;;  %v227_v14 = vld [vmem:[#allocation2 + $0x122] sm:$0x1]  ;;  %v2660_v38 = vadd.f32 %v417_v61, %v351_v58  ;;  %v110_v34 = vmul.f32 %v45_v21, %v45_v21  ;;  %v142_v8 = vmul.f32 %v1750_v51, %v1750_v51 }
  0x55   :  { %4655 = vst [vmem:[#allocation83_spill] sm:$0xff] %v2649_v22  ;;  %246 = vst.msk [vmem:[#allocation2 + $0x120] sm:$0x1] %vm233_vm1, %v227_v14  ;;  %v479_v12 = vld [vmem:[#allocation2 + $0x13a] sm:$0xff]  ;;  %v111_v3 = vmul.f32 %v46_v60, %v46_v60  ;;  %v256_v0 = vld [vmem:[#allocation2 + $0x6f] sm:$0x1]  ;;  %v2664_v36 = vadd.f32 %v411_v59, %v345_v46  ;;  %v2667_v39 = vadd.f32 %v140_v27, %v2525_v16 }
  0x56   :  { %247 = vst.msk [vmem:[#allocation2 + $0x138] sm:$0x1] %vm233_vm1, %v228_v4  ;;  %248 = vst.msk [vmem:[#allocation2 + $0x150] sm:$0x1] %vm233_vm1, %v229_v29  ;;  %v2662_v57 = vld [vmem:[#allocation2 + $0x60] sm:$0xff]  ;;  %v2669_v14 = vadd.f32 %v141_v50, %v109_v54  ;;  %v143_v4 = vmul.f32 %v1751_v2, %v1751_v2  ;;  %v2671_v11 = vld [vmem:[#allocation2 + $0x78] sm:$0xff]  ;;  %v2676_v21 = vmul.f32 %v2194_v10, %v477_v53 }
  0x57   :  { %v257_v22 = vld [vmem:[#allocation2 + $0x87] sm:$0x1]  ;;  %4656 = vst [vmem:[#allocation84_spill] sm:$0xff] %v2667_v39  ;;  %274 = vst.msk [vmem:[#allocation2 + $0x71] sm:$0x1] %vm233_vm1, %v256_v0  ;;  %v2680_v46 = vmul.f32 %v2203_v17, %v2535_v9  ;;  %v2684_v50 = vmul.f32 %v2183_v6, %v2548_v62  ;;  %v2686_v16 = vadd.f32 %v142_v8, %v110_v34  ;;  %v2720_v0 = vld [vmem:[#allocation2 + $0x90] sm:$0xff] }
  0x58   :  { %4657 = vst [vmem:[#allocation85_spill] sm:$0xff] %v2669_v14  ;;  %275 = vst.msk [vmem:[#allocation2 + $0x89] sm:$0x1] %vm233_vm1, %v257_v22  ;;  %v258_v58 = vld [vmem:[#allocation2 + $0x9f] sm:$0x1]  ;;  %v2699_v9 = vadd.f32 %v143_v4, %v111_v3  ;;  %v388_v62 = vmul.f32 %v2168_v63, %v355_v26  ;;  %v322_v59 = vmul.f32 %v2171_v1, %v289_v25  ;;  %v290_v25 = vld [vmem:[#allocation2 + $0x8] sm:$0xff] }
  0x59   :  { %v259_v51 = vld [vmem:[#allocation2 + $0xb7] sm:$0x1]  ;;  %v260_v60 = vld [vmem:[#allocation2 + $0xcf] sm:$0x1]  ;;  %4658 = vst [vmem:[#allocation86_spill] sm:$0xff] %v2676_v21  ;;  %4659 = vst [vmem:[#allocation87_spill] sm:$0xff] %v2686_v16  ;;  %v324_v61 = vmul.f32 %v2171_v1, %v2651_v23  ;;  %v2709_v34 = vmul.f32 %v2168_v63, %v381_v32  ;;  %v2712_v8 = vmul.f32 %v2183_v6, %v381_v32 }
  0x5a   :  { %276 = vst.msk [vmem:[#allocation2 + $0xa1] sm:$0x1] %vm233_vm1, %v258_v58  ;;  %277 = vst.msk [vmem:[#allocation2 + $0xb9] sm:$0x1] %vm233_vm1, %v259_v51  ;;  %v261_v22 = vld [vmem:[#allocation2 + $0xe7] sm:$0x1]  ;;  %v326_v26 = vmul.f32 %v2171_v1, %v2653_v49  ;;  %v328_v3 = vmul.f32 %v2171_v1, %v2655_v18  ;;  %v2726_v32 = vmul.f32 %v2194_v10, %v479_v12 }
  0x5b   :  { %278 = vst.msk [vmem:[#allocation2 + $0xd1] sm:$0x1] %vm233_vm1, %v260_v60  ;;  %v262_v2 = vld [vmem:[#allocation2 + $0xff] sm:$0x1]  ;;  %v263_v53 = vld [vmem:[#allocation2 + $0x117] sm:$0x1]  ;;  %v2730_v58 = vadd.f32 %v388_v62, %v322_v59  ;;  %v2733_v51 = vadd.f32 %v2206_v20, %v324_v61  ;;  %v330_v60 = vmul.f32 %v2171_v1, %v2662_v57  ;;  %v332_v20 = vmul.f32 %v2171_v1, %v2671_v11 }
  0x5c   :  { %206 = vst.msk [vmem:[#allocation2 + $0x169] sm:$0xff] %vm177_vm0, %v2667_v39  ;;  %213 = vst.msk [vmem:[#allocation2 + $0x199] sm:$0xff] %vm177_vm0, %v2667_v39  ;;  %v264_v29 = vld [vmem:[#allocation2 + $0x12f] sm:$0x1]  ;;  %v265_v27 = vld [vmem:[#allocation2 + $0x147] sm:$0x1]  ;;  %v2747_v62 = vadd.f32 %v2248_v56, %v328_v3  ;;  %v2753_v61 = vmul.f32 %v2183_v6, %v2571_v40 }
  0x5d   :  { %207 = vst.msk [vmem:[#allocation2 + $0x171] sm:$0xff] %vm177_vm0, %v2669_v14  ;;  %214 = vst.msk [vmem:[#allocation2 + $0x1a1] sm:$0xff] %vm177_vm0, %v2669_v14  ;;  %v266_v54 = vld [vmem:[#allocation2 + $0x15f] sm:$0x1]  ;;  %v356_v4 = vld [vmem:[#allocation2 + $0x9] sm:$0xff]  ;;  %v2763_v3 = vadd.f32 %v2304_v31, %v332_v20 }
  0x5e   :  { %4660 = vst [vmem:[#allocation88_spill] sm:$0xff] %v2699_v9  ;;  %279 = vst.msk [vmem:[#allocation2 + $0xe9] sm:$0x1] %vm233_vm1, %v261_v22  ;;  %v303_v22 = vld [vmem:[#allocation2 + $0xa8] sm:$0xff]  ;;  %v383_v12 = vld [vmem:[#allocation2 + $0x151] sm:$0xff]  ;;  %v389_v56 = vmul.f32 %v2168_v63, %v356_v4 }
  0x5f   :  { %280 = vst.msk [vmem:[#allocation2 + $0x101] sm:$0x1] %vm233_vm1, %v262_v2  ;;  %281 = vst.msk [vmem:[#allocation2 + $0x119] sm:$0x1] %vm233_vm1, %v263_v53  ;;  %v2737_v2 = vld [vmem:[#allocation2 + $0xc0] sm:$0xff]  ;;  %v2741_v53 = vmul.f32 %v2203_v17, %v2569_v33  ;;  %v307_v59 = vld [vmem:[#allocation2 + $0xd8] sm:$0xff]  ;;  %v2757_v33 = vadd.f32 %v2268_v7, %v330_v60  ;;  %v416_v39 = vmul.f32 %v2168_v63, %v383_v12 }
  0x60   :  { %4661 = vst [vmem:[#allocation89_spill] sm:$0xff] %v2712_v8  ;;  %208 = vst.msk [vmem:[#allocation2 + $0x181] sm:$0xff] %vm177_vm0, %v2686_v16  ;;  %v336_v16 = vmul.f32 %v2171_v1, %v303_v22  ;;  %v338_v40 = vmul.f32 %v2171_v1, %v2737_v2  ;;  %v453_v7 = vld [vmem:[#allocation2 + $0x2] sm:$0xff] }
  0x61   :  { %282 = vst.msk [vmem:[#allocation2 + $0x131] sm:$0x1] %vm233_vm1, %v264_v29  ;;  %283 = vst.msk [vmem:[#allocation2 + $0x149] sm:$0x1] %vm233_vm1, %v265_v27  ;;  %v2744_v29 = vadd.f32 %v2225_v37, %v326_v26  ;;  %v481_v27 = vld [vmem:[#allocation2 + $0x152] sm:$0xff]  ;;  %v334_v37 = vmul.f32 %v2171_v1, %v2720_v0 }
  0x62   :  { %284 = vst.msk [vmem:[#allocation2 + $0x161] sm:$0x1] %vm233_vm1, %v266_v54  ;;  %4662 = vst [vmem:[#allocation90_spill] sm:$0xff] %v2726_v32  ;;  %v323_v54 = vmul.f32 %v2171_v1, %v290_v25  ;;  %v309_v26 = vld [vmem:[#allocation2 + $0xf0] sm:$0xff]  ;;  %v2770_v25 = vmul.f32 %v2183_v6, %v383_v12  ;;  %v340_v32 = vmul.f32 %v2171_v1, %v307_v59 }
  0x63   :  { %209 = vst.msk [vmem:[#allocation2 + $0x189] sm:$0xff] %vm177_vm0, %v2699_v9  ;;  %4663 = vst [vmem:[#allocation91_spill] sm:$0xff] %v2730_v58  ;;  %v2773_v60 = vadd.f32 %v2465_v28, %v334_v37  ;;  %v2777_v4 = vmul.f32 %v2194_v10, %v481_v27  ;;  %v2784_v8 = vadd.f32 %v2499_v48, %v336_v16  ;;  %v2802_v16 = vld [vmem:[#allocation2 + $0x108] sm:$0xff]  ;;  %v4709_v58 = vld [vmem:[#allocation30_spill] sm:$0xff] }
  0x64   :  { %4664 = vst [vmem:[#allocation92_spill] sm:$0xff] %v2733_v51  ;;  %4665 = vst [vmem:[#allocation93_spill] sm:$0xff] %v2744_v29  ;;  %v2779_v31 = vld [vmem:[#allocation2 + $0x170] sm:$0xff]  ;;  %v2787_v21 = vadd.f32 %v2520_v52, %v338_v40  ;;  %v342_v12 = vmul.f32 %v2171_v1, %v309_v26  ;;  %v2792_v28 = vmul.f32 %v2203_v17, %v2583_v47  ;;  %v313_v52 = vld [vmem:[#allocation2 + $0x120] sm:$0xff]  ;;  %v3023_v29 = vstv %s2951_s6 }
  0x65   :  { %4666 = vst [vmem:[#allocation94_spill] sm:$0xff] %v2747_v62  ;;  %4667 = vst [vmem:[#allocation95_spill] sm:$0xff] %v2757_v33  ;;  %v2781_v20 = vld [vmem:[#allocation2 + $0x171] sm:$0xff]  ;;  %v2796_v27 = vmul.f32 %v2183_v6, %v2605_v45  ;;  %v353_v37 = vmul.f32 %v2171_v1, %v2779_v31  ;;  %v230_v40 = vld [vmem:[#allocation2 + $0x16a] sm:$0x1]  ;;  %v2811_v47 = vmul.f32 %v2203_v17, %v2651_v23 }
  0x66   :  { %4668 = vst [vmem:[#allocation96_spill] sm:$0xff] %v2763_v3  ;;  %4669 = vst [vmem:[#allocation97_spill] sm:$0xff] %v2770_v25  ;;  %v419_v48 = vmul.f32 %v2168_v63, %v2781_v20  ;;  %v2807_v25 = vmul.f32 %v2194_v10, %v453_v7  ;;  %v2815_v45 = vmul.f32 %v2203_v17, %v2653_v49  ;;  %v454_v49 = vld [vmem:[#allocation2 + $0xa] sm:$0xff] }
  0x67   :  { %4670 = vst [vmem:[#allocation98_spill] sm:$0xff] %v2773_v60  ;;  %4671 = vst [vmem:[#allocation99_spill] sm:$0xff] %v2777_v4  ;;  %v2804_v4 = vadd.f32 %v389_v56, %v323_v54  ;;  %v2822_v54 = vmul.f32 %v2203_v17, %v2655_v18  ;;  %v2826_v56 = vmul.f32 %v2203_v17, %v2662_v57  ;;  %v231_v7 = vld [vmem:[#allocation2 + $0x182] sm:$0x1] }
  0x68   :  { %4672 = vst [vmem:[#allocation100_spill] sm:$0xff] %v2784_v8  ;;  %4673 = vst [vmem:[#allocation101_spill] sm:$0xff] %v2787_v21  ;;  %v315_v21 = vld [vmem:[#allocation2 + $0x138] sm:$0xff]  ;;  %v317_v8 = vld [vmem:[#allocation2 + $0x150] sm:$0xff]  ;;  %v2818_v60 = vadd.f32 %v419_v48, %v353_v37  ;;  %v2829_v23 = vadd.f32 %v2543_v41, %v340_v32  ;;  %v2833_v3 = vmul.f32 %v2203_v17, %v2671_v11 }
  0x69   :  { %4674 = vst [vmem:[#allocation102_spill] sm:$0xff] %v2807_v25  ;;  %4675 = vst [vmem:[#allocation103_spill] sm:$0xff] %v2811_v47  ;;  %v2836_v37 = vadd.f32 %v2562_v43, %v342_v12  ;;  %v344_v18 = vmul.f32 %v2171_v1, %v2802_v16  ;;  %v346_v48 = vmul.f32 %v2171_v1, %v313_v52  ;;  %v2842_v57 = vld [vmem:[#allocation2 + $0x22] sm:$0xff]  ;;  %v2844_v41 = vld [vmem:[#allocation2 + $0x3a] sm:$0xff] }
  0x6a   :  { %4676 = vst [vmem:[#allocation104_spill] sm:$0xff] %v2815_v45  ;;  %249 = vst.msk [vmem:[#allocation2 + $0x168] sm:$0x1] %vm233_vm1, %v230_v40  ;;  %v2846_v32 = vld [vmem:[#allocation2 + $0x52] sm:$0xff]  ;;  %v385_v40 = vld [vmem:[#allocation2 + $0x169] sm:$0xff]  ;;  %v2850_v11 = vmul.f32 %v2203_v17, %v2720_v0  ;;  %v2853_v43 = vmul.f32 %v2203_v17, %v303_v22  ;;  %v348_v12 = vmul.f32 %v2171_v1, %v315_v21 }
  0x6b   :  { %4677 = vst [vmem:[#allocation105_spill] sm:$0xff] %v2822_v54  ;;  %4678 = vst [vmem:[#allocation106_spill] sm:$0xff] %v2826_v56  ;;  %v350_v52 = vmul.f32 %v2171_v1, %v317_v8  ;;  %v2862_v33 = vmul.f32 %v2203_v17, %v307_v59  ;;  %v2865_v0 = vadd.f32 %v2598_v24, %v344_v18  ;;  %v232_v21 = vld [vmem:[#allocation2 + $0x19a] sm:$0x1]  ;;  %v269_v8 = vld [vmem:[#allocation2 + $0x1a7] sm:$0x1] }
  0x6c   :  { %4679 = vst [vmem:[#allocation107_spill] sm:$0xff] %v2829_v23  ;;  %4680 = vst [vmem:[#allocation108_spill] sm:$0xff] %v2833_v3  ;;  %v483_v23 = vld [vmem:[#allocation2 + $0x16a] sm:$0xff]  ;;  %v2859_v3 = vmul.f32 %v2203_v17, %v2737_v2  ;;  %v2868_v22 = vadd.f32 %v2639_v19, %v346_v48  ;;  %v2876_v2 = vadd.f32 %v2709_v34, %v348_v12  ;;  %v2883_v19 = vld [vmem:[#allocation2 + $0x82] sm:$0xff] }
  0x6d   :  { %4681 = vst [vmem:[#allocation109_spill] sm:$0xff] %v2836_v37  ;;  %250 = vst.msk [vmem:[#allocation2 + $0x180] sm:$0x1] %vm233_vm1, %v231_v7  ;;  %v267_v37 = vld [vmem:[#allocation2 + $0x177] sm:$0x1]  ;;  %v2878_v59 = vadd.f32 %v416_v39, %v350_v52  ;;  %v487_v24 = vmul.f32 %v2194_v10, %v454_v49  ;;  %v2881_v18 = vld [vmem:[#allocation2 + $0x6a] sm:$0xff]  ;;  %v489_v39 = vmul.f32 %v2194_v10, %v2842_v57 }
  0x6e   :  { %4682 = vst [vmem:[#allocation110_spill] sm:$0xff] %v2850_v11  ;;  %4683 = vst [vmem:[#allocation111_spill] sm:$0xff] %v2853_v43  ;;  %v268_v7 = vld [vmem:[#allocation2 + $0x18f] sm:$0x1]  ;;  %v679_v43 = vld [vmem:[#allocation2 + $0x181] sm:$0xff]  ;;  %v2873_v11 = vmul.f32 %v2203_v17, %v309_v26  ;;  %v2889_v26 = vmul.f32 %v2183_v6, %v385_v40  ;;  %v491_v49 = vmul.f32 %v2194_v10, %v2844_v41 }
  0x6f   :  { %4684 = vst [vmem:[#allocation112_spill] sm:$0xff] %v2859_v3  ;;  %4685 = vst [vmem:[#allocation113_spill] sm:$0xff] %v2862_v33  ;;  %v582_v48 = vld [vmem:[#allocation2 + $0x188] sm:$0xff]  ;;  %v2900_v12 = vmul.f32 %v2194_v10, %v483_v23  ;;  %v847_v33 = vld [vmem:[#allocation2 + $0x38] sm:$0xff]  ;;  %v2995_v3 = vstv %s2897_s3  ;;  %v1076_v47 = vmul.f32 %v3023_v29, %v2844_v41 }
  0x70   :  { %4686 = vst [vmem:[#allocation114_spill] sm:$0xff] %v2865_v0  ;;  %4687 = vst [vmem:[#allocation115_spill] sm:$0xff] %v2868_v22  ;;  %v680_v34 = vld [vmem:[#allocation2 + $0x189] sm:$0xff]  ;;  %v521_v0 = vadd.f32 %v489_v39, %v2230_v44  ;;  %v4700_v56 = vld [vmem:[#allocation59_spill] sm:$0xff] }
  0x71   :  { %285 = vst.msk [vmem:[#allocation2 + $0x179] sm:$0x1] %vm233_vm1, %v267_v37  ;;  %286 = vst.msk [vmem:[#allocation2 + $0x191] sm:$0x1] %vm233_vm1, %v268_v7  ;;  %v418_v37 = vmul.f32 %v2168_v63, %v385_v40  ;;  %v2904_v63 = vmul.f32 %v2203_v17, %v2779_v31  ;;  %v2908_v40 = vmul.f32 %v2183_v6, %v2781_v20  ;;  %v319_v52 = vld [vmem:[#allocation2 + $0x168] sm:$0xff]  ;;  %v4706_v45 = vld [vmem:[#allocation26_spill] sm:$0xff] }
  0x72   :  { %4688 = vst [vmem:[#allocation116_spill] sm:$0xff] %v2873_v11  ;;  %4689 = vst [vmem:[#allocation117_spill] sm:$0xff] %v2876_v2  ;;  %v493_v7 = vmul.f32 %v2194_v10, %v2846_v32  ;;  %v352_v23 = vmul.f32 %v2171_v1, %v319_v52  ;;  %v497_v31 = vmul.f32 %v2194_v10, %v2883_v19  ;;  %v2924_v20 = vld [vmem:[#allocation2 + $0x12a] sm:$0xff]  ;;  %v2992_v11 = vstv %s2895_s30 }
  0x73   :  { %4690 = vst [vmem:[#allocation118_spill] sm:$0xff] %v2878_v59  ;;  %251 = vst.msk [vmem:[#allocation2 + $0x198] sm:$0x1] %vm233_vm1, %v232_v21  ;;  %v2912_v21 = vld [vmem:[#allocation2 + $0x9a] sm:$0xff]  ;;  %v2926_v59 = vld [vmem:[#allocation2 + $0x142] sm:$0xff]  ;;  %v2929_v2 = vmul.f32 %v2203_v17, %v582_v48  ;;  %v2936_v1 = vmul.f32 %v2203_v17, %v2802_v16  ;;  %v519_v52 = vadd.f32 %v487_v24, %v2804_v4 }
  0x74   :  { %287 = vst.msk [vmem:[#allocation2 + $0x1a9] sm:$0x1] %vm233_vm1, %v269_v8  ;;  %4691 = vst [vmem:[#allocation119_spill] sm:$0xff] %v2889_v26  ;;  %v2915_v8 = vmul.f32 %v2183_v6, %v679_v43  ;;  %v2922_v26 = vld [vmem:[#allocation2 + $0xb2] sm:$0xff]  ;;  %v2932_v43 = vmul.f32 %v2183_v6, %v680_v34  ;;  %v2943_v22 = vadd.f32 %v418_v37, %v352_v23  ;;  %v2949_v34 = vld [vmem:[#allocation2 + $0xca] sm:$0xff] }
  0x75   :  { %4692 = vst [vmem:[#allocation120_spill] sm:$0xff] %v2900_v12  ;;  %4693 = vst [vmem:[#allocation121_spill] sm:$0xff] %v2908_v40  ;;  %v495_v12 = vmul.f32 %v2194_v10, %v2881_v18  ;;  %v523_v48 = vadd.f32 %v491_v49, %v2245_v55  ;;  %v499_v6 = vmul.f32 %v2194_v10, %v2912_v21  ;;  %v2974_v23 = vld [vmem:[#allocation2 + $0xe2] sm:$0xff]  ;;  %v4705_v17 = vld [vmem:[#allocation67_spill] sm:$0xff] }
  0x76   :  { %4694 = vst [vmem:[#allocation122_spill] sm:$0xff] %v2915_v8  ;;  %4695 = vst [vmem:[#allocation123_spill] sm:$0xff] %v2929_v2  ;;  %v2939_v8 = vld [vmem:[#allocation2 + $0x15a] sm:$0xff]  ;;  %v525_v16 = vadd.f32 %v493_v7, %v2281_v15  ;;  %v501_v4 = vmul.f32 %v2194_v10, %v2922_v26  ;;  %v511_v24 = vmul.f32 %v2194_v10, %v2924_v20  ;;  %v851_v25 = vld [vmem:[#allocation2 + $0x68] sm:$0xff] }
  0x77   :  { %4696 = vst [vmem:[#allocation124_spill] sm:$0xff] %v2932_v43  ;;  %4697 = vst [vmem:[#allocation125_spill] sm:$0xff] %v2936_v1  ;;  %v513_v44 = vmul.f32 %v2194_v10, %v2926_v59  ;;  %v2963_v37 = vadd.f32 %v495_v12, %v2301_v30  ;;  %v2966_v39 = vadd.f32 %v497_v31, %v2476_v13  ;;  %v949_v43 = vld [vmem:[#allocation2 + $0x69] sm:$0xff]  ;;  %v853_v2 = vld [vmem:[#allocation2 + $0x80] sm:$0xff] }
  0x78   :  { %4698 = vst [vmem:[#allocation126_spill] sm:$0xff] %v2943_v22  ;;  %v2960_v55 = vld [vmem:[#allocation2 + $0x172] sm:$0xff]  ;;  %v515_v15 = vmul.f32 %v2194_v10, %v2939_v8  ;;  %v503_v7 = vmul.f32 %v2194_v10, %v2949_v34  ;;  %v2976_v22 = vld [vmem:[#allocation2 + $0xfa] sm:$0xff]  ;;  %v2979_v1 = vadd.f32 %v511_v24, %v2613_v42  ;;  %v617_v13 = vadd.f32 %v2219_v35, %v519_v52 }
  0x79   :  { %v517_v49 = vmul.f32 %v2194_v10, %v2960_v55  ;;  %v2982_v30 = vadd.f32 %v513_v44, %v2641_v5  ;;  %v2998_v42 = vadd.f32 %v499_v6, %v4700_v56  ;;  %v4701_v24 = vld [vmem:[#allocation63_spill] sm:$0xff]  ;;  %v4702_v35 = vld [vmem:[#allocation22_spill] sm:$0xff]  ;;  %v505_v44 = vmul.f32 %v2194_v10, %v2974_v23  ;;  %v4704_v56 = vld [vmem:[#allocation25_spill] sm:$0xff] }
  0x7a   :  { %v2986_v12 = vadd.f32 %v515_v15, %v2660_v38  ;;  %v3001_v5 = vadd.f32 %v501_v4, %v4701_v24  ;;  %v715_v52 = vadd.f32 %v4702_v35, %v617_v13  ;;  %v781_v38 = vmul.f32 %v2992_v11, %v2842_v57  ;;  %v3015_v4 = vld [vmem:[#allocation2 + $0x112] sm:$0xff] }
  0x7b   :  { %v2989_v31 = vadd.f32 %v517_v49, %v2818_v60  ;;  %v945_v60 = vld [vmem:[#allocation2 + $0x39] sm:$0xff]  ;;  %v507_v15 = vmul.f32 %v2194_v10, %v2976_v22  ;;  %v619_v6 = vadd.f32 %v4704_v56, %v521_v0  ;;  %v3013_v62 = vadd.f32 %v503_v7, %v4705_v17  ;;  %v849_v35 = vld [vmem:[#allocation2 + $0x50] sm:$0xff] }
  0x7c   :  { %v4703_v49 = vld [vmem:[#allocation7_spill] sm:$0xff]  ;;  %v813_v13 = vadd.f32 %v781_v38, %v715_v52  ;;  %v880_v24 = vmul.f32 %v2995_v3, %v847_v33  ;;  %v3019_v57 = vstv %s2941_s4  ;;  %v783_v0 = vmul.f32 %v2992_v11, %v2844_v41  ;;  %v4707_v52 = vld [vmem:[#allocation9_spill] sm:$0xff] }
  0x7d   :  { %4699 = vst [vmem:[#allocation127_spill] sm:$0xff] %v2989_v31  ;;  %vm1396_vm2 = vcmp.gt.f32.partialorder %v4703_v49, 0.0  ;;  %v978_v54 = vmul.f32 %v3019_v57, %v945_v60  ;;  %v717_v51 = vadd.f32 %v4706_v45, %v619_v6  ;;  %v947_v7 = vld [vmem:[#allocation2 + $0x51] sm:$0xff]  ;;  %vm1398_vm3 = vcmp.gt.f32.partialorder %v4707_v52, 0.0  ;;  %v4708_v33 = vld [vmem:[#allocation29_spill] sm:$0xff] }
  0x7e   :  { %v912_v56 = vadd.f32 %v880_v24, %v813_v13  ;;  %v1428_v17 = vsel %vm1396_vm2, %v4703_v49, 1.0  ;;  %v621_v38 = vadd.f32 %v4708_v33, %v523_v48  ;;  %v509_v60 = vmul.f32 %v2194_v10, %v3015_v4  ;;  %v4710_v41 = vld [vmem:[#allocation33_spill] sm:$0xff] }
  0x7f   :  { %v815_v45 = vadd.f32 %v783_v0, %v717_v51  ;;  %v882_v6 = vmul.f32 %v2995_v3, %v849_v35  ;;  %v1430_v24 = vsel %vm1398_vm3, %v4707_v52, 1.0  ;;  %v785_v48 = vmul.f32 %v2992_v11, %v2846_v32 }
  0x80   :  { %v1010_v13 = vadd.f32 %v978_v54, %v912_v56  ;;  %v719_v9 = vadd.f32 %v4709_v58, %v621_v38  ;;  %1793 = vrsqrt.f32 %v1428_v17  ;;  %v980_v10 = vmul.f32 %v3019_v57, %v947_v7  ;;  %v4711_v58 = vld [vmem:[#allocation34_spill] sm:$0xff] }
  0x81   :  { %v914_v33 = vadd.f32 %v882_v6, %v815_v45  ;;  %v623_v51 = vadd.f32 %v4710_v41, %v525_v16  ;;  %v1078_v54 = vmul.f32 %v3023_v29, %v2846_v32  ;;  %v884_v56 = vmul.f32 %v2995_v3, %v851_v25  ;;  %v951_v25 = vld [vmem:[#allocation2 + $0x81] sm:$0xff] }
  0x82   :  { %v1108_v0 = vadd.f32 %v1076_v47, %v1010_v13  ;;  %v817_v35 = vadd.f32 %v785_v48, %v719_v9  ;;  %1795 = vrsqrt.f32 %v1430_v24  ;;  %v787_v17 = vmul.f32 %v2992_v11, %v2881_v18  ;;  %v4712_v47 = vld [vmem:[#allocation11_spill] sm:$0xff]  ;;  %v4713_v13 = vld [vmem:[#allocation49_spill] sm:$0xff]  ;;  %v4714_v48 = vld [vmem:[#allocation74_spill] sm:$0xff] }
  0x83   :  { %v1012_v31 = vadd.f32 %v980_v10, %v914_v33  ;;  %v721_v38 = vadd.f32 %v4711_v58, %v623_v51  ;;  %v982_v16 = vmul.f32 %v3019_v57, %v949_v43  ;;  %vm1400_vm4 = vcmp.gt.f32.partialorder %v4712_v47, 0.0  ;;  %v4715_v10 = vld [vmem:[#allocation79_spill] sm:$0xff]  ;;  %v4716_v51 = vld [vmem:[#allocation13_spill] sm:$0xff] }
  0x84   :  { %v3052_v45 = vand.u32 2147483647, %v1108_v0  ;;  %v916_v7 = vadd.f32 %v884_v56, %v817_v35  ;;  %v886_v9 = vmul.f32 %v2995_v3, %v853_v2  ;;  %v625_v24 = vadd.f32 %v4713_v13, %v2963_v37 }
  0x85   :  { %v1110_v6 = vadd.f32 %v1078_v54, %v1012_v31  ;;  %v819_v32 = vadd.f32 %v787_v17, %v721_v38  ;;  %v3060_v33 = vadd.f32 %v505_v44, %v4714_v48  ;;  %v3063_v41 = vadd.f32 %v507_v15, %v4715_v10  ;;  %v855_v54 = vld [vmem:[#allocation2 + $0x98] sm:$0xff]  ;;  %v4717_v15 = vld [vmem:[#allocation50_spill] sm:$0xff] }
  0x86   :  { %1797 = vrsqrt.f32 %v3052_v45  ;;  %vm1402_vm5 = vcmp.gt.f32.partialorder %v4716_v51, 0.0  ;;  %v1014_v31 = vadd.f32 %v982_v16, %v916_v7  ;;  %v1080_v2 = vmul.f32 %v3023_v29, %v2881_v18 }
  0x87   :  { %v3067_v43 = vand.u32 2147483647, %v1110_v6  ;;  %v918_v0 = vadd.f32 %v886_v9, %v819_v32  ;;  %v1432_v37 = vsel %vm1400_vm4, %v4712_v47, 1.0  ;;  %v984_v44 = vmul.f32 %v3019_v57, %v951_v25  ;;  %v953_v32 = vld [vmem:[#allocation2 + $0x99] sm:$0xff] }
  0x88   :  { %v723_v35 = vadd.f32 %v4717_v15, %v625_v24  ;;  %v789_v56 = vmul.f32 %v2992_v11, %v2883_v19  ;;  %v3079_v58 = vadd.f32 %v509_v60, %v2664_v36  ;;  %v1082_v18 = vmul.f32 %v3023_v29, %v2883_v19  ;;  %v4718_v36 = vld [vmem:[#allocation15_spill] sm:$0xff]  ;;  %v4719_v60 = vld [vmem:[#allocation56_spill] sm:$0xff] }
  0x89   :  { %1799 = vrsqrt.f32 %v3067_v43  ;;  %v1434_v38 = vsel %vm1402_vm5, %v4716_v51, 1.0  ;;  %v1112_v17 = vadd.f32 %v1080_v2, %v1014_v31  ;;  %v1016_v7 = vadd.f32 %v984_v44, %v918_v0  ;;  %v4720_v2 = vld [vmem:[#allocation57_spill] sm:$0xff]  ;;  %v955_v44 = vld [vmem:[#allocation2 + $0xb1] sm:$0xff] }
  0x8a   :  { %v821_v16 = vadd.f32 %v789_v56, %v723_v35  ;;  %v888_v6 = vmul.f32 %v2995_v3, %v855_v54  ;;  %v1794_v9 = vpop.eup %1793  ;;  %vm1180_vm6 = vcmp.eq.f32.partialorder %v3052_v45, inf  ;;  %1801 = vrsqrt.f32 %v1432_v37  ;;  %v857_v37 = vld [vmem:[#allocation2 + $0xb0] sm:$0xff] }
  0x8b   :  { %vm1404_vm7 = vcmp.gt.f32.partialorder %v4718_v36, 0.0  ;;  %v627_v25 = vadd.f32 %v4719_v60, %v2966_v39  ;;  %v3092_v19 = vand.u32 2147483647, %v1112_v17  ;;  %v1114_v13 = vadd.f32 %v1082_v18, %v1016_v7  ;;  %v4721_v7 = vld [vmem:[#allocation61_spill] sm:$0xff] }
  0x8c   :  { %1803 = vrsqrt.f32 %v1434_v38  ;;  %v920_v24 = vadd.f32 %v888_v6, %v821_v16  ;;  %v1796_v48 = vpop.eup %1795  ;;  %v986_v10 = vmul.f32 %v3019_v57, %v953_v32  ;;  %v1436_v31 = vsel %vm1404_vm7, %v4718_v36, 1.0 }
  0x8d   :  { %v725_v0 = vadd.f32 %v4720_v2, %v627_v25  ;;  %v791_v54 = vmul.f32 %v2992_v11, %v2912_v21  ;;  %vm1182_vm8 = vcmp.eq.f32.partialorder %v3052_v45, 0.0  ;;  %v1183_v39 = vand.u32 2147483648, %v3052_v45  ;;  %v4722_v2 = vld [vmem:[#allocation17_spill] sm:$0xff] }
  0x8e   :  { %vm1194_vm9 = vcmp.eq.f32.partialorder %v3067_v43, inf  ;;  %1805 = vrsqrt.f32 %v3092_v19  ;;  %vm1196_vm10 = vcmp.eq.f32.partialorder %v3067_v43, 0.0  ;;  %v3106_v15 = vand.u32 2147483647, %v1114_v13 }
  0x8f   :  { %v1018_v35 = vadd.f32 %v986_v10, %v920_v24  ;;  %v823_v56 = vadd.f32 %v791_v54, %v725_v0  ;;  %v1084_v38 = vmul.f32 %v3023_v29, %v2912_v21  ;;  %1807 = vrsqrt.f32 %v1436_v31  ;;  %v859_v10 = vld [vmem:[#allocation2 + $0xc8] sm:$0xff]  ;;  %v4723_v0 = vld [vmem:[#allocation62_spill] sm:$0xff] }
  0x90   :  { %v1798_v18 = vpop.eup %1797  ;;  %v890_v17 = vmul.f32 %v2995_v3, %v857_v37  ;;  %v629_v16 = vadd.f32 %v4721_v7, %v2998_v42  ;;  %v1197_v32 = vand.u32 2147483648, %v3067_v43  ;;  %1809 = vrsqrt.f32 %v3106_v15 }
  0x91   :  { %v1179_v6 = vmul.f32 %v1798_v18, %v3052_v45  ;;  %v988_v60 = vmul.f32 %v3019_v57, %v955_v44  ;;  %vm1208_vm11 = vcmp.eq.f32.partialorder %v3092_v19, inf  ;;  %v1211_v25 = vand.u32 2147483648, %v3092_v19 }
  0x92   :  { %v1116_v13 = vadd.f32 %v1084_v38, %v1018_v35  ;;  %v922_v21 = vadd.f32 %v890_v17, %v823_v56  ;;  %v1086_v24 = vmul.f32 %v3023_v29, %v2922_v26  ;;  %vm1210_vm12 = vcmp.eq.f32.partialorder %v3092_v19, 0.0  ;;  %v957_v38 = vld [vmem:[#allocation2 + $0xc9] sm:$0xff] }
  0x93   :  { %v1800_v31 = vpop.eup %1799  ;;  %v1181_v42 = vsel %vm1180_vm6, %v3052_v45, %v1179_v6  ;;  %vm4570_vm13 = vcmp.gt.f32.partialorder %v4722_v2, 0.0  ;;  %v727_v54 = vadd.f32 %v4723_v0, %v629_v16  ;;  %v793_v37 = vmul.f32 %v2992_v11, %v2922_v26 }
  0x94   :  { %v1184_v44 = vsel %vm1182_vm8, %v1183_v39, %v1181_v42  ;;  %v1193_v35 = vmul.f32 %v1800_v31, %v3067_v43  ;;  %v3132_v56 = vand.u32 2147483647, %v1116_v13  ;;  %v1020_v18 = vadd.f32 %v988_v60, %v922_v21  ;;  %v1802_v17 = vpop.eup %1801  ;;  %v1921_v39 = vld [vmem:[%s4499_s1 + $0x8] sm:$0xff] }
  0x95   :  { %v3134_v7 = vmul.f32 %v1794_v9, %v1184_v44  ;;  %vm1222_vm14 = vcmp.eq.f32.partialorder %v3106_v15, inf  ;;  %v825_v6 = vadd.f32 %v793_v37, %v727_v54  ;;  %v892_v16 = vmul.f32 %v2995_v3, %v859_v10  ;;  %v4725_v37 = vld [vmem:[#allocation36_spill] sm:$0xff] }
  0x96   :  { %v1804_v0 = vpop.eup %1803  ;;  %v1195_v26 = vsel %vm1194_vm9, %v3067_v43, %v1193_v35  ;;  %vm1224_vm15 = vcmp.eq.f32.partialorder %v3106_v15, 0.0  ;;  %v1225_v45 = vand.u32 2147483648, %v3106_v15  ;;  %1811 = vrsqrt.f32 %v3132_v56  ;;  %v4726_v35 = vld [vmem:[#allocation66_spill] sm:$0xff] }
  0x97   :  { %4724 = vst [vmem:[#allocation59_spill] sm:$0xff] %v3134_v7  ;;  %v1438_v9 = vsel %vm4570_vm13, %v4722_v2, 1.0  ;;  %v1524_v60 = vmul.f32 %v1921_v39, %v3134_v7  ;;  %v1198_v13 = vsel %vm1196_vm10, %v1197_v32, %v1195_v26  ;;  %v1118_v21 = vadd.f32 %v1086_v24, %v1020_v18 }
  0x98   :  { %v990_v10 = vmul.f32 %v3019_v57, %v957_v38  ;;  %v1806_v31 = vpop.eup %1805  ;;  %v3154_v42 = vmul.f32 %v1796_v48, %v1198_v13  ;;  %v924_v54 = vadd.f32 %v892_v16, %v825_v6  ;;  %vm4568_vm1 = vcmp.gt.f32.partialorder %v4725_v37, 0.0  ;;  %v1922_v48 = vld [vmem:[%s4499_s1 + $0x18] sm:$0xff]  ;;  %v861_v38 = vld [vmem:[#allocation2 + $0xe0] sm:$0xff] }
  0x99   :  { %v631_v14 = vadd.f32 %v4726_v35, %v3001_v5  ;;  %v1556_v40 = vsel %vm1396_vm2, %v1524_v60, %v1184_v44  ;;  %v1207_v39 = vmul.f32 %v1806_v31, %v3092_v19  ;;  %v3162_v7 = vand.u32 2147483647, %v1118_v21  ;;  %v1808_v43 = vpop.eup %1807  ;;  %v4727_v44 = vld [vmem:[#allocation68_spill] sm:$0xff] }
  0x9a   :  { %1813 = vrsqrt.f32 %v1438_v9  ;;  %1588 = vst.msk [vmem:[%s4500_s2 + $0x8] sm:$0xff] %vm177_vm0, %v1556_v40  ;;  %v1526_v5 = vmul.f32 %v1922_v48, %v3154_v42  ;;  %v1022_v32 = vadd.f32 %v990_v10, %v924_v54  ;;  %v1088_v24 = vmul.f32 %v3023_v29, %v2949_v34  ;;  %v1810_v6 = vpop.eup %1809  ;;  %v959_v54 = vld [vmem:[#allocation2 + $0xe1] sm:$0xff] }
  0x9b   :  { %v729_v18 = vadd.f32 %v4727_v44, %v631_v14  ;;  %v1209_v16 = vsel %vm1208_vm11, %v3092_v19, %v1207_v39  ;;  %1815 = vrsqrt.f32 %v3162_v7  ;;  %v1440_v40 = vsel %vm4568_vm1, %v4725_v37, 1.0  ;;  %v4728_v44 = vld [vmem:[#allocation71_spill] sm:$0xff] }
  0x9c   :  { %v795_v26 = vmul.f32 %v2992_v11, %v2949_v34  ;;  %v1558_v9 = vsel %vm1398_vm3, %v1526_v5, %v1198_v13  ;;  %v1212_v14 = vsel %vm1210_vm12, %v1211_v25, %v1209_v16  ;;  %v1221_v60 = vmul.f32 %v1810_v6, %v3106_v15  ;;  %v1923_v13 = vld [vmem:[%s4499_s1 + $0x28] sm:$0xff] }
  0x9d   :  { %vm1236_vm6 = vcmp.eq.f32.partialorder %v3132_v56, inf  ;;  %1590 = vst.msk [vmem:[%s4500_s2 + $0x18] sm:$0xff] %vm177_vm0, %v1558_v9  ;;  %v3194_v21 = vmul.f32 %v1802_v17, %v1212_v14  ;;  %v1120_v10 = vadd.f32 %v1088_v24, %v1022_v32  ;;  %v894_v34 = vmul.f32 %v2995_v3, %v861_v38 }
  0x9e   :  { %v827_v31 = vadd.f32 %v795_v26, %v729_v18  ;;  %v1223_v19 = vsel %vm1222_vm14, %v3106_v15, %v1221_v60  ;;  %vm1238_vm8 = vcmp.eq.f32.partialorder %v3132_v56, 0.0  ;;  %v1239_v25 = vand.u32 2147483648, %v3132_v56  ;;  %v4729_v15 = vld [vmem:[#allocation38_spill] sm:$0xff]  ;;  %v4730_v60 = vld [vmem:[#allocation72_spill] sm:$0xff] }
  0x9f   :  { %1817 = vrsqrt.f32 %v1440_v40  ;;  %v1528_v17 = vmul.f32 %v1923_v13, %v3194_v21  ;;  %v1226_v35 = vsel %vm1224_vm15, %v1225_v45, %v1223_v19  ;;  %v3208_v39 = vand.u32 2147483647, %v1120_v10  ;;  %v863_v40 = vld [vmem:[#allocation2 + $0xf8] sm:$0xff] }
  0xa0   :  { %v926_v48 = vadd.f32 %v894_v34, %v827_v31  ;;  %v1812_v5 = vpop.eup %1811  ;;  %v3210_v32 = vmul.f32 %v1804_v0, %v1226_v35  ;;  %vm1250_vm9 = vcmp.eq.f32.partialorder %v3162_v7, inf  ;;  %v992_v24 = vmul.f32 %v3019_v57, %v959_v54  ;;  %v1924_v0 = vld [vmem:[%s4499_s1 + $0x38] sm:$0xff] }
  0xa1   :  { %v633_v18 = vadd.f32 %v4728_v44, %v3013_v62  ;;  %v1560_v38 = vsel %vm1400_vm4, %v1528_v17, %v1212_v14  ;;  %v1235_v6 = vmul.f32 %v1812_v5, %v3132_v56  ;;  %1819 = vrsqrt.f32 %v3208_v39  ;;  %v961_v17 = vld [vmem:[#allocation2 + $0xf9] sm:$0xff] }
  0xa2   :  { %vm4569_vm10 = vcmp.gt.f32.partialorder %v4729_v15, 0.0  ;;  %1592 = vst.msk [vmem:[%s4500_s2 + $0x28] sm:$0xff] %vm177_vm0, %v1560_v38  ;;  %v1530_v62 = vmul.f32 %v1924_v0, %v3210_v32  ;;  %vm1252_vm11 = vcmp.eq.f32.partialorder %v3162_v7, 0.0  ;;  %v1024_v45 = vadd.f32 %v992_v24, %v926_v48  ;;  %v4731_v24 = vld [vmem:[#allocation40_spill] sm:$0xff]  ;;  %v1925_v38 = vld [vmem:[%s4499_s1 + $0x48] sm:$0xff] }
  0xa3   :  { %v1090_v16 = vmul.f32 %v3023_v29, %v2974_v23  ;;  %v1237_v9 = vsel %vm1236_vm6, %v3132_v56, %v1235_v6  ;;  %v1253_v14 = vand.u32 2147483648, %v3162_v7  ;;  %v731_v10 = vadd.f32 %v4730_v60, %v633_v18  ;;  %v4732_v44 = vld [vmem:[#allocation76_spill] sm:$0xff] }
  0xa4   :  { %v1814_v26 = vpop.eup %1813  ;;  %v797_v31 = vmul.f32 %v2992_v11, %v2974_v23  ;;  %v1562_v34 = vsel %vm1402_vm5, %v1530_v62, %v1226_v35  ;;  %v1240_v54 = vsel %vm1238_vm8, %v1239_v25, %v1237_v9  ;;  %v1442_v13 = vsel %vm4569_vm10, %v4729_v15, 1.0 }
  0xa5   :  { %v1122_v19 = vadd.f32 %v1090_v16, %v1024_v45  ;;  %v1816_v48 = vpop.eup %1815  ;;  %1594 = vst.msk [vmem:[%s4500_s2 + $0x38] sm:$0xff] %vm177_vm0, %v1562_v34  ;;  %v3250_v5 = vmul.f32 %v1808_v43, %v1240_v54  ;;  %v896_v35 = vmul.f32 %v2995_v3, %v863_v40  ;;  %vm4571_vm12 = vcmp.gt.f32.partialorder %v4731_v24, 0.0  ;;  %v865_v40 = vld [vmem:[#allocation2 + $0x110] sm:$0xff] }
  0xa6   :  { %v829_v23 = vadd.f32 %v797_v31, %v731_v10  ;;  %v1249_v56 = vmul.f32 %v1816_v48, %v3162_v7  ;;  %vm1264_vm14 = vcmp.eq.f32.partialorder %v3208_v39, inf  ;;  %v635_v18 = vadd.f32 %v4732_v44, %v3060_v33  ;;  %v963_v48 = vld [vmem:[#allocation2 + $0x111] sm:$0xff] }
  0xa7   :  { %v3256_v25 = vand.u32 2147483647, %v1122_v19  ;;  %v1532_v43 = vmul.f32 %v1925_v38, %v3250_v5  ;;  %vm1266_vm15 = vcmp.eq.f32.partialorder %v3208_v39, 0.0  ;;  %v994_v0 = vmul.f32 %v3019_v57, %v961_v17  ;;  %v4733_v19 = vld [vmem:[#allocation77_spill] sm:$0xff]  ;;  %v4735_v38 = vld [vmem:[#allocation42_spill] sm:$0xff] }
  0xa8   :  { %v928_v6 = vadd.f32 %v896_v35, %v829_v23  ;;  %v1251_v45 = vsel %vm1250_vm9, %v3162_v7, %v1249_v56  ;;  %v1267_v16 = vand.u32 2147483648, %v3208_v39  ;;  %v1444_v33 = vsel %vm4571_vm12, %v4731_v24, 1.0  ;;  %v4734_v35 = vld [vmem:[#allocation81_spill] sm:$0xff] }
  0xa9   :  { %v1818_v62 = vpop.eup %1817  ;;  %1821 = vrsqrt.f32 %v3256_v25  ;;  %v1564_v9 = vsel %vm1404_vm7, %v1532_v43, %v1240_v54  ;;  %v1254_v60 = vsel %vm1252_vm11, %v1253_v14, %v1251_v45  ;;  %v1092_v31 = vmul.f32 %v3023_v29, %v2976_v22 }
  0xaa   :  { %v1026_v10 = vadd.f32 %v994_v0, %v928_v6  ;;  %1596 = vst.msk [vmem:[%s4500_s2 + $0x48] sm:$0xff] %vm177_vm0, %v1564_v9  ;;  %v3284_v34 = vmul.f32 %v1814_v26, %v1254_v60  ;;  %1823 = vrsqrt.f32 %v1442_v13  ;;  %v733_v17 = vadd.f32 %v4733_v19, %v635_v18  ;;  %v1926_v26 = vld [vmem:[%s4499_s1 + $0x58] sm:$0xff]  ;;  %v4736_v6 = vld [vmem:[#allocation82_spill] sm:$0xff] }
  0xab   :  { %v799_v54 = vmul.f32 %v2992_v11, %v2976_v22  ;;  %v1820_v7 = vpop.eup %1819  ;;  %1825 = vrsqrt.f32 %v1444_v33  ;;  %v898_v23 = vmul.f32 %v2995_v3, %v865_v40  ;;  %v637_v56 = vadd.f32 %v4734_v35, %v3063_v41  ;;  %v867_v41 = vld [vmem:[#allocation2 + $0x128] sm:$0xff] }
  0xac   :  { %v1124_v14 = vadd.f32 %v1092_v31, %v1026_v10  ;;  %v1534_v13 = vmul.f32 %v1926_v26, %v3284_v34  ;;  %v1263_v44 = vmul.f32 %v1820_v7, %v3208_v39  ;;  %vm1414_vm6 = vcmp.gt.f32.partialorder %v4735_v38, 0.0  ;;  %v965_v10 = vld [vmem:[#allocation2 + $0x129] sm:$0xff]  ;;  %v4737_v26 = vld [vmem:[#allocation44_spill] sm:$0xff] }
  0xad   :  { %v831_v18 = vadd.f32 %v799_v54, %v733_v17  ;;  %vm1278_vm8 = vcmp.eq.f32.partialorder %v3256_v25, inf  ;;  %v996_v43 = vmul.f32 %v3019_v57, %v963_v48  ;;  %v735_v0 = vadd.f32 %v4736_v6, %v637_v56 }
  0xae   :  { %v3299_v22 = vand.u32 2147483647, %v1124_v14  ;;  %v1566_v45 = vsel %vm4570_vm13, %v1534_v13, %v1254_v60  ;;  %v1265_v33 = vsel %vm1264_vm14, %v3208_v39, %v1263_v44  ;;  %v801_v9 = vmul.f32 %v2992_v11, %v3015_v4  ;;  %v869_v13 = vld [vmem:[#allocation2 + $0x140] sm:$0xff] }
  0xaf   :  { %v930_v40 = vadd.f32 %v898_v23, %v831_v18  ;;  %1598 = vst.msk [vmem:[%s4500_s2 + $0x58] sm:$0xff] %vm177_vm0, %v1566_v45  ;;  %v1268_v31 = vsel %vm1266_vm15, %v1267_v16, %v1265_v33  ;;  %v1094_v60 = vmul.f32 %v3023_v29, %v3015_v4  ;;  %v1446_v19 = vsel %vm1414_vm6, %v4735_v38, 1.0  ;;  %v1927_v23 = vld [vmem:[%s4499_s1 + $0x68] sm:$0xff] }
  0xb0   :  { %1827 = vrsqrt.f32 %v3299_v22  ;;  %v3322_v17 = vmul.f32 %v1818_v62, %v1268_v31  ;;  %v833_v48 = vadd.f32 %v801_v9, %v735_v0  ;;  %v900_v7 = vmul.f32 %v2995_v3, %v867_v41  ;;  %v967_v45 = vld [vmem:[#allocation2 + $0x141] sm:$0xff] }
  0xb1   :  { %v1028_v54 = vadd.f32 %v996_v43, %v930_v40  ;;  %vm1280_vm9 = vcmp.eq.f32.partialorder %v3256_v25, 0.0  ;;  %v1281_v39 = vand.u32 2147483648, %v3256_v25  ;;  %v998_v16 = vmul.f32 %v3019_v57, %v965_v10 }
  0xb2   :  { %v639_v14 = vadd.f32 %v2680_v46, %v3079_v58  ;;  %v1536_v62 = vmul.f32 %v1927_v23, %v3322_v17  ;;  %v932_v56 = vadd.f32 %v900_v7, %v833_v48  ;;  %vm1416_vm11 = vcmp.gt.f32.partialorder %v4737_v26, 0.0  ;;  %v4738_v7 = vld [vmem:[#allocation46_spill] sm:$0xff] }
  0xb3   :  { %v1822_v4 = vpop.eup %1821  ;;  %v1126_v35 = vadd.f32 %v1094_v60, %v1028_v54  ;;  %1829 = vrsqrt.f32 %v1446_v19  ;;  %v803_v46 = vmul.f32 %v2992_v11, %v2924_v20  ;;  %v1096_v41 = vmul.f32 %v3023_v29, %v2924_v20 }
  0xb4   :  { %v1277_v44 = vmul.f32 %v1822_v4, %v3256_v25  ;;  %v737_v18 = vadd.f32 %v2684_v50, %v639_v14  ;;  %v1824_v58 = vpop.eup %1823  ;;  %v1568_v43 = vsel %vm4568_vm1, %v1536_v62, %v1268_v31  ;;  %v1030_v0 = vadd.f32 %v998_v16, %v932_v56  ;;  %v1928_v16 = vld [vmem:[%s4499_s1 + $0x78] sm:$0xff] }
  0xb5   :  { %v3341_v6 = vand.u32 2147483647, %v1126_v35  ;;  %v1826_v33 = vpop.eup %1825  ;;  %1600 = vst.msk [vmem:[%s4500_s2 + $0x68] sm:$0xff] %vm177_vm0, %v1568_v43  ;;  %v1448_v40 = vsel %vm1416_vm11, %v4737_v26, 1.0  ;;  %v902_v10 = vmul.f32 %v2995_v3, %v869_v13  ;;  %vm1292_vm14 = vcmp.eq.f32.partialorder %v3299_v22, inf  ;;  %v871_v35 = vld [vmem:[#allocation2 + $0x158] sm:$0xff] }
  0xb6   :  { %v1279_v50 = vsel %vm1278_vm8, %v3256_v25, %v1277_v44  ;;  %v835_v9 = vadd.f32 %v803_v46, %v737_v18  ;;  %vm1294_vm15 = vcmp.eq.f32.partialorder %v3299_v22, 0.0  ;;  %v1128_v60 = vadd.f32 %v1096_v41, %v1030_v0  ;;  %v1948_v26 = vld [vmem:[%s4499_s1 + $0x1d8] sm:$0xff] }
  0xb7   :  { %v1282_v20 = vsel %vm1280_vm9, %v1281_v39, %v1279_v50  ;;  %1831 = vrsqrt.f32 %v3341_v6  ;;  %v1000_v54 = vmul.f32 %v3019_v57, %v967_v45  ;;  %v1295_v48 = vand.u32 2147483648, %v3299_v22  ;;  %v4739_v45 = vld [vmem:[#allocation51_spill] sm:$0xff] }
  0xb8   :  { %v3361_v31 = vmul.f32 %v1824_v58, %v1282_v20  ;;  %v934_v19 = vadd.f32 %v902_v10, %v835_v9  ;;  %1833 = vrsqrt.f32 %v1448_v40  ;;  %vm1418_vm8 = vcmp.gt.f32.partialorder %v4738_v7, 0.0  ;;  %v969_v58 = vld [vmem:[#allocation2 + $0x159] sm:$0xff] }
  0xb9   :  { %v641_v25 = vadd.f32 %v2741_v53, %v2979_v1  ;;  %v3372_v4 = vand.u32 2147483647, %v1128_v60  ;;  %v1098_v62 = vmul.f32 %v3023_v29, %v2926_v59  ;;  %vm1306_vm9 = vcmp.eq.f32.partialorder %v3341_v6, inf }
  0xba   :  { %v1828_v39 = vpop.eup %1827  ;;  %v1538_v14 = vmul.f32 %v1928_v16, %v3361_v31  ;;  %v1032_v23 = vadd.f32 %v1000_v54, %v934_v19  ;;  %v805_v1 = vmul.f32 %v2992_v11, %v2926_v59  ;;  %vm1308_vm1 = vcmp.eq.f32.partialorder %v3341_v6, 0.0  ;;  %v971_v54 = vld [vmem:[#allocation2 + $0x171] sm:$0xff] }
  0xbb   :  { %v1291_v56 = vmul.f32 %v1828_v39, %v3299_v22  ;;  %v739_v53 = vadd.f32 %v2753_v61, %v641_v25  ;;  %1835 = vrsqrt.f32 %v3372_v4  ;;  %v1450_v44 = vsel %vm1418_vm8, %v4738_v7, 1.0 }
  0xbc   :  { %v1570_v13 = vsel %vm4569_vm10, %v1538_v14, %v1282_v20  ;;  %v1130_v59 = vadd.f32 %v1098_v62, %v1032_v23  ;;  %v904_v46 = vmul.f32 %v2995_v3, %v871_v35  ;;  %v1309_v41 = vand.u32 2147483648, %v3341_v6  ;;  %v873_v20 = vld [vmem:[#allocation2 + $0x170] sm:$0xff] }
  0xbd   :  { %1602 = vst.msk [vmem:[%s4500_s2 + $0x78] sm:$0xff] %vm177_vm0, %v1570_v13  ;;  %v1293_v61 = vsel %vm1292_vm14, %v3299_v22, %v1291_v56  ;;  %v837_v18 = vadd.f32 %v805_v1, %v739_v53  ;;  %v1830_v43 = vpop.eup %1829  ;;  %vm1420_vm10 = vcmp.gt.f32.partialorder %v4739_v45, 0.0  ;;  %v643_v50 = vadd.f32 %v2792_v28, %v2982_v30  ;;  %v1929_v28 = vld [vmem:[%s4499_s1 + $0x88] sm:$0xff] }
  0xbe   :  { %v1296_v0 = vsel %vm1294_vm15, %v1295_v48, %v1293_v61  ;;  %v3404_v9 = vand.u32 2147483647, %v1130_v59  ;;  %1837 = vrsqrt.f32 %v1450_v44  ;;  %vm1320_vm14 = vcmp.eq.f32.partialorder %v3372_v4, inf  ;;  %v4740_v53 = vld [vmem:[#allocation53_spill] sm:$0xff] }
  0xbf   :  { %v3402_v40 = vmul.f32 %v1826_v33, %v1296_v0  ;;  %v936_v10 = vadd.f32 %v904_v46, %v837_v18  ;;  %v1002_v60 = vmul.f32 %v3019_v57, %v969_v58  ;;  %v741_v22 = vadd.f32 %v2796_v27, %v643_v50  ;;  %v875_v18 = vld [vmem:[#allocation2 + $0x188] sm:$0xff] }
  0xc0   :  { %v807_v19 = vmul.f32 %v2992_v11, %v2939_v8  ;;  %vm1322_vm15 = vcmp.eq.f32.partialorder %v3372_v4, 0.0  ;;  %1839 = vrsqrt.f32 %v3404_v9  ;;  %v1100_v33 = vmul.f32 %v3023_v29, %v2939_v8 }
  0xc1   :  { %v1832_v48 = vpop.eup %1831  ;;  %v1540_v30 = vmul.f32 %v1929_v28, %v3402_v40  ;;  %v1452_v27 = vsel %vm1420_vm10, %v4739_v45, 1.0  ;;  %v1034_v39 = vadd.f32 %v1002_v60, %v936_v10  ;;  %v906_v14 = vmul.f32 %v2995_v3, %v873_v20  ;;  %v4741_v20 = vld [vmem:[#allocation121_spill] sm:$0xff]  ;;  %v4754_v45 = vld [vmem:[#allocation103_spill] sm:$0xff] }
  0xc2   :  { %v1305_v25 = vmul.f32 %v1832_v48, %v3341_v6  ;;  %v839_v16 = vadd.f32 %v807_v19, %v741_v22  ;;  %v1834_v23 = vpop.eup %1833  ;;  %v1323_v35 = vand.u32 2147483648, %v3372_v4  ;;  %v1004_v56 = vmul.f32 %v3019_v57, %v971_v54 }
  0xc3   :  { %v1572_v62 = vsel %vm4571_vm12, %v1540_v30, %v1296_v0  ;;  %vm1422_vm13 = vcmp.gt.f32.partialorder %v4740_v53, 0.0  ;;  %v1132_v1 = vadd.f32 %v1100_v33, %v1034_v39  ;;  %vm1334_vm12 = vcmp.eq.f32.partialorder %v3404_v9, inf  ;;  %v4742_v39 = vld [vmem:[#allocation85_spill] sm:$0xff] }
  0xc4   :  { %1604 = vst.msk [vmem:[%s4500_s2 + $0x88] sm:$0xff] %vm177_vm0, %v1572_v62  ;;  %v1307_v8 = vsel %vm1306_vm9, %v3341_v6, %v1305_v25  ;;  %v938_v13 = vadd.f32 %v906_v14, %v839_v16  ;;  %v1454_v44 = vsel %vm1422_vm13, %v4740_v53, 1.0  ;;  %1841 = vrsqrt.f32 %v1452_v27  ;;  %v973_v6 = vld [vmem:[#allocation2 + $0x189] sm:$0xff]  ;;  %v4743_v16 = vld [vmem:[#allocation127_spill] sm:$0xff]  ;;  %v4757_v53 = vld [vmem:[#allocation92_spill] sm:$0xff] }
  0xc5   :  { %v1310_v61 = vsel %vm1308_vm1, %v1309_v41, %v1307_v8  ;;  %v645_v59 = vadd.f32 %v2904_v63, %v2986_v12  ;;  %v1836_v46 = vpop.eup %1835  ;;  %vm1336_vm9 = vcmp.eq.f32.partialorder %v3404_v9, 0.0  ;;  %v3447_v0 = vand.u32 2147483647, %v1132_v1  ;;  %v778_v12 = vld [vmem:[#allocation2 + $0x18a] sm:$0xff]  ;;  %v4744_v14 = vld [vmem:[#allocation123_spill] sm:$0xff] }
  0xc6   :  { %v3444_v58 = vmul.f32 %v1830_v43, %v1310_v61  ;;  %v1036_v50 = vadd.f32 %v1004_v56, %v938_v13  ;;  %v1102_v10 = vmul.f32 %v3023_v29, %v2960_v55  ;;  %v1319_v41 = vmul.f32 %v1836_v46, %v3372_v4  ;;  %v1930_v43 = vld [vmem:[%s4499_s1 + $0x98] sm:$0xff]  ;;  %v877_v46 = vld [vmem:[#allocation2 + $0x1a0] sm:$0xff] }
  0xc7   :  { %1843 = vrsqrt.f32 %v1454_v44  ;;  %v743_v60 = vadd.f32 %v4741_v20, %v645_v59  ;;  %v809_v63 = vmul.f32 %v2992_v11, %v2960_v55  ;;  %v1337_v19 = vand.u32 2147483648, %v3404_v9 }
  0xc8   :  { %v1542_v22 = vmul.f32 %v1930_v43, %v3444_v58  ;;  %1845 = vrsqrt.f32 %v3447_v0  ;;  %v908_v54 = vmul.f32 %v2995_v3, %v875_v18  ;;  %v1838_v48 = vpop.eup %1837  ;;  %v1321_v28 = vsel %vm1320_vm14, %v3372_v4, %v1319_v41 }
  0xc9   :  { %v1134_v30 = vadd.f32 %v1102_v10, %v1036_v50  ;;  %v841_v55 = vadd.f32 %v809_v63, %v743_v60  ;;  %v1006_v33 = vmul.f32 %v3019_v57, %v973_v6  ;;  %v1324_v25 = vsel %vm1322_vm15, %v1323_v35, %v1321_v28  ;;  %v975_v10 = vld [vmem:[#allocation2 + $0x1a1] sm:$0xff] }
  0xca   :  { %v1574_v27 = vsel %vm1414_vm6, %v1542_v22, %v1310_v61  ;;  %vm1424_vm1 = vcmp.gt.f32.partialorder %v4742_v39, 0.0  ;;  %v647_v62 = vadd.f32 %v4744_v14, %v4743_v16  ;;  %v1840_v56 = vpop.eup %1839  ;;  %v3477_v8 = vmul.f32 %v1834_v23, %v1324_v25  ;;  %v4745_v61 = vld [vmem:[#allocation124_spill] sm:$0xff]  ;;  %v1931_v23 = vld [vmem:[%s4499_s1 + $0xa8] sm:$0xff]  ;;  %v4747_v16 = vld [vmem:[#allocation59_spill] sm:$0xff] }
  0xcb   :  { %1606 = vst.msk [vmem:[%s4500_s2 + $0x98] sm:$0xff] %vm177_vm0, %v1574_v27  ;;  %v3479_v1 = vand.u32 2147483647, %v1134_v30  ;;  %v940_v13 = vadd.f32 %v908_v54, %v841_v55  ;;  %v1104_v44 = vmul.f32 %v3023_v29, %v778_v12  ;;  %v1333_v4 = vmul.f32 %v1840_v56, %v3404_v9  ;;  %v1073_v63 = vld [vmem:[#allocation2 + $0x1a2] sm:$0xff] }
  0xcc   :  { %v1456_v35 = vsel %vm1424_vm1, %v4742_v39, 1.0  ;;  %v745_v59 = vadd.f32 %v4745_v61, %v647_v62  ;;  %v811_v18 = vmul.f32 %v2992_v11, %v778_v12  ;;  %v1544_v50 = vmul.f32 %v1931_v23, %v3477_v8  ;;  %v1935_v61 = vld [vmem:[%s4499_s1 + $0x128] sm:$0xff] }
  0xcd   :  { %vm1348_vm14 = vcmp.eq.f32.partialorder %v3447_v0, inf  ;;  %vm1350_vm15 = vcmp.eq.f32.partialorder %v3447_v0, 0.0  ;;  %1847 = vrsqrt.f32 %v3479_v1  ;;  %v1335_v6 = vsel %vm1334_vm12, %v3404_v9, %v1333_v4 }
  0xce   :  { %v1351_v41 = vand.u32 2147483648, %v3447_v0  ;;  %v1038_v20 = vadd.f32 %v1006_v33, %v940_v13  ;;  %v843_v60 = vadd.f32 %v811_v18, %v745_v59  ;;  %v1842_v12 = vpop.eup %1841  ;;  %v1576_v43 = vsel %vm1416_vm11, %v1544_v50, %v1324_v25  ;;  %v4746_v33 = vld [vmem:[#allocation88_spill] sm:$0xff]  ;;  %v1934_v13 = vld [vmem:[%s4499_s1 + $0xb8] sm:$0xff] }
  0xcf   :  { %v1338_v22 = vsel %vm1336_vm9, %v1337_v19, %v1335_v6  ;;  %1849 = vrsqrt.f32 %v1456_v35  ;;  %v910_v54 = vmul.f32 %v2995_v3, %v877_v46  ;;  %1608 = vst.msk [vmem:[%s4500_s2 + $0xa8] sm:$0xff] %vm177_vm0, %v1576_v43  ;;  %v1008_v55 = vmul.f32 %v3019_v57, %v975_v10  ;;  %v1932_v19 = vld [vmem:[%s4499_s1 + $0x108] sm:$0xff]  ;;  %v1936_v6 = vld [vmem:[%s4499_s1 + $0x138] sm:$0xff] }
  0xd0   :  { %v3508_v28 = vmul.f32 %v1838_v48, %v1338_v22  ;;  %v1136_v30 = vadd.f32 %v1104_v44, %v1038_v20  ;;  %vm4572_vm12 = vcmp.gt.f32.partialorder %v4746_v33, 0.0  ;;  %v1106_v9 = vmul.f32 %v3023_v29, %v1073_v63  ;;  %v1933_v48 = vld [vmem:[%s4499_s1 + $0x118] sm:$0xff] }
  0xd1   :  { %v3512_v27 = vpop.eup %1843  ;;  %v942_v25 = vadd.f32 %v910_v54, %v843_v60  ;;  %v1620_v14 = vmul.f32 %v1932_v19, %v4747_v16  ;;  %v1622_v62 = vmul.f32 %v1933_v48, %v3154_v42  ;;  %v1458_v35 = vsel %vm4572_vm12, %v4746_v33, 1.0  ;;  %v1937_v60 = vld [vmem:[%s4499_s1 + $0x148] sm:$0xff] }
  0xd2   :  { %v1846_v56 = vpop.eup %1845  ;;  %v1546_v44 = vmul.f32 %v1934_v13, %v3508_v28  ;;  %v3527_v4 = vand.u32 2147483647, %v1136_v30  ;;  %v1624_v59 = vmul.f32 %v1935_v61, %v3194_v21  ;;  %vm1362_vm9 = vcmp.eq.f32.partialorder %v3479_v1, inf }
  0xd3   :  { %v1347_v42 = vmul.f32 %v1846_v56, %v3447_v0  ;;  %v1040_v18 = vadd.f32 %v1008_v55, %v942_v25  ;;  %v1652_v46 = vsel %vm1396_vm2, %v1620_v14, 0.0  ;;  %v1654_v23 = vsel %vm1398_vm3, %v1622_v62, 0.0  ;;  %v1944_v56 = vld [vmem:[%s4499_s1 + $0x1a8] sm:$0xff] }
  0xd4   :  { %v1578_v50 = vsel %vm1418_vm8, %v1546_v44, %v1338_v22  ;;  %vm1364_vm12 = vcmp.eq.f32.partialorder %v3479_v1, 0.0  ;;  %1851 = vrsqrt.f32 %v3527_v4  ;;  %1761 = vst.msk [vmem:[%s4500_s2 + $0x108] sm:$0xff] %vm177_vm0, %v1652_v46  ;;  %1763 = vst.msk [vmem:[%s4500_s2 + $0x118] sm:$0xff] %vm177_vm0, %v1654_v23  ;;  %v1656_v21 = vsel %vm1400_vm4, %v1624_v59, 0.0 }
  0xd5   :  { %1610 = vst.msk [vmem:[%s4500_s2 + $0xb8] sm:$0xff] %vm177_vm0, %v1578_v50  ;;  %v1349_v49 = vsel %vm1348_vm14, %v3447_v0, %v1347_v42  ;;  %v1138_v52 = vadd.f32 %v1106_v9, %v1040_v18  ;;  %1853 = vrsqrt.f32 %v1458_v35  ;;  %1765 = vst.msk [vmem:[%s4500_s2 + $0x128] sm:$0xff] %vm177_vm0, %v1656_v21  ;;  %v1626_v20 = vmul.f32 %v1936_v6, %v3210_v32  ;;  %v1938_v0 = vld [vmem:[%s4499_s1 + $0x158] sm:$0xff]  ;;  %v1939_v32 = vld [vmem:[%s4499_s1 + $0x168] sm:$0xff] }
  0xd6   :  { %v1352_v10 = vsel %vm1350_vm15, %v1351_v41, %v1349_v49  ;;  %v1628_v47 = vmul.f32 %v1937_v60, %v3250_v5  ;;  %v1630_v41 = vmul.f32 %v1938_v0, %v3284_v34  ;;  %v1632_v54 = vmul.f32 %v1939_v32, %v3322_v17  ;;  %v1940_v5 = vld [vmem:[%s4499_s1 + $0x178] sm:$0xff]  ;;  %v1941_v17 = vld [vmem:[%s4499_s1 + $0xc8] sm:$0xff]  ;;  %v4753_v42 = vld [vmem:[#allocation102_spill] sm:$0xff] }
  0xd7   :  { %v1848_v63 = vpop.eup %1847  ;;  %v1516_v43 = vmul.f32 %v1842_v12, %v1352_v10  ;;  %v3581_v22 = vand.u32 2147483647, %v1138_v52  ;;  %v1634_v30 = vmul.f32 %v1940_v5, %v3361_v31  ;;  %v1658_v34 = vsel %vm1402_vm5, %v1626_v20, 0.0  ;;  %v1949_v20 = vld [vmem:[#allocation2 + $0x1a] sm:$0xff]  ;;  %v1042_v0 = vld [vmem:[#allocation2 + $0x32] sm:$0xff] }
  0xd8   :  { %v1361_v55 = vmul.f32 %v1848_v63, %v3479_v1  ;;  %v1660_v12 = vsel %vm1404_vm7, %v1628_v47, 0.0  ;;  %vm4748_vm2 = vcmp.gt.f32.partialorder %v4722_v2, 0.0  ;;  %v1365_v31 = vand.u32 2147483648, %v3479_v1  ;;  %1767 = vst.msk [vmem:[%s4500_s2 + $0x138] sm:$0xff] %vm177_vm0, %v1658_v34  ;;  %v944_v47 = vld [vmem:[#allocation2 + $0x31] sm:$0xff]  ;;  %v4756_v32 = vld [vmem:[#allocation20_spill] sm:$0xff] }
  0xd9   :  { %v1662_v25 = vsel %vm4748_vm2, %v1630_v41, 0.0  ;;  %v3598_v9 = vpop.eup %1849  ;;  %v1548_v19 = vmul.f32 %v1941_v17, %v1516_v43  ;;  %vm1376_vm3 = vcmp.eq.f32.partialorder %v3527_v4, inf  ;;  %1855 = vrsqrt.f32 %v3581_v22  ;;  %1769 = vst.msk [vmem:[%s4500_s2 + $0x148] sm:$0xff] %vm177_vm0, %v1660_v12  ;;  %v4755_v41 = vld [vmem:[#allocation6_spill] sm:$0xff]  ;;  %v4758_v12 = vld [vmem:[#allocation21_spill] sm:$0xff] }
  0xda   :  { %1771 = vst.msk [vmem:[%s4500_s2 + $0x158] sm:$0xff] %vm177_vm0, %v1662_v25  ;;  %v1363_v51 = vsel %vm1362_vm9, %v3479_v1, %v1361_v55  ;;  %vm1378_vm4 = vcmp.eq.f32.partialorder %v3527_v4, 0.0  ;;  %vm4749_vm5 = vcmp.gt.f32.partialorder %v4725_v37, 0.0  ;;  %vm4750_vm7 = vcmp.gt.f32.partialorder %v4729_v15, 0.0  ;;  %v1942_v37 = vld [vmem:[%s4499_s1 + $0x188] sm:$0xff]  ;;  %v1943_v1 = vld [vmem:[%s4499_s1 + $0x198] sm:$0xff] }
  0xdb   :  { %v1664_v36 = vsel %vm4749_vm5, %v1632_v54, 0.0  ;;  %v1666_v2 = vsel %vm4750_vm7, %v1634_v30, 0.0  ;;  %v1580_v16 = vsel %vm1420_vm10, %v1548_v19, %v1352_v10  ;;  %v1366_v14 = vsel %vm1364_vm12, %v1365_v31, %v1363_v51  ;;  %v846_v10 = vld [vmem:[#allocation2 + $0x30] sm:$0xff]  ;;  %v848_v17 = vld [vmem:[#allocation2 + $0x48] sm:$0xff] }
  0xdc   :  { %1773 = vst.msk [vmem:[%s4500_s2 + $0x168] sm:$0xff] %vm177_vm0, %v1664_v36  ;;  %1775 = vst.msk [vmem:[%s4500_s2 + $0x178] sm:$0xff] %vm177_vm0, %v1666_v2  ;;  %v1636_v15 = vmul.f32 %v1942_v37, %v3402_v40  ;;  %v1638_v48 = vmul.f32 %v1943_v1, %v3444_v58  ;;  %v1518_v62 = vmul.f32 %v3512_v27, %v1366_v14  ;;  %v1945_v40 = vld [vmem:[%s4499_s1 + $0x1b8] sm:$0xff]  ;;  %v1946_v58 = vld [vmem:[%s4499_s1 + $0x1c8] sm:$0xff]  ;;  %v1379_v61 = vand.u32 2147483648, %v3527_v4 }
  0xdd   :  { %1612 = vst.msk [vmem:[%s4500_s2 + $0xc8] sm:$0xff] %vm177_vm0, %v1580_v16  ;;  %v1640_v13 = vmul.f32 %v1944_v56, %v3477_v8  ;;  %v1642_v44 = vmul.f32 %v1945_v40, %v3508_v28  ;;  %v1644_v35 = vmul.f32 %v1946_v58, %v1516_v43  ;;  %vm4751_vm14 = vcmp.gt.f32.partialorder %v4731_v24, 0.0  ;;  %v4752_v8 = vld [vmem:[#allocation91_spill] sm:$0xff]  ;;  %v4759_v16 = vld [vmem:[#allocation104_spill] sm:$0xff]  ;;  %v1951_v1 = vld [vmem:[%s4499_s1 + $0xe8] sm:$0xff] }
  0xde   :  { %v1668_v27 = vsel %vm4751_vm14, %v1636_v15, 0.0  ;;  %v1670_v59 = vsel %vm1414_vm6, %v1638_v48, 0.0  ;;  %v518_v18 = vadd.f32 %v4753_v42, %v4752_v8  ;;  %v1852_v46 = vpop.eup %1851  ;;  %v1947_v28 = vld [vmem:[%s4499_s1 + $0xd8] sm:$0xff]  ;;  %vm1390_vm6 = vcmp.eq.f32.partialorder %v3581_v22, inf  ;;  %v946_v40 = vld [vmem:[#allocation2 + $0x49] sm:$0xff]  ;;  %v4763_v8 = vld [vmem:[#allocation24_spill] sm:$0xff] }
  0xdf   :  { %v1550_v23 = vmul.f32 %v1947_v28, %v1518_v62  ;;  %1777 = vst.msk [vmem:[%s4500_s2 + $0x188] sm:$0xff] %vm177_vm0, %v1668_v27  ;;  %1779 = vst.msk [vmem:[%s4500_s2 + $0x198] sm:$0xff] %vm177_vm0, %v1670_v59  ;;  %v1672_v24 = vsel %vm1416_vm11, %v1640_v13, 0.0  ;;  %v1674_v38 = vsel %vm1418_vm8, %v1642_v44, 0.0  ;;  %v1676_v50 = vsel %vm1420_vm10, %v1644_v35, 0.0  ;;  %v1854_v49 = vpop.eup %1853  ;;  %v1950_v37 = vld [vmem:[#allocation2 + $0x32] sm:$0xff] }
  0xe0   :  { %v1375_v52 = vmul.f32 %v1852_v46, %v3527_v4  ;;  %1781 = vst.msk [vmem:[%s4500_s2 + $0x1a8] sm:$0xff] %vm177_vm0, %v1672_v24  ;;  %1783 = vst.msk [vmem:[%s4500_s2 + $0x1b8] sm:$0xff] %vm177_vm0, %v1674_v38  ;;  %v1646_v7 = vmul.f32 %v1948_v26, %v1518_v62  ;;  %v616_v21 = vadd.f32 %v4754_v45, %v518_v18  ;;  %vm1392_vm10 = vcmp.eq.f32.partialorder %v3581_v22, 0.0  ;;  %v4760_v58 = vld [vmem:[#allocation23_spill] sm:$0xff]  ;;  %v4761_v27 = vld [vmem:[#allocation8_spill] sm:$0xff] }
  0xe1   :  { %1785 = vst.msk [vmem:[%s4500_s2 + $0x1c8] sm:$0xff] %vm177_vm0, %v1676_v50  ;;  %v1582_v6 = vsel %vm1422_vm13, %v1550_v23, %v1366_v14  ;;  %v780_v60 = vmul.f32 %v1949_v20, %v2992_v11  ;;  %vm1395_vm11 = vcmp.gt.f32.partialorder %v4755_v41, 0.0  ;;  %v1393_v55 = vand.u32 2147483648, %v3581_v22  ;;  %v4762_v59 = vld [vmem:[#allocation93_spill] sm:$0xff]  ;;  %v850_v26 = vld [vmem:[#allocation2 + $0x60] sm:$0xff]  ;;  %v1955_v20 = vld [vmem:[%s4499_s1 + $0x1f8] sm:$0xff] }
  0xe2   :  { %1614 = vst.msk [vmem:[%s4500_s2 + $0xd8] sm:$0xff] %vm177_vm0, %v1582_v6  ;;  %v1377_v63 = vsel %vm1376_vm3, %v3527_v4, %v1375_v52  ;;  %v1678_v43 = vsel %vm1422_vm13, %v1646_v7, 0.0  ;;  %v714_v54 = vadd.f32 %v4756_v32, %v616_v21  ;;  %v1427_v5 = vsel %vm1395_vm11, %v4755_v41, 1.0  ;;  %v1953_v21 = vld [vmem:[#allocation2 + $0x4a] sm:$0xff] }
  0xe3   :  { %v1380_v30 = vsel %vm1378_vm4, %v1379_v61, %v1377_v63  ;;  %1787 = vst.msk [vmem:[%s4500_s2 + $0x1d8] sm:$0xff] %vm177_vm0, %v1678_v43  ;;  %v879_v34 = vmul.f32 %v2995_v3, %v846_v10  ;;  %v520_v25 = vadd.f32 %v4758_v12, %v4757_v53  ;;  %v1856_v19 = vpop.eup %1855  ;;  %v977_v4 = vmul.f32 %v3019_v57, %v944_v47  ;;  %v1044_v61 = vld [vmem:[#allocation2 + $0x4a] sm:$0xff]  ;;  %v1954_v10 = vld [vmem:[%s4499_s1 + $0xf8] sm:$0xff]  ;;  %v948_v43 = vld [vmem:[#allocation2 + $0x61] sm:$0xff] }
  0xe4   :  { %v1520_v31 = vmul.f32 %v3598_v9, %v1380_v30  ;;  %v812_v51 = vadd.f32 %v780_v60, %v714_v54  ;;  %v1075_v36 = vmul.f32 %v3023_v29, %v1042_v0  ;;  %v1389_v2 = vmul.f32 %v1856_v19, %v3581_v22  ;;  %v1952_v9 = vld [vmem:[%s4499_s1 + $0x1e8] sm:$0xff]  ;;  %v4765_v0 = vld [vmem:[#allocation27_spill] sm:$0xff]  ;;  %v581_v53 = vld [vmem:[#allocation2 + $0x180] sm:$0xff] }
  0xe5   :  { %1857 = vrsqrt.f32 %v1427_v5  ;;  %v618_v14 = vadd.f32 %v4759_v16, %v520_v25  ;;  %v782_v15 = vmul.f32 %v1950_v37, %v2992_v11  ;;  %v881_v13 = vmul.f32 %v2995_v3, %v848_v17  ;;  %v4766_v5 = vld [vmem:[#allocation10_spill] sm:$0xff]  ;;  %v1046_v16 = vld [vmem:[#allocation2 + $0x62] sm:$0xff] }
  0xe6   :  { %v1552_v48 = vmul.f32 %v1951_v1, %v1520_v31  ;;  %v1648_v62 = vmul.f32 %v1952_v9, %v1520_v31  ;;  %v911_v56 = vadd.f32 %v879_v34, %v812_v51  ;;  %v1391_v44 = vsel %vm1390_vm6, %v3581_v22, %v1389_v2  ;;  %v4764_v22 = vld [vmem:[#allocation105_spill] sm:$0xff]  ;;  %v1956_v31 = vld [vmem:[#allocation2 + $0x120] sm:$0xff]  ;;  %v4771_v51 = vld [vmem:[#allocation19_spill] sm:$0xff] }
  0xe7   :  { %v716_v35 = vadd.f32 %v4760_v58, %v618_v14  ;;  %vm1397_vm13 = vcmp.gt.f32.partialorder %v4761_v27, 0.0  ;;  %v522_v42 = vadd.f32 %v4763_v8, %v4762_v59  ;;  %v1394_v46 = vsel %vm1392_vm10, %v1393_v55, %v1391_v44  ;;  %v4768_v55 = vld [vmem:[#allocation28_spill] sm:$0xff]  ;;  %v4773_v59 = vld [vmem:[#allocation31_spill] sm:$0xff] }
  0xe8   :  { %v1584_v18 = vsel %vm1424_vm1, %v1552_v48, %v1380_v30  ;;  %v1680_v28 = vsel %vm1424_vm1, %v1648_v62, 0.0  ;;  %v1009_v23 = vadd.f32 %v977_v4, %v911_v56  ;;  %v1522_v24 = vmul.f32 %v1854_v49, %v1394_v46  ;;  %v4767_v30 = vld [vmem:[#allocation94_spill] sm:$0xff] }
  0xe9   :  { %1616 = vst.msk [vmem:[%s4500_s2 + $0xe8] sm:$0xff] %vm177_vm0, %v1584_v18  ;;  %1789 = vst.msk [vmem:[%s4500_s2 + $0x1e8] sm:$0xff] %vm177_vm0, %v1680_v28  ;;  %v814_v38 = vadd.f32 %v782_v15, %v716_v35  ;;  %v979_v50 = vmul.f32 %v3019_v57, %v946_v40  ;;  %v620_v52 = vadd.f32 %v4764_v22, %v522_v42  ;;  %v1429_v45 = vsel %vm1397_vm13, %v4761_v27, 1.0  ;;  %v4772_v48 = vld [vmem:[#allocation106_spill] sm:$0xff]  ;;  %v852_v42 = vld [vmem:[#allocation2 + $0x78] sm:$0xff] }
  0xea   :  { %v1107_v39 = vadd.f32 %v1075_v36, %v1009_v23  ;;  %v1077_v7 = vmul.f32 %v3023_v29, %v1044_v61  ;;  %v784_v49 = vmul.f32 %v1953_v21, %v2992_v11  ;;  %v1554_v6 = vmul.f32 %v1954_v10, %v1522_v24  ;;  %v1957_v36 = vld [vmem:[#allocation2 + $0x138] sm:$0xff]  ;;  %v1958_v62 = vld [vmem:[#allocation2 + $0x150] sm:$0xff]  ;;  %v1960_v18 = vld [vmem:[#allocation2 + $0x62] sm:$0xff] }
  0xeb   :  { %v1650_v60 = vmul.f32 %v1955_v20, %v1522_v24  ;;  %v913_v47 = vadd.f32 %v881_v13, %v814_v38  ;;  %v718_v63 = vadd.f32 %v4765_v0, %v620_v52  ;;  %v883_v54 = vmul.f32 %v2995_v3, %v850_v26  ;;  %v1959_v13 = vld [vmem:[#allocation2 + $0x168] sm:$0xff]  ;;  %v950_v28 = vld [vmem:[#allocation2 + $0x79] sm:$0xff]  ;;  %v4778_v20 = vld [vmem:[#allocation14_spill] sm:$0xff] }
  0xec   :  { %v3780_v32 = vand.u32 2147483647, %v1107_v39  ;;  %vm1399_vm8 = vcmp.gt.f32.partialorder %v4766_v5, 0.0  ;;  %v524_v34 = vadd.f32 %v4768_v55, %v4767_v30  ;;  %vm4769_vm1 = vcmp.gt.f32.partialorder %v4746_v33, 0.0  ;;  %v1048_v23 = vld [vmem:[#allocation2 + $0x7a] sm:$0xff] }
  0xed   :  { %v1586_v12 = vsel %vm4769_vm1, %v1554_v6, %v1394_v46  ;;  %vm4770_vm15 = vmmov %vm4769_vm1  ;;  %v1011_v17 = vadd.f32 %v979_v50, %v913_v47  ;;  %v816_v19 = vadd.f32 %v784_v49, %v718_v63  ;;  %v3791_v4 = vmul.f32 %v1956_v31, %v4771_v51  ;;  %v4774_v24 = vld [vmem:[#allocation95_spill] sm:$0xff]  ;;  %v4775_v38 = vld [vmem:[#allocation32_spill] sm:$0xff] }
  0xee   :  { %v1682_v25 = vsel %vm4770_vm15, %v1650_v60, 0.0  ;;  %v3794_v2 = vmul.f32 %v1957_v36, %v4771_v51  ;;  %1618 = vst.msk [vmem:[%s4500_s2 + $0xf8] sm:$0xff] %vm177_vm0, %v1586_v12  ;;  %1859 = vrsqrt.f32 %v3780_v32  ;;  %v981_v33 = vmul.f32 %v3019_v57, %v948_v43  ;;  %v4776_v52 = vld [vmem:[#allocation12_spill] sm:$0xff]  ;;  %v854_v49 = vld [vmem:[#allocation2 + $0x90] sm:$0xff]  ;;  %v4781_v30 = vld [vmem:[#allocation35_spill] sm:$0xff] }
  0xef   :  { %1791 = vst.msk [vmem:[%s4500_s2 + $0x1f8] sm:$0xff] %vm177_vm0, %v1682_v25  ;;  %v3806_v14 = vpop.eup %1857  ;;  %v1109_v37 = vadd.f32 %v1077_v7, %v1011_v17  ;;  %v915_v15 = vadd.f32 %v883_v54, %v816_v19  ;;  %v1431_v1 = vsel %vm1399_vm8, %v4766_v5, 1.0  ;;  %v622_v9 = vadd.f32 %v4772_v48, %v524_v34  ;;  %v4779_v60 = vld [vmem:[#allocation96_spill] sm:$0xff]  ;;  %v952_v25 = vld [vmem:[#allocation2 + $0x91] sm:$0xff]  ;;  %v856_v31 = vld [vmem:[#allocation2 + $0xa8] sm:$0xff] }
  0xf0   :  { %v3813_v56 = vmul.f32 %v1958_v62, %v4771_v51  ;;  %v3816_v40 = vmul.f32 %v1959_v13, %v4771_v51  ;;  %v3819_v44 = vmul.f32 %v4771_v51, %v581_v53  ;;  %1861 = vrsqrt.f32 %v1429_v45  ;;  %v4777_v45 = vld [vmem:[#allocation108_spill] sm:$0xff]  ;;  %v4782_v17 = vld [vmem:[#allocation110_spill] sm:$0xff] }
  0xf1   :  { %v3821_v58 = vand.u32 2147483647, %v1109_v37  ;;  %v1013_v35 = vadd.f32 %v981_v33, %v915_v15  ;;  %v1079_v61 = vmul.f32 %v3023_v29, %v1046_v16  ;;  %v720_v8 = vadd.f32 %v4773_v59, %v622_v9  ;;  %v4780_v47 = vld [vmem:[#allocation48_spill] sm:$0xff]  ;;  %v1962_v16 = vld [vmem:[#allocation2 + $0x92] sm:$0xff] }
  0xf2   :  { %vm1173_vm12 = vcmp.eq.f32.partialorder %v3780_v32, inf  ;;  %1863 = vrsqrt.f32 %v1431_v1  ;;  %v786_v46 = vmul.f32 %v1960_v18, %v2992_v11  ;;  %v526_v50 = vadd.f32 %v4775_v38, %v4774_v24  ;;  %v1961_v34 = vld [vmem:[#allocation2 + $0x7a] sm:$0xff]  ;;  %v1050_v9 = vld [vmem:[#allocation2 + $0x92] sm:$0xff]  ;;  %v954_v38 = vld [vmem:[#allocation2 + $0xa9] sm:$0xff] }
  0xf3   :  { %vm1175_vm9 = vcmp.eq.f32.partialorder %v3780_v32, 0.0  ;;  %v1176_v22 = vand.u32 2147483648, %v3780_v32  ;;  %1865 = vrsqrt.f32 %v3821_v58  ;;  %vm1401_vm2 = vcmp.gt.f32.partialorder %v4776_v52, 0.0  ;;  %v4783_v62 = vld [vmem:[#allocation54_spill] sm:$0xff] }
  0xf4   :  { %v1111_v26 = vadd.f32 %v1079_v61, %v1013_v35  ;;  %v818_v39 = vadd.f32 %v786_v46, %v720_v8  ;;  %v885_v7 = vmul.f32 %v2995_v3, %v852_v42  ;;  %v624_v21 = vadd.f32 %v4777_v45, %v526_v50  ;;  %v4784_v8 = vld [vmem:[#allocation98_spill] sm:$0xff]  ;;  %v4785_v42 = vld [vmem:[#allocation55_spill] sm:$0xff] }
  0xf5   :  { %v983_v10 = vmul.f32 %v3019_v57, %v950_v28  ;;  %v1081_v6 = vmul.f32 %v3023_v29, %v1048_v23  ;;  %vm1403_vm3 = vcmp.gt.f32.partialorder %v4778_v20, 0.0  ;;  %v528_v0 = vadd.f32 %v4780_v47, %v4779_v60  ;;  %v1052_v47 = vld [vmem:[#allocation2 + $0xaa] sm:$0xff] }
  0xf6   :  { %v3840_v63 = vand.u32 2147483647, %v1111_v26  ;;  %v917_v43 = vadd.f32 %v885_v7, %v818_v39  ;;  %v1433_v54 = vsel %vm1401_vm2, %v4776_v52, 1.0  ;;  %v722_v55 = vadd.f32 %v4781_v30, %v624_v21  ;;  %v4786_v7 = vld [vmem:[#allocation111_spill] sm:$0xff]  ;;  %v1963_v30 = vld [vmem:[%s4499_s1] sm:$0xff] }
  0xf7   :  { %vm1187_vm4 = vcmp.eq.f32.partialorder %v3821_v58, inf  ;;  %v788_v53 = vmul.f32 %v1961_v34, %v2992_v11  ;;  %v887_v12 = vmul.f32 %v2995_v3, %v854_v49  ;;  %v626_v19 = vadd.f32 %v4782_v17, %v528_v0  ;;  %v1964_v34 = vld [vmem:[#allocation2 + $0xaa] sm:$0xff]  ;;  %v1991_v52 = vld [vmem:[%s4499_s1 + $0xc0] sm:$0xff] }
  0xf8   :  { %v1860_v51 = vpop.eup %1859  ;;  %vm1189_vm5 = vcmp.eq.f32.partialorder %v3821_v58, 0.0  ;;  %v1190_v36 = vand.u32 2147483648, %v3821_v58  ;;  %1867 = vrsqrt.f32 %v3840_v63  ;;  %v1435_v33 = vsel %vm1403_vm3, %v4778_v20, 1.0 }
  0xf9   :  { %v790_v37 = vmul.f32 %v1962_v16, %v2992_v11  ;;  %v1172_v15 = vmul.f32 %v1860_v51, %v3780_v32  ;;  %v1015_v1 = vadd.f32 %v983_v10, %v917_v43  ;;  %v820_v48 = vadd.f32 %v788_v53, %v722_v55  ;;  %v4788_v55 = vld [vmem:[#allocation16_spill] sm:$0xff] }
  0xfa   :  { %v724_v13 = vadd.f32 %v4783_v62, %v626_v19  ;;  %v1862_v35 = vpop.eup %1861  ;;  %1869 = vrsqrt.f32 %v1433_v54  ;;  %v985_v61 = vmul.f32 %v3019_v57, %v952_v25  ;;  %v889_v59 = vmul.f32 %v2995_v3, %v856_v31  ;;  %v858_v54 = vld [vmem:[#allocation2 + $0xc0] sm:$0xff] }
  0xfb   :  { %v530_v18 = vadd.f32 %v4785_v42, %v4784_v8  ;;  %v1174_v46 = vsel %vm1173_vm12, %v3780_v32, %v1172_v15  ;;  %v1113_v28 = vadd.f32 %v1081_v6, %v1015_v1  ;;  %v919_v23 = vadd.f32 %v887_v12, %v820_v48  ;;  %v956_v31 = vld [vmem:[#allocation2 + $0xc1] sm:$0xff] }
  0xfc   :  { %v822_v24 = vadd.f32 %v790_v37, %v724_v13  ;;  %v1864_v50 = vpop.eup %1863  ;;  %v1177_v26 = vsel %vm1175_vm9, %v1176_v22, %v1174_v46  ;;  %v1083_v39 = vmul.f32 %v3023_v29, %v1050_v9  ;;  %1871 = vrsqrt.f32 %v1435_v33  ;;  %v4787_v22 = vld [vmem:[#allocation58_spill] sm:$0xff]  ;;  %v4790_v8 = vld [vmem:[#allocation60_spill] sm:$0xff] }
  0xfd   :  { %v628_v45 = vadd.f32 %v4786_v7, %v530_v18  ;;  %v1866_v21 = vpop.eup %1865  ;;  %v3871_v49 = vmul.f32 %v3806_v14, %v1177_v26  ;;  %v3873_v10 = vand.u32 2147483647, %v1113_v28  ;;  %v1017_v60 = vadd.f32 %v985_v61, %v919_v23  ;;  %v1054_v61 = vld [vmem:[#allocation2 + $0xc2] sm:$0xff] }
  0xfe   :  { %v921_v6 = vadd.f32 %v889_v59, %v822_v24  ;;  %v1186_v0 = vmul.f32 %v1866_v21, %v3821_v58  ;;  %vm1201_vm7 = vcmp.eq.f32.partialorder %v3840_v63, inf  ;;  %v987_v32 = vmul.f32 %v3019_v57, %v954_v38  ;;  %v4789_v59 = vld [vmem:[#allocation100_spill] sm:$0xff] }
  0xff   :  { %v726_v43 = vadd.f32 %v4787_v22, %v628_v45  ;;  %v1523_v14 = vmul.f32 %v1963_v30, %v3871_v49  ;;  %1873 = vrsqrt.f32 %v3873_v10  ;;  %vm4575_vm14 = vcmp.gt.f32.partialorder %v4788_v55, 0.0  ;;  %v4791_v21 = vld [vmem:[#allocation112_spill] sm:$0xff] }
 0x100   :  { %v792_v53 = vmul.f32 %v1964_v34, %v2992_v11  ;;  %v1188_v12 = vsel %vm1187_vm4, %v3821_v58, %v1186_v0  ;;  %v1115_v25 = vadd.f32 %v1083_v39, %v1017_v60  ;;  %v1019_v17 = vadd.f32 %v987_v32, %v921_v6  ;;  %v4792_v6 = vld [vmem:[#allocation18_spill] sm:$0xff]  ;;  %v4793_v32 = vld [vmem:[#allocation64_spill] sm:$0xff] }
 0x101   :  { %v1085_v19 = vmul.f32 %v3023_v29, %v1052_v47  ;;  %v1555_v51 = vsel %vm1395_vm11, %v1523_v14, %v1177_v26  ;;  %v1191_v33 = vsel %vm1189_vm5, %v1190_v36, %v1188_v12  ;;  %v891_v37 = vmul.f32 %v2995_v3, %v858_v54  ;;  %v1967_v14 = vld [vmem:[#allocation2 + $0xc2] sm:$0xff] }
 0x102   :  { %v824_v16 = vadd.f32 %v792_v53, %v726_v43  ;;  %v1868_v15 = vpop.eup %1867  ;;  %1587 = vst.msk [vmem:[%s4500_s2] sm:$0xff] %vm177_vm0, %v1555_v51  ;;  %v3899_v1 = vmul.f32 %v1862_v35, %v1191_v33  ;;  %v3901_v48 = vand.u32 2147483647, %v1115_v25  ;;  %v1437_v62 = vsel %vm4575_vm14, %v4788_v55, 1.0  ;;  %v1965_v35 = vld [vmem:[%s4499_s1 + $0x10] sm:$0xff]  ;;  %v860_v43 = vld [vmem:[#allocation2 + $0xd8] sm:$0xff] }
 0x103   :  { %v1117_v9 = vadd.f32 %v1085_v19, %v1019_v17  ;;  %v1200_v58 = vmul.f32 %v1868_v15, %v3840_v63  ;;  %v989_v13 = vmul.f32 %v3019_v57, %v956_v31  ;;  %v532_v42 = vadd.f32 %v4790_v8, %v4789_v59  ;;  %v958_v19 = vld [vmem:[#allocation2 + $0xd9] sm:$0xff] }
 0x104   :  { %v923_v36 = vadd.f32 %v891_v37, %v824_v16  ;;  %v1870_v18 = vpop.eup %1869  ;;  %v1525_v46 = vmul.f32 %v1965_v35, %v3899_v1  ;;  %vm1203_vm6 = vcmp.eq.f32.partialorder %v3840_v63, 0.0  ;;  %v1204_v28 = vand.u32 2147483648, %v3840_v63  ;;  %v4794_v16 = vld [vmem:[#allocation101_spill] sm:$0xff] }
 0x105   :  { %1875 = vrsqrt.f32 %v3901_v48  ;;  %v1202_v23 = vsel %vm1201_vm7, %v3840_v63, %v1200_v58  ;;  %v3920_v24 = vand.u32 2147483647, %v1117_v9  ;;  %v1087_v45 = vmul.f32 %v3023_v29, %v1054_v61  ;;  %v4795_v37 = vld [vmem:[#allocation65_spill] sm:$0xff] }
 0x106   :  { %1877 = vrsqrt.f32 %v1437_v62  ;;  %v1021_v38 = vadd.f32 %v989_v13, %v923_v36  ;;  %v3922_v26 = vpop.eup %1871  ;;  %v1557_v39 = vsel %vm1397_vm13, %v1525_v46, %v1191_v33  ;;  %v1205_v7 = vsel %vm1203_vm6, %v1204_v28, %v1202_v23  ;;  %v1056_v62 = vld [vmem:[#allocation2 + $0xda] sm:$0xff]  ;;  %v4796_v58 = vld [vmem:[#allocation37_spill] sm:$0xff]  ;;  %v862_v28 = vld [vmem:[#allocation2 + $0xf0] sm:$0xff] }
 0x107   :  { %v630_v60 = vadd.f32 %v4791_v21, %v532_v42  ;;  %1589 = vst.msk [vmem:[%s4500_s2 + $0x10] sm:$0xff] %vm177_vm0, %v1557_v39  ;;  %v3932_v63 = vmul.f32 %v1864_v50, %v1205_v7  ;;  %vm1215_vm10 = vcmp.eq.f32.partialorder %v3873_v10, inf  ;;  %1879 = vrsqrt.f32 %v3920_v24  ;;  %v1966_v50 = vld [vmem:[%s4499_s1 + $0x20] sm:$0xff]  ;;  %v4797_v35 = vld [vmem:[#allocation113_spill] sm:$0xff] }
 0x108   :  { %vm4574_vm1 = vcmp.gt.f32.partialorder %v4792_v6, 0.0  ;;  %vm1217_vm15 = vcmp.eq.f32.partialorder %v3873_v10, 0.0  ;;  %v1218_v47 = vand.u32 2147483648, %v3873_v10  ;;  %v1119_v0 = vadd.f32 %v1087_v45, %v1021_v38  ;;  %v4798_v21 = vld [vmem:[#allocation69_spill] sm:$0xff] }
 0x109   :  { %v728_v22 = vadd.f32 %v4793_v32, %v630_v60  ;;  %v1874_v54 = vpop.eup %1873  ;;  %v1527_v30 = vmul.f32 %v1966_v50, %v3932_v63  ;;  %vm1229_vm12 = vcmp.eq.f32.partialorder %v3901_v48, inf  ;;  %vm1231_vm9 = vcmp.eq.f32.partialorder %v3901_v48, 0.0  ;;  %v4799_v32 = vld [vmem:[#allocation107_spill] sm:$0xff] }
 0x10a   :  { %v794_v34 = vmul.f32 %v1967_v14, %v2992_v11  ;;  %v1214_v53 = vmul.f32 %v1874_v54, %v3873_v10  ;;  %v1232_v12 = vand.u32 2147483648, %v3901_v48  ;;  %v3949_v25 = vand.u32 2147483647, %v1119_v0 }
 0x10b   :  { %v1439_v17 = vsel %vm4574_vm1, %v4792_v6, 1.0  ;;  %v1559_v31 = vsel %vm1399_vm8, %v1527_v30, %v1205_v7  ;;  %v893_v33 = vmul.f32 %v2995_v3, %v860_v43  ;;  %v534_v15 = vadd.f32 %v4795_v37, %v4794_v16  ;;  %v1058_v16 = vld [vmem:[#allocation2 + $0xf2] sm:$0xff] }
 0x10c   :  { %v826_v51 = vadd.f32 %v794_v34, %v728_v22  ;;  %1591 = vst.msk [vmem:[%s4500_s2 + $0x20] sm:$0xff] %vm177_vm0, %v1559_v31  ;;  %v1216_v9 = vsel %vm1215_vm10, %v3873_v10, %v1214_v53  ;;  %vm1243_vm4 = vcmp.eq.f32.partialorder %v3920_v24, inf  ;;  %1881 = vrsqrt.f32 %v3949_v25  ;;  %v4800_v22 = vld [vmem:[#allocation70_spill] sm:$0xff]  ;;  %v4801_v37 = vld [vmem:[#allocation39_spill] sm:$0xff] }
 0x10d   :  { %vm4573_vm5 = vcmp.gt.f32.partialorder %v4796_v58, 0.0  ;;  %v1219_v36 = vsel %vm1217_vm15, %v1218_v47, %v1216_v9  ;;  %vm1245_vm7 = vcmp.eq.f32.partialorder %v3920_v24, 0.0  ;;  %v991_v61 = vmul.f32 %v3019_v57, %v958_v19  ;;  %v1969_v47 = vld [vmem:[#allocation2 + $0xda] sm:$0xff]  ;;  %v960_v34 = vld [vmem:[#allocation2 + $0xf1] sm:$0xff] }
 0x10e   :  { %v925_v13 = vadd.f32 %v893_v33, %v826_v51  ;;  %v3973_v8 = vmul.f32 %v1870_v18, %v1219_v36  ;;  %v1246_v42 = vand.u32 2147483648, %v3920_v24  ;;  %1883 = vrsqrt.f32 %v1439_v17  ;;  %v1968_v18 = vld [vmem:[%s4499_s1 + $0x30] sm:$0xff] }
 0x10f   :  { %v1876_v59 = vpop.eup %1875  ;;  %v632_v46 = vadd.f32 %v4797_v35, %v534_v15  ;;  %v1089_v10 = vmul.f32 %v3023_v29, %v1056_v62  ;;  %v1441_v7 = vsel %vm4573_vm5, %v4796_v58, 1.0  ;;  %v796_v0 = vmul.f32 %v1969_v47, %v2992_v11  ;;  %v4802_v15 = vld [vmem:[#allocation116_spill] sm:$0xff] }
 0x110   :  { %v1878_v23 = vpop.eup %1877  ;;  %v1228_v38 = vmul.f32 %v1876_v59, %v3901_v48  ;;  %v1023_v39 = vadd.f32 %v991_v61, %v925_v13  ;;  %v1529_v45 = vmul.f32 %v1968_v18, %v3973_v8  ;;  %v536_v43 = vadd.f32 %v4800_v22, %v4799_v32  ;;  %v4804_v32 = vld [vmem:[#allocation109_spill] sm:$0xff]  ;;  %v4805_v22 = vld [vmem:[#allocation75_spill] sm:$0xff] }
 0x111   :  { %v730_v60 = vadd.f32 %v4798_v21, %v632_v46  ;;  %v1880_v54 = vpop.eup %1879  ;;  %vm1257_vm6 = vcmp.eq.f32.partialorder %v3949_v25, inf  ;;  %v895_v14 = vmul.f32 %v2995_v3, %v862_v28  ;;  %vm1411_vm10 = vcmp.gt.f32.partialorder %v4801_v37, 0.0 }
 0x112   :  { %v1230_v50 = vsel %vm1229_vm12, %v3901_v48, %v1228_v38  ;;  %v1121_v30 = vadd.f32 %v1089_v10, %v1023_v39  ;;  %v1561_v53 = vsel %vm1401_vm2, %v1529_v45, %v1219_v36  ;;  %v1242_v19 = vmul.f32 %v1880_v54, %v3920_v24  ;;  %v864_v38 = vld [vmem:[#allocation2 + $0x108] sm:$0xff]  ;;  %v1972_v45 = vld [vmem:[%s4499_s1 + $0x50] sm:$0xff] }
 0x113   :  { %v1233_v17 = vsel %vm1231_vm9, %v1232_v12, %v1230_v50  ;;  %v828_v31 = vadd.f32 %v796_v0, %v730_v60  ;;  %1593 = vst.msk [vmem:[%s4500_s2 + $0x30] sm:$0xff] %vm177_vm0, %v1561_v53  ;;  %v634_v9 = vadd.f32 %v4802_v15, %v536_v43  ;;  %1885 = vrsqrt.f32 %v1441_v7  ;;  %v1971_v7 = vld [vmem:[#allocation2 + $0xf2] sm:$0xff]  ;;  %v962_v0 = vld [vmem:[#allocation2 + $0x109] sm:$0xff] }
 0x114   :  { %v4005_v51 = vmul.f32 %v3922_v26, %v1233_v17  ;;  %v4007_v33 = vand.u32 2147483647, %v1121_v30  ;;  %v1244_v48 = vsel %vm1243_vm4, %v3920_v24, %v1242_v19  ;;  %v993_v62 = vmul.f32 %v3019_v57, %v960_v34  ;;  %v1970_v26 = vld [vmem:[%s4499_s1 + $0x40] sm:$0xff]  ;;  %v4806_v34 = vld [vmem:[#allocation41_spill] sm:$0xff] }
 0x115   :  { %v927_v12 = vadd.f32 %v895_v14, %v828_v31  ;;  %v1247_v13 = vsel %vm1245_vm7, %v1246_v42, %v1244_v48  ;;  %vm1259_vm15 = vcmp.eq.f32.partialorder %v3949_v25, 0.0  ;;  %v1091_v46 = vmul.f32 %v3023_v29, %v1058_v16  ;;  %v4803_v42 = vld [vmem:[#allocation73_spill] sm:$0xff] }
 0x116   :  { %v1531_v36 = vmul.f32 %v1970_v26, %v4005_v51  ;;  %1887 = vrsqrt.f32 %v4007_v33  ;;  %v1882_v61 = vpop.eup %1881  ;;  %v4023_v59 = vmul.f32 %v1878_v23, %v1247_v13  ;;  %v1443_v28 = vsel %vm1411_vm10, %v4801_v37, 1.0  ;;  %v1060_v14 = vld [vmem:[#allocation2 + $0x10a] sm:$0xff]  ;;  %v1973_v26 = vld [vmem:[%s4499_s1 + $0x60] sm:$0xff] }
 0x117   :  { %v1025_v35 = vadd.f32 %v993_v62, %v927_v12  ;;  %v1256_v24 = vmul.f32 %v1882_v61, %v3949_v25  ;;  %v732_v10 = vadd.f32 %v4803_v42, %v634_v9  ;;  %v798_v18 = vmul.f32 %v1971_v7, %v2992_v11  ;;  %v4807_v9 = vld [vmem:[#allocation125_spill] sm:$0xff]  ;;  %v866_v12 = vld [vmem:[#allocation2 + $0x120] sm:$0xff]  ;;  %v4808_v61 = vld [vmem:[#allocation78_spill] sm:$0xff] }
 0x118   :  { %v1563_v39 = vsel %vm1403_vm3, %v1531_v36, %v1233_v17  ;;  %v1884_v23 = vpop.eup %1883  ;;  %v1533_v21 = vmul.f32 %v1972_v45, %v4023_v59  ;;  %v1260_v60 = vand.u32 2147483648, %v3949_v25  ;;  %v538_v43 = vadd.f32 %v4805_v22, %v4804_v32  ;;  %v964_v42 = vld [vmem:[#allocation2 + $0x121] sm:$0xff] }
 0x119   :  { %1595 = vst.msk [vmem:[%s4500_s2 + $0x40] sm:$0xff] %vm177_vm0, %v1563_v39  ;;  %v1123_v47 = vadd.f32 %v1091_v46, %v1025_v35  ;;  %v1258_v54 = vsel %vm1257_vm6, %v3949_v25, %v1256_v24  ;;  %v830_v50 = vadd.f32 %v798_v18, %v732_v10  ;;  %v897_v30 = vmul.f32 %v2995_v3, %v864_v38  ;;  %v1974_v46 = vld [vmem:[#allocation2 + $0x10a] sm:$0xff]  ;;  %v4810_v7 = vld [vmem:[#allocation80_spill] sm:$0xff] }
 0x11a   :  { %vm4577_vm12 = vcmp.gt.f32.partialorder %v4806_v34, 0.0  ;;  %v1565_v53 = vsel %vm4575_vm14, %v1533_v21, %v1247_v13  ;;  %v1261_v17 = vsel %vm1259_vm15, %v1260_v60, %v1258_v54  ;;  %1889 = vrsqrt.f32 %v1443_v28  ;;  %v4809_v10 = vld [vmem:[#allocation114_spill] sm:$0xff]  ;;  %v1062_v32 = vld [vmem:[#allocation2 + $0x122] sm:$0xff] }
 0x11b   :  { %v4054_v19 = vand.u32 2147483647, %v1123_v47  ;;  %1597 = vst.msk [vmem:[%s4500_s2 + $0x50] sm:$0xff] %vm177_vm0, %v1565_v53  ;;  %v4060_v31 = vmul.f32 %v1884_v23, %v1261_v17  ;;  %v929_v16 = vadd.f32 %v897_v30, %v830_v50  ;;  %v995_v15 = vmul.f32 %v3019_v57, %v962_v0  ;;  %v4811_v47 = vld [vmem:[#allocation43_spill] sm:$0xff]  ;;  %v1975_v30 = vld [vmem:[#allocation2 + $0x122] sm:$0xff] }
 0x11c   :  { %v636_v48 = vadd.f32 %v4807_v9, %v538_v43  ;;  %vm1271_vm9 = vcmp.eq.f32.partialorder %v4007_v33, inf  ;;  %v1093_v25 = vmul.f32 %v3023_v29, %v1060_v14  ;;  %v1445_v62 = vsel %vm4577_vm12, %v4806_v34, 1.0  ;;  %v868_v53 = vld [vmem:[#allocation2 + $0x138] sm:$0xff] }
 0x11d   :  { %1891 = vrsqrt.f32 %v4054_v19  ;;  %v1535_v36 = vmul.f32 %v1973_v26, %v4060_v31  ;;  %v1027_v13 = vadd.f32 %v995_v15, %v929_v16  ;;  %v800_v28 = vmul.f32 %v1974_v46, %v2992_v11  ;;  %v1886_v38 = vpop.eup %1885  ;;  %v966_v9 = vld [vmem:[#allocation2 + $0x139] sm:$0xff] }
 0x11e   :  { %v734_v35 = vadd.f32 %v4808_v61, %v636_v48  ;;  %vm1273_vm4 = vcmp.eq.f32.partialorder %v4007_v33, 0.0  ;;  %v1274_v39 = vand.u32 2147483648, %v4007_v33  ;;  %v899_v24 = vmul.f32 %v2995_v3, %v866_v12  ;;  %v4813_v48 = vld [vmem:[#allocation115_spill] sm:$0xff]  ;;  %v4814_v12 = vld [vmem:[#allocation86_spill] sm:$0xff] }
 0x11f   :  { %v540_v18 = vadd.f32 %v4810_v7, %v4809_v10  ;;  %v1567_v45 = vsel %vm4574_vm1, %v1535_v36, %v1261_v17  ;;  %v1125_v21 = vadd.f32 %v1093_v25, %v1027_v13  ;;  %vm1415_vm7 = vcmp.gt.f32.partialorder %v4811_v47, 0.0  ;;  %v1064_v13 = vld [vmem:[#allocation2 + $0x13a] sm:$0xff]  ;;  %v4815_v10 = vld [vmem:[#allocation45_spill] sm:$0xff]  ;;  %v1976_v7 = vld [vmem:[%s4499_s1 + $0x70] sm:$0xff] }
 0x120   :  { %v1888_v23 = vpop.eup %1887  ;;  %v832_v60 = vadd.f32 %v800_v28, %v734_v35  ;;  %1599 = vst.msk [vmem:[%s4500_s2 + $0x60] sm:$0xff] %vm177_vm0, %v1567_v45  ;;  %vm1285_vm6 = vcmp.eq.f32.partialorder %v4054_v19, inf  ;;  %1893 = vrsqrt.f32 %v1445_v62  ;;  %vm1287_vm15 = vcmp.eq.f32.partialorder %v4054_v19, 0.0 }
 0x121   :  { %v1270_v0 = vmul.f32 %v1888_v23, %v4007_v33  ;;  %v638_v22 = vadd.f32 %v3791_v4, %v540_v18  ;;  %v4092_v43 = vand.u32 2147483647, %v1125_v21  ;;  %v997_v50 = vmul.f32 %v3019_v57, %v964_v42  ;;  %v4812_v4 = vld [vmem:[#allocation83_spill] sm:$0xff]  ;;  %v870_v21 = vld [vmem:[#allocation2 + $0x150] sm:$0xff] }
 0x122   :  { %v931_v54 = vadd.f32 %v899_v24, %v832_v60  ;;  %v802_v14 = vmul.f32 %v1975_v30, %v2992_v11  ;;  %v1447_v16 = vsel %vm1415_vm7, %v4811_v47, 1.0  ;;  %v542_v25 = vadd.f32 %v4814_v12, %v4813_v48  ;;  %v4818_v48 = vld [vmem:[#allocation90_spill] sm:$0xff] }
 0x123   :  { %v1272_v17 = vsel %vm1271_vm9, %v4007_v33, %v1270_v0  ;;  %v736_v15 = vadd.f32 %v4812_v4, %v638_v22  ;;  %v1288_v26 = vand.u32 2147483648, %v4054_v19  ;;  %1895 = vrsqrt.f32 %v4092_v43  ;;  %v4816_v0 = vld [vmem:[#allocation89_spill] sm:$0xff]  ;;  %v1977_v22 = vld [vmem:[#allocation2 + $0x13a] sm:$0xff] }
 0x124   :  { %v1275_v62 = vsel %vm1273_vm4, %v1274_v39, %v1272_v17  ;;  %v1095_v36 = vmul.f32 %v3023_v29, %v1062_v32  ;;  %v1890_v61 = vpop.eup %1889  ;;  %v1029_v46 = vadd.f32 %v997_v50, %v931_v54  ;;  %v901_v24 = vmul.f32 %v2995_v3, %v868_v53  ;;  %v968_v53 = vld [vmem:[#allocation2 + $0x151] sm:$0xff] }
 0x125   :  { %v4110_v35 = vmul.f32 %v1886_v38, %v1275_v62  ;;  %v834_v28 = vadd.f32 %v802_v14, %v736_v15  ;;  %1897 = vrsqrt.f32 %v1447_v16  ;;  %v999_v42 = vmul.f32 %v3019_v57, %v966_v9  ;;  %v1066_v15 = vld [vmem:[#allocation2 + $0x152] sm:$0xff]  ;;  %v4817_v9 = vld [vmem:[#allocation117_spill] sm:$0xff] }
 0x126   :  { %vm1417_vm9 = vcmp.gt.f32.partialorder %v4815_v10, 0.0  ;;  %v640_v33 = vadd.f32 %v3794_v2, %v542_v25  ;;  %v1127_v38 = vadd.f32 %v1095_v36, %v1029_v46  ;;  %v1097_v45 = vmul.f32 %v3023_v29, %v1064_v13  ;;  %v4819_v36 = vld [vmem:[#allocation47_spill] sm:$0xff] }
 0x127   :  { %v1892_v39 = vpop.eup %1891  ;;  %v1537_v18 = vmul.f32 %v1976_v7, %v4110_v35  ;;  %v933_v23 = vadd.f32 %v901_v24, %v834_v28  ;;  %vm1299_vm4 = vcmp.eq.f32.partialorder %v4092_v43, inf  ;;  %v804_v2 = vmul.f32 %v1977_v22, %v2992_v11 }
 0x128   :  { %v1284_v60 = vmul.f32 %v1892_v39, %v4054_v19  ;;  %v738_v32 = vadd.f32 %v4816_v0, %v640_v33  ;;  %v4127_v50 = vand.u32 2147483647, %v1127_v38  ;;  %v1449_v14 = vsel %vm1417_vm9, %v4815_v10, 1.0  ;;  %v1978_v39 = vld [vmem:[%s4499_s1 + $0x80] sm:$0xff]  ;;  %v1999_v10 = vld [vmem:[%s4499_s1 + $0x1d0] sm:$0xff] }
 0x129   :  { %v1569_v54 = vsel %vm4573_vm5, %v1537_v18, %v1275_v62  ;;  %v1031_v30 = vadd.f32 %v999_v42, %v933_v23  ;;  %v903_v4 = vmul.f32 %v2995_v3, %v870_v21  ;;  %v544_v12 = vadd.f32 %v4818_v48, %v4817_v9  ;;  %v872_v23 = vld [vmem:[#allocation2 + $0x168] sm:$0xff]  ;;  %v4822_v48 = vld [vmem:[#allocation118_spill] sm:$0xff] }
 0x12a   :  { %1601 = vst.msk [vmem:[%s4500_s2 + $0x70] sm:$0xff] %vm177_vm0, %v1569_v54  ;;  %v1286_v17 = vsel %vm1285_vm6, %v4054_v19, %v1284_v60  ;;  %v836_v16 = vadd.f32 %v804_v2, %v738_v32  ;;  %v1894_v25 = vpop.eup %1893  ;;  %vm1301_vm5 = vcmp.eq.f32.partialorder %v4092_v43, 0.0  ;;  %1899 = vrsqrt.f32 %v4127_v50  ;;  %v1979_v60 = vld [vmem:[#allocation2 + $0x152] sm:$0xff]  ;;  %v4821_v32 = vld [vmem:[#allocation52_spill] sm:$0xff] }
 0x12b   :  { %v1289_v62 = vsel %vm1287_vm15, %v1288_v26, %v1286_v17  ;;  %vm1419_vm1 = vcmp.gt.f32.partialorder %v4819_v36, 0.0  ;;  %v1129_v46 = vadd.f32 %v1097_v45, %v1031_v30  ;;  %v1001_v24 = vmul.f32 %v3019_v57, %v968_v53  ;;  %v970_v30 = vld [vmem:[#allocation2 + $0x169] sm:$0xff] }
 0x12c   :  { %v4147_v13 = vmul.f32 %v1890_v61, %v1289_v62  ;;  %v935_v28 = vadd.f32 %v903_v4, %v836_v16  ;;  %v1302_v42 = vand.u32 2147483648, %v4092_v43  ;;  %1901 = vrsqrt.f32 %v1449_v14  ;;  %v1068_v4 = vld [vmem:[#allocation2 + $0x16a] sm:$0xff] }
 0x12d   :  { %v1099_v33 = vmul.f32 %v3023_v29, %v1066_v15  ;;  %v642_v19 = vadd.f32 %v3813_v56, %v544_v12  ;;  %v1896_v26 = vpop.eup %1895  ;;  %v4157_v61 = vand.u32 2147483647, %v1129_v46  ;;  %v1451_v38 = vsel %vm1419_vm1, %v4819_v36, 1.0  ;;  %v4820_v56 = vld [vmem:[#allocation97_spill] sm:$0xff]  ;;  %v4823_v12 = vld [vmem:[#allocation99_spill] sm:$0xff] }
 0x12e   :  { %v1539_v7 = vmul.f32 %v1978_v39, %v4147_v13  ;;  %v1033_v18 = vadd.f32 %v1001_v24, %v935_v28  ;;  %v1298_v45 = vmul.f32 %v1896_v26, %v4092_v43  ;;  %vm1313_vm6 = vcmp.eq.f32.partialorder %v4127_v50, inf  ;;  %v972_v26 = vld [vmem:[#allocation2 + $0x181] sm:$0xff] }
 0x12f   :  { %v740_v21 = vadd.f32 %v4820_v56, %v642_v19  ;;  %v806_v0 = vmul.f32 %v1979_v60, %v2992_v11  ;;  %vm4576_vm15 = vcmp.gt.f32.partialorder %v4821_v32, 0.0  ;;  %v1898_v22 = vpop.eup %1897  ;;  %vm1315_vm14 = vcmp.eq.f32.partialorder %v4127_v50, 0.0  ;;  %v874_v19 = vld [vmem:[#allocation2 + $0x180] sm:$0xff]  ;;  %v4824_v56 = vld [vmem:[#allocation119_spill] sm:$0xff] }
 0x130   :  { %v1571_v2 = vsel %vm1411_vm10, %v1539_v7, %v1289_v62  ;;  %v1316_v54 = vand.u32 2147483648, %v4127_v50  ;;  %1903 = vrsqrt.f32 %v4157_v61  ;;  %v1300_v14 = vsel %vm1299_vm4, %v4092_v43, %v1298_v45 }
 0x131   :  { %1603 = vst.msk [vmem:[%s4500_s2 + $0x80] sm:$0xff] %vm177_vm0, %v1571_v2  ;;  %v1131_v53 = vadd.f32 %v1099_v33, %v1033_v18  ;;  %v838_v17 = vadd.f32 %v806_v0, %v740_v21  ;;  %v905_v16 = vmul.f32 %v2995_v3, %v872_v23  ;;  %v1303_v15 = vsel %vm1301_vm5, %v1302_v42, %v1300_v14  ;;  %v1070_v0 = vld [vmem:[#allocation2 + $0x182] sm:$0xff] }
 0x132   :  { %1905 = vrsqrt.f32 %v1451_v38  ;;  %v1453_v9 = vsel %vm4576_vm15, %v4821_v32, 1.0  ;;  %v546_v62 = vadd.f32 %v4823_v12, %v4822_v48  ;;  %v4187_v46 = vmul.f32 %v1894_v25, %v1303_v15  ;;  %v1980_v25 = vld [vmem:[%s4499_s1 + $0x90] sm:$0xff] }
 0x133   :  { %v4189_v28 = vand.u32 2147483647, %v1131_v53  ;;  %v937_v24 = vadd.f32 %v905_v16, %v838_v17  ;;  %v1003_v33 = vmul.f32 %v3019_v57, %v970_v30  ;;  %vm1327_vm4 = vcmp.eq.f32.partialorder %v4157_v61, inf  ;;  %v1981_v38 = vld [vmem:[#allocation2 + $0x16a] sm:$0xff]  ;;  %v4825_v53 = vld [vmem:[#allocation84_spill] sm:$0xff] }
 0x134   :  { %v1101_v43 = vmul.f32 %v3023_v29, %v1068_v4  ;;  %1907 = vrsqrt.f32 %v1453_v9  ;;  %v644_v42 = vadd.f32 %v3816_v40, %v546_v62  ;;  %v1900_v39 = vpop.eup %1899  ;;  %v1541_v7 = vmul.f32 %v1980_v25, %v4187_v46  ;;  %v4826_v17 = vld [vmem:[#allocation126_spill] sm:$0xff]  ;;  %v4827_v16 = vld [vmem:[#allocation120_spill] sm:$0xff] }
 0x135   :  { %vm1329_vm5 = vcmp.eq.f32.partialorder %v4157_v61, 0.0  ;;  %v1330_v18 = vand.u32 2147483648, %v4157_v61  ;;  %1909 = vrsqrt.f32 %v4189_v28  ;;  %v808_v23 = vmul.f32 %v1981_v38, %v2992_v11  ;;  %v777_v9 = vld [vmem:[#allocation2 + $0x182] sm:$0xff] }
 0x136   :  { %v1312_v45 = vmul.f32 %v1900_v39, %v4127_v50  ;;  %v1035_v40 = vadd.f32 %v1003_v33, %v937_v24  ;;  %v742_v21 = vadd.f32 %v4824_v56, %v644_v42  ;;  %v907_v60 = vmul.f32 %v2995_v3, %v874_v19  ;;  %v1902_v2 = vpop.eup %1901  ;;  %v876_v42 = vld [vmem:[#allocation2 + $0x198] sm:$0xff] }
 0x137   :  { %v1573_v30 = vsel %vm4577_vm12, %v1541_v7, %v1303_v15  ;;  %v1005_v14 = vmul.f32 %v3019_v57, %v972_v26  ;;  %vm1423_vm15 = vcmp.gt.f32.partialorder %v4825_v53, 0.0  ;;  %v548_v4 = vadd.f32 %v4827_v16, %v4826_v17  ;;  %v974_v7 = vld [vmem:[#allocation2 + $0x199] sm:$0xff] }
 0x138   :  { %1605 = vst.msk [vmem:[%s4500_s2 + $0x90] sm:$0xff] %vm177_vm0, %v1573_v30  ;;  %v1314_v48 = vsel %vm1313_vm6, %v4127_v50, %v1312_v45  ;;  %v1133_v12 = vadd.f32 %v1101_v43, %v1035_v40  ;;  %v840_v62 = vadd.f32 %v808_v23, %v742_v21  ;;  %v1455_v15 = vsel %vm1423_vm15, %v4825_v53, 1.0  ;;  %v4828_v50 = vld [vmem:[#allocation122_spill] sm:$0xff]  ;;  %v1072_v45 = vld [vmem:[#allocation2 + $0x19a] sm:$0xff] }
 0x139   :  { %v1317_v24 = vsel %vm1315_vm14, %v1316_v54, %v1314_v48  ;;  %vm1341_vm12 = vcmp.eq.f32.partialorder %v4189_v28, inf  ;;  %v1103_v33 = vmul.f32 %v3023_v29, %v1070_v0  ;;  %v646_v19 = vadd.f32 %v3819_v44, %v548_v4  ;;  %v1982_v44 = vld [vmem:[%s4499_s1 + $0xa0] sm:$0xff]  ;;  %v2003_v53 = vld [vmem:[%s4499_s1 + $0x1f0] sm:$0xff] }
 0x13a   :  { %v1904_v26 = vpop.eup %1903  ;;  %v4227_v39 = vmul.f32 %v1898_v22, %v1317_v24  ;;  %vm1343_vm6 = vcmp.eq.f32.partialorder %v4189_v28, 0.0  ;;  %v4230_v43 = vand.u32 2147483647, %v1133_v12  ;;  %v939_v25 = vadd.f32 %v907_v60, %v840_v62 }
 0x13b   :  { %v1326_v38 = vmul.f32 %v1904_v26, %v4157_v61  ;;  %1911 = vrsqrt.f32 %v1455_v15  ;;  %v744_v54 = vadd.f32 %v4828_v50, %v646_v19  ;;  %v810_v23 = vmul.f32 %v2992_v11, %v777_v9 }
 0x13c   :  { %v1906_v40 = vpop.eup %1905  ;;  %v1543_v22 = vmul.f32 %v1982_v44, %v4227_v39  ;;  %v1344_v56 = vand.u32 2147483648, %v4189_v28  ;;  %1913 = vrsqrt.f32 %v4230_v43  ;;  %v909_v21 = vmul.f32 %v2995_v3, %v876_v42  ;;  %v1983_v3 = vld [vmem:[%s4499_s1 + $0x100] sm:$0xff]  ;;  %v1989_v44 = vld [vmem:[%s4499_s1 + $0x150] sm:$0xff] }
 0x13d   :  { %v1328_v60 = vsel %vm1327_vm4, %v4157_v61, %v1326_v38  ;;  %v1037_v0 = vadd.f32 %v1005_v14, %v939_v25  ;;  %v842_v11 = vadd.f32 %v810_v23, %v744_v54  ;;  %v1007_v30 = vmul.f32 %v3019_v57, %v974_v7  ;;  %v4829_v61 = vld [vmem:[#allocation87_spill] sm:$0xff]  ;;  %v1988_v38 = vld [vmem:[%s4499_s1 + $0x140] sm:$0xff] }
 0x13e   :  { %v4246_v17 = vpop.eup %1907  ;;  %v1575_v16 = vsel %vm1415_vm7, %v1543_v22, %v1317_v24  ;;  %v1331_v4 = vsel %vm1329_vm5, %v1330_v18, %v1328_v60  ;;  %v1105_v9 = vmul.f32 %v3023_v29, %v1072_v45  ;;  %v1619_v48 = vmul.f32 %v1983_v3, %v3871_v49  ;;  %v1984_v49 = vld [vmem:[%s4499_s1 + $0x110] sm:$0xff]  ;;  %v1990_v22 = vld [vmem:[%s4499_s1 + $0x160] sm:$0xff] }
 0x13f   :  { %v1910_v14 = vpop.eup %1909  ;;  %1607 = vst.msk [vmem:[%s4500_s2 + $0xa0] sm:$0xff] %vm177_vm0, %v1575_v16  ;;  %v4261_v57 = vmul.f32 %v1902_v2, %v1331_v4  ;;  %v1135_v12 = vadd.f32 %v1103_v33, %v1037_v0  ;;  %v941_v62 = vadd.f32 %v909_v21, %v842_v11  ;;  %vm1425_vm14 = vcmp.gt.f32.partialorder %v4829_v61, 0.0  ;;  %v1985_v2 = vld [vmem:[%s4499_s1 + $0x120] sm:$0xff]  ;;  %v1986_v33 = vld [vmem:[%s4499_s1 + $0xb0] sm:$0xff] }
 0x140   :  { %v1340_v29 = vmul.f32 %v1910_v14, %v4189_v28  ;;  %v1651_v18 = vsel %vm1395_vm11, %v1619_v48, 0.0  ;;  %v1621_v15 = vmul.f32 %v1984_v49, %v3899_v1  ;;  %v1623_v24 = vmul.f32 %v1985_v2, %v3932_v63  ;;  %v1987_v1 = vld [vmem:[%s4499_s1 + $0x130] sm:$0xff]  ;;  %v1993_v0 = vld [vmem:[%s4499_s1 + $0x180] sm:$0xff] }
 0x141   :  { %v1545_v19 = vmul.f32 %v1986_v33, %v4261_v57  ;;  %v4279_v41 = vand.u32 2147483647, %v1135_v12  ;;  %v1039_v42 = vadd.f32 %v1007_v30, %v941_v62  ;;  %1760 = vst.msk [vmem:[%s4500_s2 + $0x100] sm:$0xff] %vm177_vm0, %v1651_v18  ;;  %v1625_v63 = vmul.f32 %v1987_v1, %v3973_v8  ;;  %v1996_v14 = vld [vmem:[%s4499_s1 + $0x1b0] sm:$0xff] }
 0x142   :  { %v1342_v26 = vsel %vm1341_vm12, %v4189_v28, %v1340_v29  ;;  %v1653_v25 = vsel %vm1397_vm13, %v1621_v15, 0.0  ;;  %v1655_v7 = vsel %vm1399_vm8, %v1623_v24, 0.0  ;;  %v1627_v50 = vmul.f32 %v1988_v38, %v4005_v51  ;;  %v2001_v38 = vld [vmem:[%s4499_s1 + $0x1e0] sm:$0xff] }
 0x143   :  { %v1577_v54 = vsel %vm1417_vm9, %v1545_v19, %v1331_v4  ;;  %v1345_v8 = vsel %vm1343_vm6, %v1344_v56, %v1342_v26  ;;  %1915 = vrsqrt.f32 %v4279_v41  ;;  %1762 = vst.msk [vmem:[%s4500_s2 + $0x110] sm:$0xff] %vm177_vm0, %v1653_v25  ;;  %1764 = vst.msk [vmem:[%s4500_s2 + $0x120] sm:$0xff] %vm177_vm0, %v1655_v7  ;;  %vm1355_vm11 = vcmp.eq.f32.partialorder %v4230_v43, inf  ;;  %v2000_v25 = vld [vmem:[%s4499_s1 + $0xe0] sm:$0xff] }
 0x144   :  { %1609 = vst.msk [vmem:[%s4500_s2 + $0xb0] sm:$0xff] %vm177_vm0, %v1577_v54  ;;  %v1515_v27 = vmul.f32 %v1906_v40, %v1345_v8  ;;  %v1137_v5 = vadd.f32 %v1105_v9, %v1039_v42  ;;  %v1457_v51 = vsel %vm1425_vm14, %v4829_v61, 1.0  ;;  %v1657_v23 = vsel %vm1401_vm2, %v1625_v63, 0.0  ;;  %v1994_v9 = vld [vmem:[%s4499_s1 + $0x190] sm:$0xff] }
 0x145   :  { %v4321_v28 = vpop.eup %1911  ;;  %v1659_v45 = vsel %vm1403_vm3, %v1627_v50, 0.0  ;;  %v1629_v40 = vmul.f32 %v1989_v44, %v4023_v59  ;;  %v1631_v56 = vmul.f32 %v1990_v22, %v4060_v31  ;;  %1766 = vst.msk [vmem:[%s4500_s2 + $0x130] sm:$0xff] %vm177_vm0, %v1657_v23  ;;  %v1992_v59 = vld [vmem:[%s4499_s1 + $0x170] sm:$0xff]  ;;  %v1635_v11 = vmul.f32 %v1993_v0, %v4147_v13 }
 0x146   :  { %v1914_v21 = vpop.eup %1913  ;;  %v1547_v60 = vmul.f32 %v1991_v52, %v1515_v27  ;;  %v4338_v20 = vand.u32 2147483647, %v1137_v5  ;;  %1768 = vst.msk [vmem:[%s4500_s2 + $0x140] sm:$0xff] %vm177_vm0, %v1659_v45  ;;  %v1633_v31 = vmul.f32 %v1992_v59, %v4110_v35  ;;  %vm4830_vm13 = vcmp.gt.f32.partialorder %v4788_v55, 0.0 }
 0x147   :  { %v1354_v30 = vmul.f32 %v1914_v21, %v4230_v43  ;;  %v1661_v16 = vsel %vm4830_vm13, %v1629_v40, 0.0  ;;  %vm4831_vm8 = vcmp.gt.f32.partialorder %v4792_v6, 0.0  ;;  %v1637_v35 = vmul.f32 %v1994_v9, %v4187_v46 }
 0x148   :  { %v1663_v4 = vsel %vm4831_vm8, %v1631_v56, 0.0  ;;  %v1579_v3 = vsel %vm1419_vm1, %v1547_v60, %v1345_v8  ;;  %vm1357_vm2 = vcmp.eq.f32.partialorder %v4230_v43, 0.0  ;;  %v1358_v13 = vand.u32 2147483648, %v4230_v43  ;;  %1770 = vst.msk [vmem:[%s4500_s2 + $0x150] sm:$0xff] %vm177_vm0, %v1661_v16 }
 0x149   :  { %1917 = vrsqrt.f32 %v4338_v20  ;;  %1772 = vst.msk [vmem:[%s4500_s2 + $0x160] sm:$0xff] %vm177_vm0, %v1663_v4  ;;  %1611 = vst.msk [vmem:[%s4500_s2 + $0xc0] sm:$0xff] %vm177_vm0, %v1579_v3  ;;  %v1356_v55 = vsel %vm1355_vm11, %v4230_v43, %v1354_v30  ;;  %vm4832_vm3 = vcmp.gt.f32.partialorder %v4796_v58, 0.0  ;;  %v1667_v46 = vsel %vm1411_vm10, %v1635_v11, 0.0  ;;  %v1995_v58 = vld [vmem:[%s4499_s1 + $0x1a0] sm:$0xff] }
 0x14a   :  { %1919 = vrsqrt.f32 %v1457_v51  ;;  %v1665_v6 = vsel %vm4832_vm3, %v1633_v31, 0.0  ;;  %v1359_v48 = vsel %vm1357_vm2, %v1358_v13, %v1356_v55  ;;  %1776 = vst.msk [vmem:[%s4500_s2 + $0x180] sm:$0xff] %vm177_vm0, %v1667_v46  ;;  %vm4833_vm12 = vcmp.gt.f32.partialorder %v4806_v34, 0.0  ;;  %v1997_v34 = vld [vmem:[%s4499_s1 + $0x1c0] sm:$0xff] }
 0x14b   :  { %1774 = vst.msk [vmem:[%s4500_s2 + $0x170] sm:$0xff] %vm177_vm0, %v1665_v6  ;;  %v1669_v43 = vsel %vm4833_vm12, %v1637_v35, 0.0  ;;  %v1639_v37 = vmul.f32 %v1995_v58, %v4227_v39  ;;  %v1641_v12 = vmul.f32 %v1996_v14, %v4261_v57  ;;  %v1517_v62 = vmul.f32 %v4246_v17, %v1359_v48  ;;  %v1998_v17 = vld [vmem:[%s4499_s1 + $0xd0] sm:$0xff] }
 0x14c   :  { %1778 = vst.msk [vmem:[%s4500_s2 + $0x190] sm:$0xff] %vm177_vm0, %v1669_v43  ;;  %v1643_v29 = vmul.f32 %v1997_v34, %v1515_v27  ;;  %vm4834_vm10 = vcmp.gt.f32.partialorder %v4821_v32, 0.0  ;;  %v1372_v36 = vand.u32 2147483648, %v4279_v41  ;;  %vm1383_vm4 = vcmp.eq.f32.partialorder %v4338_v20, inf }
 0x14d   :  { %v1671_v39 = vsel %vm1415_vm7, %v1639_v37, 0.0  ;;  %v1673_v18 = vsel %vm1417_vm9, %v1641_v12, 0.0  ;;  %v1916_v49 = vpop.eup %1915  ;;  %v1549_v57 = vmul.f32 %v1998_v17, %v1517_v62  ;;  %v1645_v15 = vmul.f32 %v1999_v10, %v1517_v62 }
 0x14e   :  { %1780 = vst.msk [vmem:[%s4500_s2 + $0x1a0] sm:$0xff] %vm177_vm0, %v1671_v39  ;;  %1782 = vst.msk [vmem:[%s4500_s2 + $0x1b0] sm:$0xff] %vm177_vm0, %v1673_v18  ;;  %v1675_v47 = vsel %vm1419_vm1, %v1643_v29, 0.0  ;;  %v1368_v2 = vmul.f32 %v1916_v49, %v4279_v41  ;;  %vm1369_vm7 = vcmp.eq.f32.partialorder %v4279_v41, inf  ;;  %vm1371_vm9 = vcmp.eq.f32.partialorder %v4279_v41, 0.0 }
 0x14f   :  { %1784 = vst.msk [vmem:[%s4500_s2 + $0x1c0] sm:$0xff] %vm177_vm0, %v1675_v47  ;;  %v1581_v24 = vsel %vm4834_vm10, %v1549_v57, %v1359_v48  ;;  %vm4835_vm1 = vmmov %vm4834_vm10  ;;  %vm1385_vm5 = vcmp.eq.f32.partialorder %v4338_v20, 0.0 }
 0x150   :  { %v1677_v33 = vsel %vm4835_vm1, %v1645_v15, 0.0  ;;  %1613 = vst.msk [vmem:[%s4500_s2 + $0xd0] sm:$0xff] %vm177_vm0, %v1581_v24  ;;  %v1370_v19 = vsel %vm1369_vm7, %v4279_v41, %v1368_v2  ;;  %v1386_v41 = vand.u32 2147483648, %v4338_v20 }
 0x151   :  { %1786 = vst.msk [vmem:[%s4500_s2 + $0x1d0] sm:$0xff] %vm177_vm0, %v1677_v33  ;;  %v1373_v42 = vsel %vm1371_vm9, %v1372_v36, %v1370_v19 }
 0x152   :  { %v1519_v63 = vmul.f32 %v4321_v28, %v1373_v42  ;;  %v2002_v28 = vld [vmem:[%s4499_s1 + $0xf0] sm:$0xff] }
 0x153   :  { %v1918_v1 = vpop.eup %1917 }
 0x154   :  { %v1920_v32 = vpop.eup %1919  ;;  %v1382_v26 = vmul.f32 %v1918_v1, %v4338_v20  ;;  %v1551_v7 = vmul.f32 %v2000_v25, %v1519_v63  ;;  %v1647_v50 = vmul.f32 %v2001_v38, %v1519_v63 }
 0x156   :  { %v1384_v54 = vsel %vm1383_vm4, %v4338_v20, %v1382_v26  ;;  %v1583_v8 = vsel %vm1423_vm15, %v1551_v7, %v1373_v42  ;;  %v1679_v5 = vsel %vm1423_vm15, %v1647_v50, 0.0 }
 0x157   :  { %v1387_v27 = vsel %vm1385_vm5, %v1386_v41, %v1384_v54  ;;  %1615 = vst.msk [vmem:[%s4500_s2 + $0xe0] sm:$0xff] %vm177_vm0, %v1583_v8  ;;  %1788 = vst.msk [vmem:[%s4500_s2 + $0x1e0] sm:$0xff] %vm177_vm0, %v1679_v5 }
 0x158   :  { %v1521_v51 = vmul.f32 %v1920_v32, %v1387_v27 }
 0x15a   :  { %v1553_v23 = vmul.f32 %v2002_v28, %v1521_v51  ;;  %v1649_v45 = vmul.f32 %v2003_v53, %v1521_v51 }
 0x15c   :  { %v1585_v44 = vsel %vm1425_vm14, %v1553_v23, %v1387_v27  ;;  %v1681_v40 = vsel %vm1425_vm14, %v1649_v45, 0.0 }
 0x15d   :  { %1617 = vst.msk [vmem:[%s4500_s2 + $0xf0] sm:$0xff] %vm177_vm0, %v1585_v44  ;;  %1790 = vst.msk [vmem:[%s4500_s2 + $0x1f0] sm:$0xff] %vm177_vm0, %v1681_v40 }

</bundles_post_ra>
